<compile_context>
chip_gen: v6e
topology: v6e:2x2x1
jax: 0.10.0
libtpu: 0.0.40
codegen_flags: <defaults>
</compile_context>

<pallas_src>
import jax
import jax.numpy as jnp
from jax.experimental import pallas as pl
from jax.experimental.pallas import tpu as pltpu

# Small stand-in sizes (module uses 64*64*3=12288 -> 128 -> 128 -> 10).
D_IN = 384      # stand-in for 64*64*3
HID = 128       # hidden width (kept exact; lane-friendly)
OUT = 10        # final output width (kept exact; padded to 128 for a lane-dense store)
BATCH = 256     # large enough to exercise batch tiling


def _round_up(x, m):
    return ((x + m - 1) // m) * m


def _num_batch_tiles_for_device():
    """2 batch tiles on v7x (2 TensorCores/chip), 1 on single-TC generations."""
    try:
        kind = jax.devices()[0].device_kind.lower()
    except Exception:
        return 1
    return 2 if "7" in kind else 1


def _mlp_residual_kernel(x1_ref, x2_ref, w0_ref, b0_ref, w1_ref, b1_ref,
                         w2_ref, b2_ref, out_ref):
    # Linear0: cast the streamed f32 x2 tile to bf16 in-kernel (VPU cast hides under
    # the DMA); bf16 operands with f32 accumulation on the MXU; bias kept f32.
    x2_bf = x2_ref[...].astype(jnp.bfloat16)
    v1 = jnp.dot(x2_bf, w0_ref[...],
                 preferred_element_type=jnp.float32) + b0_ref[...]
    # Residual add in f32 (x1 may be streamed as bf16 by the caller; upcast here).
    v2 = v1 + x1_ref[...].astype(jnp.float32)

    # ReLU + residual
    v1 = jnp.maximum(v2, 0.0)
    v2 = v1 + v2

    # Linear(128, 128)
    v1 = jnp.dot(v2.astype(jnp.bfloat16), w1_ref[...],
                 preferred_element_type=jnp.float32) + b1_ref[...]
    v2 = v1 + v2

    # ReLU + residual
    v1 = jnp.maximum(v2, 0.0)
    v2 = v1 + v2

    # Linear(128, 10) -- zero-padded to 128 output lanes, lane-dense store.
    v1 = jnp.dot(v2.astype(jnp.bfloat16), w2_ref[...],
                 preferred_element_type=jnp.float32) + b2_ref[...]

    # TODO(synk): original final `v2 = v1 + v2` is a (B,10)+(B,128) broadcast error in
    #             PyTorch; intentionally not emulated (return last Linear's output).
    out_ref[...] = v1.astype(out_ref.dtype)


def prepare_params(w0, b0, w1, b1, w2, b2):
    """One-time parameter prep, hoisted out of the per-call path:
      * weights cast to bf16 (MXU operands),
      * last layer's weight/bias zero-padded to a lane-dense 128-wide output,
      * biases kept f32 as (1, out) rows.
    Returns (params_tuple, out_dim)."""
    out_dim = w2.shape[1]
    out_pad = _round_up(out_dim, 128)
    w2p = jnp.pad(w2, ((0, 0), (0, out_pad - out_dim)))
    b2p = jnp.pad(jnp.reshape(b2, (1, -1)), ((0, 0), (0, out_pad - out_dim)))
    params = (
        w0.astype(jnp.bfloat16), jnp.reshape(b0, (1, -1)).astype(jnp.float32),
        w1.astype(jnp.bfloat16), jnp.reshape(b1, (1, -1)).astype(jnp.float32),
        w2p.astype(jnp.bfloat16), b2p.astype(jnp.float32),
    )
    return params, out_dim


def mlp_residual(x1, x2, prepped, *, num_batch_tiles=None):
    """x1: (B, HID) residual input, x2: (B, D_IN) Linear0 input. Returns (B, OUT) f32."""
    (w0b, b0, w1b, b1, w2b, b2p), out_dim = prepped
    B, d_in = x2.shape
    hid = w0b.shape[1]
    out_pad = w2b.shape[1]

    if num_batch_tiles is None:
        num_batch_tiles = _num_batch_tiles_for_device()

    # Batch tile: as large as possible (one grid step on single-TC v5e/v6e), split in
    # two on v7x so both TensorCores work; capped so the double-buffered f32 x2 tile
    # stays within a modest VMEM budget at the real D_IN=12288.
    vmem_budget = 8 * 1024 * 1024
    tb_cap = max(8, ((vmem_budget // (2 * d_in * 4)) // 8) * 8)
    tb = _round_up(pl.cdiv(B, num_batch_tiles), 8)
    tb = min(tb, tb_cap)

    b_pad = _round_up(B, tb)
    if b_pad != B:
        x1 = jnp.pad(x1, ((0, b_pad - B), (0, 0)))
        x2 = jnp.pad(x2, ((0, b_pad - B), (0, 0)))
    grid = (b_pad // tb,)

    def build(single_buffer_weights):
        def resident(shape):
            # Weights / biases stay in VMEM across all batch tiles (constant index_map);
            # a single buffer suffices — no double buffering needed.
            if single_buffer_weights:
                return pl.BlockSpec(shape, lambda i: (0, 0),
                                    pipeline_mode=pl.Buffered(1))
            return pl.BlockSpec(shape, lambda i: (0, 0))

        return pl.pallas_call(
            _mlp_residual_kernel,
            out_shape=jax.ShapeDtypeStruct((b_pad, out_pad), jnp.float32),
            grid=grid,
            in_specs=[
                pl.BlockSpec((tb, hid), lambda i: (i, 0)),    # x1 (residual), streamed
                pl.BlockSpec((tb, d_in), lambda i: (i, 0)),   # x2 (f32), streamed
                resident(w0b.shape), resident(b0.shape),      # W0, b0
                resident(w1b.shape), resident(b1.shape),      # W1, b1
                resident(w2b.shape), resident(b2p.shape),     # W2 (padded), b2 (padded)
            ],
            out_specs=pl.BlockSpec((tb, out_pad), lambda i: (i, 0)),
            compiler_params=pltpu.CompilerParams(
                dimension_semantics=("parallel",),
            ),
        )

    args = (x1, x2, w0b, b0, w1b, b1, w2b, b2p)
    try:
        out = build(True)(*args)
    except Exception:
        # Fallback for jax versions without BlockSpec(pipeline_mode=...) support.
        out = build(False)(*args)

    # Lane-dense padded output; slice back to the real (B, OUT).
    return out[:B, :out_dim]


def _reference(x1, x2, w0, b0, w1, b1, w2, b2):
    # Mirrors the kernel's bf16-operand / f32-accumulate dtype handling.
    bf = jnp.bfloat16
    v1 = jnp.dot(x2.astype(bf), w0.astype(bf),
                 preferred_element_type=jnp.float32) + b0
    v2 = v1 + x1
    v1 = jnp.maximum(v2, 0.0); v2 = v1 + v2
    v1 = jnp.dot(v2.astype(bf), w1.astype(bf),
                 preferred_element_type=jnp.float32) + b1
    v2 = v1 + v2
    v1 = jnp.maximum(v2, 0.0); v2 = v1 + v2
    v1 = jnp.dot(v2.astype(bf), w2.astype(bf),
                 preferred_element_type=jnp.float32) + b2
    return v1


if __name__ == "__main__":
    key = jax.random.PRNGKey(0)
    k_x1, k_x2, k_w0, k_b0, k_w1, k_b1, k_w2, k_b2 = jax.random.split(key, 8)

    # Inputs (roles as implied by the forward: x2 feeds Linear0, x1 is the residual).
    x1 = jax.random.normal(k_x1, (BATCH, HID), dtype=jnp.float32)
    x2 = jax.random.normal(k_x2, (BATCH, D_IN), dtype=jnp.float32)

    # Deterministic parameter init (PyTorch-style uniform(-1/sqrt(fan_in), 1/sqrt(fan_in))),
    # stored pre-transposed as (in_features, out_features).
    def init_linear(kw, kb, fan_in, fan_out):
        bound = 1.0 / jnp.sqrt(fan_in)
        w = jax.random.uniform(kw, (fan_in, fan_out), jnp.float32, -bound, bound)
        b = jax.random.uniform(kb, (1, fan_out), jnp.float32, -bound, bound)
        return w, b

    w0, b0 = init_linear(k_w0, k_b0, D_IN, HID)
    w1, b1 = init_linear(k_w1, k_b1, HID, HID)
    w2, b2 = init_linear(k_w2, k_b2, HID, OUT)

    # One-time parameter prep (weight cast / lane padding hoisted out of the call path).
    prepped = prepare_params(w0, b0, w1, b1, w2, b2)
    prepped = (tuple(jax.block_until_ready(p) for p in prepped[0]), prepped[1])

    out = mlp_residual(x1, x2, prepped)
    out = jax.block_until_ready(out)

    ref = _reference(x1, x2, w0, b0, w1, b1, w2, b2)
    assert out.shape == (BATCH, OUT)
    assert jnp.allclose(out, ref, atol=1e-2, rtol=1e-2)

    print("KERNEL_OK")
</pallas_src>

<mosaic_0001>
module attributes {stable_mosaic.version = 11 : i64} {
  func.func @_mlp_residual_kernel(%arg0: i32, %arg1: memref<256x128xf32, #tpu.memory_space<vmem>>, %arg2: memref<256x384xf32, #tpu.memory_space<vmem>>, %arg3: memref<384x128xbf16, #tpu.memory_space<vmem>>, %arg4: memref<1x128xf32, #tpu.memory_space<vmem>>, %arg5: memref<128x128xbf16, #tpu.memory_space<vmem>>, %arg6: memref<1x128xf32, #tpu.memory_space<vmem>>, %arg7: memref<128x128xbf16, #tpu.memory_space<vmem>>, %arg8: memref<1x128xf32, #tpu.memory_space<vmem>>, %arg9: memref<256x128xf32, #tpu.memory_space<vmem>>) attributes {dimension_semantics = [#tpu.dimension_semantics<parallel>], iteration_bounds = array<i64: 1>, scalar_prefetch = 0 : i64, scratch_operands = 0 : i64, tpu.core_type = #tpu.core_type<tc>, window_params = [{transform_indices = @transform_0, window_bounds = array<i64: 256, 128>}, {transform_indices = @transform_1, window_bounds = array<i64: 256, 384>}, {pipeline_mode = #tpu.pipeline_mode<synchronous>, transform_indices = @transform_2, window_bounds = array<i64: 384, 128>}, {pipeline_mode = #tpu.pipeline_mode<synchronous>, transform_indices = @transform_3, window_bounds = array<i64: 1, 128>}, {pipeline_mode = #tpu.pipeline_mode<synchronous>, transform_indices = @transform_4, window_bounds = array<i64: 128, 128>}, {pipeline_mode = #tpu.pipeline_mode<synchronous>, transform_indices = @transform_5, window_bounds = array<i64: 1, 128>}, {pipeline_mode = #tpu.pipeline_mode<synchronous>, transform_indices = @transform_6, window_bounds = array<i64: 128, 128>}, {pipeline_mode = #tpu.pipeline_mode<synchronous>, transform_indices = @transform_7, window_bounds = array<i64: 1, 128>}, {transform_indices = @transform_8, window_bounds = array<i64: 256, 128>}]} {
    %c0 = arith.constant 0 : index
    %c0_0 = arith.constant 0 : index
    %0 = vector.load %arg2[%c0, %c0_0] : memref<256x384xf32, #tpu.memory_space<vmem>>, vector<256x384xf32>
    %1 = arith.truncf %0 : vector<256x384xf32> to vector<256x384xbf16>
    %c0_1 = arith.constant 0 : index
    %c0_2 = arith.constant 0 : index
    %2 = vector.load %arg3[%c0_1, %c0_2] : memref<384x128xbf16, #tpu.memory_space<vmem>>, vector<384x128xbf16>
    %cst = arith.constant dense<0.000000e+00> : vector<256x128xf32>
    %3 = tpu.matmul %1, %2, %cst {dimension_numbers = #tpu.dot_dimension_numbers<[1], [0], [0], [1], [0, 0, 1, 1], [], []>} : vector<256x384xbf16>, vector<384x128xbf16>, vector<256x128xf32> -> vector<256x128xf32>
    %c0_3 = arith.constant 0 : index
    %c0_4 = arith.constant 0 : index
    %4 = vector.load %arg4[%c0_3, %c0_4] : memref<1x128xf32, #tpu.memory_space<vmem>>, vector<1x128xf32>
    %5 = vector.broadcast %4 : vector<1x128xf32> to vector<256x128xf32>
    %6 = arith.addf %3, %5 : vector<256x128xf32>
    %c0_5 = arith.constant 0 : index
    %c0_6 = arith.constant 0 : index
    %7 = vector.load %arg1[%c0_5, %c0_6] : memref<256x128xf32, #tpu.memory_space<vmem>>, vector<256x128xf32>
    %8 = arith.addf %6, %7 : vector<256x128xf32>
    %cst_7 = arith.constant 0.000000e+00 : f32
    %9 = vector.broadcast %cst_7 : f32 to vector<256x128xf32>
    %10 = arith.maximumf %8, %9 : vector<256x128xf32>
    %11 = arith.addf %10, %8 : vector<256x128xf32>
    %12 = arith.truncf %11 : vector<256x128xf32> to vector<256x128xbf16>
    %c0_8 = arith.constant 0 : index
    %c0_9 = arith.constant 0 : index
    %13 = vector.load %arg5[%c0_8, %c0_9] : memref<128x128xbf16, #tpu.memory_space<vmem>>, vector<128x128xbf16>
    %cst_10 = arith.constant dense<0.000000e+00> : vector<256x128xf32>
    %14 = tpu.matmul %12, %13, %cst_10 {dimension_numbers = #tpu.dot_dimension_numbers<[1], [0], [0], [1], [0, 0, 1, 1], [], []>} : vector<256x128xbf16>, vector<128x128xbf16>, vector<256x128xf32> -> vector<256x128xf32>
    %c0_11 = arith.constant 0 : index
    %c0_12 = arith.constant 0 : index
    %15 = vector.load %arg6[%c0_11, %c0_12] : memref<1x128xf32, #tpu.memory_space<vmem>>, vector<1x128xf32>
    %16 = vector.broadcast %15 : vector<1x128xf32> to vector<256x128xf32>
    %17 = arith.addf %14, %16 : vector<256x128xf32>
    %18 = arith.addf %17, %11 : vector<256x128xf32>
    %cst_13 = arith.constant 0.000000e+00 : f32
    %19 = vector.broadcast %cst_13 : f32 to vector<256x128xf32>
    %20 = arith.maximumf %18, %19 : vector<256x128xf32>
    %21 = arith.addf %20, %18 : vector<256x128xf32>
    %22 = arith.truncf %21 : vector<256x128xf32> to vector<256x128xbf16>
    %c0_14 = arith.constant 0 : index
    %c0_15 = arith.constant 0 : index
    %23 = vector.load %arg7[%c0_14, %c0_15] : memref<128x128xbf16, #tpu.memory_space<vmem>>, vector<128x128xbf16>
    %cst_16 = arith.constant dense<0.000000e+00> : vector<256x128xf32>
    %24 = tpu.matmul %22, %23, %cst_16 {dimension_numbers = #tpu.dot_dimension_numbers<[1], [0], [0], [1], [0, 0, 1, 1], [], []>} : vector<256x128xbf16>, vector<128x128xbf16>, vector<256x128xf32> -> vector<256x128xf32>
    %c0_17 = arith.constant 0 : index
    %c0_18 = arith.constant 0 : index
    %25 = vector.load %arg8[%c0_17, %c0_18] : memref<1x128xf32, #tpu.memory_space<vmem>>, vector<1x128xf32>
    %26 = vector.broadcast %25 : vector<1x128xf32> to vector<256x128xf32>
    %27 = arith.addf %24, %26 : vector<256x128xf32>
    %c0_19 = arith.constant 0 : index
    %c0_20 = arith.constant 0 : index
    %28 = vector.load %arg9[%c0_19, %c0_20] : memref<256x128xf32, #tpu.memory_space<vmem>>, vector<256x128xf32>
    tpu.vector_store %arg9[%c0_19, %c0_20], %27 {strides = array<i32>} : memref<256x128xf32, #tpu.memory_space<vmem>>, vector<256x128xf32>,
    return
  }
  func.func @transform_0(%arg0: i32) -> (i32, i32) {
    %c0_i32 = arith.constant 0 : i32
    %c0_i32_0 = arith.constant 0 : i32
    return %arg0, %c0_i32 : i32, i32
  }
  func.func @transform_1(%arg0: i32) -> (i32, i32) {
    %c0_i32 = arith.constant 0 : i32
    %c0_i32_0 = arith.constant 0 : i32
    return %arg0, %c0_i32 : i32, i32
  }
  func.func @transform_2(%arg0: i32) -> (i32, i32) {
    %c0_i32 = arith.constant 0 : i32
    %c0_i32_0 = arith.constant 0 : i32
    %c0_i32_1 = arith.constant 0 : i32
    return %c0_i32, %c0_i32_0 : i32, i32
  }
  func.func @transform_3(%arg0: i32) -> (i32, i32) {
    %c0_i32 = arith.constant 0 : i32
    %c0_i32_0 = arith.constant 0 : i32
    %c0_i32_1 = arith.constant 0 : i32
    return %c0_i32, %c0_i32_0 : i32, i32
  }
  func.func @transform_4(%arg0: i32) -> (i32, i32) {
    %c0_i32 = arith.constant 0 : i32
    %c0_i32_0 = arith.constant 0 : i32
    %c0_i32_1 = arith.constant 0 : i32
    return %c0_i32, %c0_i32_0 : i32, i32
  }
  func.func @transform_5(%arg0: i32) -> (i32, i32) {
    %c0_i32 = arith.constant 0 : i32
    %c0_i32_0 = arith.constant 0 : i32
    %c0_i32_1 = arith.constant 0 : i32
    return %c0_i32, %c0_i32_0 : i32, i32
  }
  func.func @transform_6(%arg0: i32) -> (i32, i32) {
    %c0_i32 = arith.constant 0 : i32
    %c0_i32_0 = arith.constant 0 : i32
    %c0_i32_1 = arith.constant 0 : i32
    return %c0_i32, %c0_i32_0 : i32, i32
  }
  func.func @transform_7(%arg0: i32) -> (i32, i32) {
    %c0_i32 = arith.constant 0 : i32
    %c0_i32_0 = arith.constant 0 : i32
    %c0_i32_1 = arith.constant 0 : i32
    return %c0_i32, %c0_i32_0 : i32, i32
  }
  func.func @transform_8(%arg0: i32) -> (i32, i32) {
    %c0_i32 = arith.constant 0 : i32
    %c0_i32_0 = arith.constant 0 : i32
    return %arg0, %c0_i32 : i32, i32
  }
}

module attributes {stable_mosaic.version = 11 : i64} {
  func.func @_mlp_residual_kernel(%arg0: i32, %arg1: memref<256x128xf32, #tpu.memory_space<vmem>>, %arg2: memref<256x384xf32, #tpu.memory_space<vmem>>, %arg3: memref<384x128xbf16, #tpu.memory_space<vmem>>, %arg4: memref<1x128xf32, #tpu.memory_space<vmem>>, %arg5: memref<128x128xbf16, #tpu.memory_space<vmem>>, %arg6: memref<1x128xf32, #tpu.memory_space<vmem>>, %arg7: memref<128x128xbf16, #tpu.memory_space<vmem>>, %arg8: memref<1x128xf32, #tpu.memory_space<vmem>>, %arg9: memref<256x128xf32, #tpu.memory_space<vmem>>) attributes {dimension_semantics = [#tpu.dimension_semantics<parallel>], iteration_bounds = array<i64: 1>, scalar_prefetch = 0 : i64, scratch_operands = 0 : i64, tpu.core_type = #tpu.core_type<tc>, window_params = [{transform_indices = @transform_0, window_bounds = array<i64: 256, 128>}, {transform_indices = @transform_1, window_bounds = array<i64: 256, 384>}, {pipeline_mode = #tpu.pipeline_mode<synchronous>, transform_indices = @transform_2, window_bounds = array<i64: 384, 128>}, {pipeline_mode = #tpu.pipeline_mode<synchronous>, transform_indices = @transform_3, window_bounds = array<i64: 1, 128>}, {pipeline_mode = #tpu.pipeline_mode<synchronous>, transform_indices = @transform_4, window_bounds = array<i64: 128, 128>}, {pipeline_mode = #tpu.pipeline_mode<synchronous>, transform_indices = @transform_5, window_bounds = array<i64: 1, 128>}, {pipeline_mode = #tpu.pipeline_mode<synchronous>, transform_indices = @transform_6, window_bounds = array<i64: 128, 128>}, {pipeline_mode = #tpu.pipeline_mode<synchronous>, transform_indices = @transform_7, window_bounds = array<i64: 1, 128>}, {transform_indices = @transform_8, window_bounds = array<i64: 256, 128>}]} {
    %c0 = arith.constant 0 : index
    %c0_0 = arith.constant 0 : index
    %0 = vector.load %arg2[%c0, %c0_0] : memref<256x384xf32, #tpu.memory_space<vmem>>, vector<256x384xf32>
    %1 = arith.truncf %0 : vector<256x384xf32> to vector<256x384xbf16>
    %c0_1 = arith.constant 0 : index
    %c0_2 = arith.constant 0 : index
    %2 = vector.load %arg3[%c0_1, %c0_2] : memref<384x128xbf16, #tpu.memory_space<vmem>>, vector<384x128xbf16>
    %cst = arith.constant dense<0.000000e+00> : vector<256x128xf32>
    %3 = tpu.matmul %1, %2, %cst {dimension_numbers = #tpu.dot_dimension_numbers<[1], [0], [0], [1], [0, 0, 1, 1], [], []>} : vector<256x384xbf16>, vector<384x128xbf16>, vector<256x128xf32> -> vector<256x128xf32>
    %c0_3 = arith.constant 0 : index
    %c0_4 = arith.constant 0 : index
    %4 = vector.load %arg4[%c0_3, %c0_4] : memref<1x128xf32, #tpu.memory_space<vmem>>, vector<1x128xf32>
    %5 = vector.broadcast %4 : vector<1x128xf32> to vector<256x128xf32>
    %6 = arith.addf %3, %5 : vector<256x128xf32>
    %c0_5 = arith.constant 0 : index
    %c0_6 = arith.constant 0 : index
    %7 = vector.load %arg1[%c0_5, %c0_6] : memref<256x128xf32, #tpu.memory_space<vmem>>, vector<256x128xf32>
    %8 = arith.addf %6, %7 : vector<256x128xf32>
    %cst_7 = arith.constant 0.000000e+00 : f32
    %9 = vector.broadcast %cst_7 : f32 to vector<256x128xf32>
    %10 = arith.maximumf %8, %9 : vector<256x128xf32>
    %11 = arith.addf %10, %8 : vector<256x128xf32>
    %12 = arith.truncf %11 : vector<256x128xf32> to vector<256x128xbf16>
    %c0_8 = arith.constant 0 : index
    %c0_9 = arith.constant 0 : index
    %13 = vector.load %arg5[%c0_8, %c0_9] : memref<128x128xbf16, #tpu.memory_space<vmem>>, vector<128x128xbf16>
    %cst_10 = arith.constant dense<0.000000e+00> : vector<256x128xf32>
    %14 = tpu.matmul %12, %13, %cst_10 {dimension_numbers = #tpu.dot_dimension_numbers<[1], [0], [0], [1], [0, 0, 1, 1], [], []>} : vector<256x128xbf16>, vector<128x128xbf16>, vector<256x128xf32> -> vector<256x128xf32>
    %c0_11 = arith.constant 0 : index
    %c0_12 = arith.constant 0 : index
    %15 = vector.load %arg6[%c0_11, %c0_12] : memref<1x128xf32, #tpu.memory_space<vmem>>, vector<1x128xf32>
    %16 = vector.broadcast %15 : vector<1x128xf32> to vector<256x128xf32>
    %17 = arith.addf %14, %16 : vector<256x128xf32>
    %18 = arith.addf %17, %11 : vector<256x128xf32>
    %cst_13 = arith.constant 0.000000e+00 : f32
    %19 = vector.broadcast %cst_13 : f32 to vector<256x128xf32>
    %20 = arith.maximumf %18, %19 : vector<256x128xf32>
    %21 = arith.addf %20, %18 : vector<256x128xf32>
    %22 = arith.truncf %21 : vector<256x128xf32> to vector<256x128xbf16>
    %c0_14 = arith.constant 0 : index
    %c0_15 = arith.constant 0 : index
    %23 = vector.load %arg7[%c0_14, %c0_15] : memref<128x128xbf16, #tpu.memory_space<vmem>>, vector<128x128xbf16>
    %cst_16 = arith.constant dense<0.000000e+00> : vector<256x128xf32>
    %24 = tpu.matmul %22, %23, %cst_16 {dimension_numbers = #tpu.dot_dimension_numbers<[1], [0], [0], [1], [0, 0, 1, 1], [], []>} : vector<256x128xbf16>, vector<128x128xbf16>, vector<256x128xf32> -> vector<256x128xf32>
    %c0_17 = arith.constant 0 : index
    %c0_18 = arith.constant 0 : index
    %25 = vector.load %arg8[%c0_17, %c0_18] : memref<1x128xf32, #tpu.memory_space<vmem>>, vector<1x128xf32>
    %26 = vector.broadcast %25 : vector<1x128xf32> to vector<256x128xf32>
    %27 = arith.addf %24, %26 : vector<256x128xf32>
    %c0_19 = arith.constant 0 : index
    %c0_20 = arith.constant 0 : index
    %28 = vector.load %arg9[%c0_19, %c0_20] : memref<256x128xf32, #tpu.memory_space<vmem>>, vector<256x128xf32>
    tpu.vector_store %arg9[%c0_19, %c0_20], %27 {strides = array<i32>} : memref<256x128xf32, #tpu.memory_space<vmem>>, vector<256x128xf32>,
    return
  }
  func.func @transform_0(%arg0: i32) -> (i32, i32) {
    %c0_i32 = arith.constant 0 : i32
    %c0_i32_0 = arith.constant 0 : i32
    return %arg0, %c0_i32 : i32, i32
  }
  func.func @transform_1(%arg0: i32) -> (i32, i32) {
    %c0_i32 = arith.constant 0 : i32
    %c0_i32_0 = arith.constant 0 : i32
    return %arg0, %c0_i32 : i32, i32
  }
  func.func @transform_2(%arg0: i32) -> (i32, i32) {
    %c0_i32 = arith.constant 0 : i32
    %c0_i32_0 = arith.constant 0 : i32
    %c0_i32_1 = arith.constant 0 : i32
    return %c0_i32, %c0_i32_0 : i32, i32
  }
  func.func @transform_3(%arg0: i32) -> (i32, i32) {
    %c0_i32 = arith.constant 0 : i32
    %c0_i32_0 = arith.constant 0 : i32
    %c0_i32_1 = arith.constant 0 : i32
    return %c0_i32, %c0_i32_0 : i32, i32
  }
  func.func @transform_4(%arg0: i32) -> (i32, i32) {
    %c0_i32 = arith.constant 0 : i32
    %c0_i32_0 = arith.constant 0 : i32
    %c0_i32_1 = arith.constant 0 : i32
    return %c0_i32, %c0_i32_0 : i32, i32
  }
  func.func @transform_5(%arg0: i32) -> (i32, i32) {
    %c0_i32 = arith.constant 0 : i32
    %c0_i32_0 = arith.constant 0 : i32
    %c0_i32_1 = arith.constant 0 : i32
    return %c0_i32, %c0_i32_0 : i32, i32
  }
  func.func @transform_6(%arg0: i32) -> (i32, i32) {
    %c0_i32 = arith.constant 0 : i32
    %c0_i32_0 = arith.constant 0 : i32
    %c0_i32_1 = arith.constant 0 : i32
    return %c0_i32, %c0_i32_0 : i32, i32
  }
  func.func @transform_7(%arg0: i32) -> (i32, i32) {
    %c0_i32 = arith.constant 0 : i32
    %c0_i32_0 = arith.constant 0 : i32
    %c0_i32_1 = arith.constant 0 : i32
    return %c0_i32, %c0_i32_0 : i32, i32
  }
  func.func @transform_8(%arg0: i32) -> (i32, i32) {
    %c0_i32 = arith.constant 0 : i32
    %c0_i32_0 = arith.constant 0 : i32
    return %arg0, %c0_i32 : i32, i32
  }
}

</mosaic_0001>

<bundles_post_ra>
// kernel: tpu_custom_call.1
= control target key start
LH: loop header
LB: loop body
LE: loop exit
PB: predicated region body
PF: predicated region fallthrough
CT: control target
= control target key end

     0   :  { %13 = vsyncpa [#allocation3], 0  ;;  %s2467_s0 = inlined_call_operand.hbm [shape: f32[256,128], index: 0, kind: input, shape index: {}]   ;;  %s2468_s1 = inlined_call_operand.hbm [shape: f32[256,384], index: 1, kind: input, shape index: {}]   ;;  %s2469_s2 = inlined_call_operand.hbm [shape: bf16[384,128], index: 2, kind: input, shape index: {}]   ;;  %s2470_s3 = inlined_call_operand.vmem [shape: f32[1,128], index: 3, kind: input, shape index: {}]   ;;  %s2471_s4 = inlined_call_operand.hbm [shape: bf16[128,128], index: 4, kind: input, shape index: {}]   ;;  %s2472_s5 = inlined_call_operand.vmem [shape: f32[1,128], index: 5, kind: input, shape index: {}]   ;;  %s2473_s6 = inlined_call_operand.hbm [shape: bf16[128,128], index: 6, kind: input, shape index: {}]   ;;  %s2474_s7 = inlined_call_operand.vmem [shape: f32[1,128], index: 7, kind: input, shape index: {}]   ;;  %s2475_s8 = inlined_call_operand.hbm [shape: f32[256,128], index: 8, kind: output, shape index: {}]  }
   0x1   :  { %14 = vsyncpa [#allocation6], 0 }
   0x2   :  { %15 = vsyncpa [#allocation9], 0 }
   0x3   :  { %16 = vsyncpa [#allocation4], 0  ;;  %s2102_s27 = smov [#allocation5]  }
   0x4   :  { %s34_s28 = sshll.u32 %s2102_s27, 4  ;;  %s35_s28 = int_to_ptr.vmem [resolvable:$true] %s34_s28 }
   0x5   :  { %s1982_s29 = scalar_lea.vmem %s35_s28, 12288  ;;  %p1987_p1 = scmp.lt.s32.totalorder %s35_s28, %s35_s28 }
   0x6   :  { %p1983_p0 = scmp.ne.s32.totalorder %s35_s28, %s1982_s29  ;;  %p1988_p2 = scmp.lt.s32.totalorder %s1982_s29, %s1982_s29 }
   0x8   :  { %p1989_p3 = por %p1988_p2, %p1987_p1 }
   0xa   :  { %p1990_p4 = pnand %p1989_p3, %p1983_p0 }
   0xc   :  { %1993 = shalt.err (!%p1990_p4)
}
   0xd   :  { %s2103_s30 = smov 384   ;;  %s2104_s9 = smov 24  }
   0xe   :  { %40 = dma.hbm_to_vmem [thread:$0]  %s2468_s1, 12288, %s35_s28, [#allocation6], %s2103_s30, %s2103_s30, %s2104_s9  }
   0xf   :  { %s2105_s12 = smov [#allocation8]   ;;  %s2106_s14 = smov [#allocation2]  }
  0x10   :  { %s60_s13 = sshll.u32 %s2105_s12, 4  ;;  %s22_s15 = sshll.u32 %s2106_s14, 4  ;;  %s61_s13 = int_to_ptr.vmem [resolvable:$true] %s60_s13  ;;  %s23_s15 = int_to_ptr.vmem [resolvable:$true] %s22_s15 }
  0x11   :  { %s2002_s16 = scalar_lea.vmem %s61_s13, 1024  ;;  %p2007_p6 = scmp.lt.s32.totalorder %s61_s13, %s61_s13 }
  0x12   :  { %p2003_p5 = scmp.ne.s32.totalorder %s61_s13, %s2002_s16  ;;  %p2008_p7 = scmp.lt.s32.totalorder %s2002_s16, %s2002_s16 }
  0x14   :  { %p2009_p8 = por %p2008_p7, %p2007_p6 }
  0x16   :  { %p2010_p9 = pnand %p2009_p8, %p2003_p5 }
  0x18   :  { %2013 = shalt.err (!%p2010_p9)
}
  0x19   :  { %s2107_s17 = smov 64   ;;  %s2108_s18 = smov 4  }
  0x1a   :  { %66 = dma.hbm_to_vmem [thread:$0]  %s2471_s4, 1024, %s61_s13, [#allocation9], %s2107_s17, %s2107_s17, %s2108_s18  }
  0x1b   :  { %s2022_s1 = scalar_lea.vmem %s23_s15, 4096  ;;  %p2027_p11 = scmp.lt.s32.totalorder %s23_s15, %s23_s15 }
  0x1c   :  { %p2023_p10 = scmp.ne.s32.totalorder %s23_s15, %s2022_s1  ;;  %p2028_p12 = scmp.lt.s32.totalorder %s2022_s1, %s2022_s1 }
  0x1e   :  { %p2029_p13 = por %p2028_p12, %p2027_p11 }
  0x20   :  { %p2030_p0 = pnand %p2029_p13, %p2023_p10 }
  0x22   :  { %2033 = shalt.err (!%p2030_p0)
}
  0x23   :  { %s2109_s21 = smov 128   ;;  %s2110_s22 = smov 8  }
  0x24   :  { %28 = dma.hbm_to_vmem [thread:$0]  %s2467_s0, 4096, %s23_s15, [#allocation3], %s2109_s21, %s2109_s21, %s2110_s22  }
  0x25   :  { %s2111_s25 = smov [#allocation7]   ;;  %s2112_s4 = smov [#allocation10]  }
  0x26   :  { %s46_s26 = sshll.u32 %s2111_s25, 4  ;;  %s74_s27 = sshll.u32 %s2112_s4, 4  ;;  %s47_s26 = int_to_ptr.vmem [resolvable:$true] %s46_s26  ;;  %s75_s27 = int_to_ptr.vmem [resolvable:$true] %s74_s27 }
  0x27   :  { %s2042_s28 = scalar_lea.vmem %s47_s26, 3072  ;;  %p2047_p2 = scmp.lt.s32.totalorder %s47_s26, %s47_s26 }
  0x28   :  { %p2043_p1 = scmp.ne.s32.totalorder %s47_s26, %s2042_s28  ;;  %p2048_p3 = scmp.lt.s32.totalorder %s2042_s28, %s2042_s28 }
  0x2a   :  { %p2049_p4 = por %p2048_p3, %p2047_p2 }
  0x2c   :  { %p2050_p5 = pnand %p2049_p4, %p2043_p1 }
  0x2e   :  { %2053 = shalt.err (!%p2050_p5)
}
  0x2f   :  { %52 = dma.hbm_to_vmem [thread:$0]  %s2469_s2, 3072, %s47_s26, [#allocation6], %s2107_s17, %s2107_s17, %s2108_s18  }
  0x30   :  { %s2062_s0 = scalar_lea.vmem %s75_s27, 1024  ;;  %p2067_p7 = scmp.lt.s32.totalorder %s75_s27, %s75_s27 }
  0x31   :  { %p2063_p6 = scmp.ne.s32.totalorder %s75_s27, %s2062_s0  ;;  %p2068_p8 = scmp.lt.s32.totalorder %s2062_s0, %s2062_s0 }
  0x33   :  { %p2069_p9 = por %p2068_p8, %p2067_p7 }
  0x35   :  { %p2070_p10 = pnand %p2069_p9, %p2063_p6 }
  0x37   :  { %2073 = shalt.err (!%p2070_p10)
}
  0x38   :  { %80 = dma.hbm_to_vmem [thread:$0]  %s2473_s6, 1024, %s75_s27, [#allocation9], %s2107_s17, %s2107_s17, %s2108_s18  }
  0x39   :  { %2094 = dma.done.wait [#allocation3], 4096  }
  0x3a   :  { %2095 = vsyncadd [#allocation3], 4294963200 }
  0x3b   :  { %2096 = dma.done.wait [#allocation6], 15360  }
  0x3c   :  { %2097 = vsyncadd [#allocation6], 4294951936 }
  0x3d   :  { %2098 = dma.done.wait [#allocation9], 2048  }
  0x3e   :  { %2099 = vsyncadd [#allocation9], 4294965248  ;;  %v1934_v0 = vld [vmem:[#allocation7 + $0x78] sm:$0xff]   ;;  %v1936_v2 = vld [vmem:[#allocation7 + $0x70] sm:$0xff]  }
  0x3f   :  { %v1935_v1 = vld [vmem:[#allocation7 + $0x38] sm:$0xff]   ;;  %1578 = vmatprep.subr.bf16.mxu0 %v1934_v0  ;;  %1906 = vmatprep.subr.bf16.mxu1 %v1934_v0  ;;  %v1937_v3 = vld [vmem:[#allocation7 + $0x30] sm:$0xff]   ;;  %v1938_v4 = vld [vmem:[#allocation7 + $0x68] sm:$0xff]  }
  0x40   :  { %1579 = vmatpush3.bf16.msra.mxu0 %v1935_v1  ;;  %1914 = vmatpush3.bf16.msra.mxu1 %v1935_v1  ;;  %v1939_v5 = vld [vmem:[#allocation7 + $0x28] sm:$0xff]   ;;  %v1940_v6 = vld [vmem:[#allocation7 + $0x60] sm:$0xff]   ;;  %v1942_v8 = vld [vmem:[#allocation7 + $0x58] sm:$0xff]  }
  0x41   :  { %1580 = vmatprep.subr.bf16.mxu0 %v1936_v2  ;;  %1907 = vmatprep.subr.bf16.mxu1 %v1936_v2  ;;  %v1941_v7 = vld [vmem:[#allocation7 + $0x20] sm:$0xff]   ;;  %v1943_v9 = vld [vmem:[#allocation7 + $0x18] sm:$0xff]   ;;  %v1944_v10 = vld [vmem:[#allocation7 + $0x50] sm:$0xff]  }
  0x42   :  { %v100_v11 = vld [vmem:[#allocation5 + $0x8] sm:$0xff]  ;;  %v103_v12 = vld [vmem:[#allocation5 + $0x20] sm:$0xff]  ;;  %v1945_v17 = vld [vmem:[#allocation7 + $0x10] sm:$0xff]  }
  0x43   :  { %v172_v13 = vld [vmem:[#allocation5 + $0x248] sm:$0xff]  ;;  %v196_v14 = vpack.c.bf16 %v103_v12, %v100_v11  ;;  %v175_v15 = vld [vmem:[#allocation5 + $0x260] sm:$0xff]  ;;  %v102_v23 = vld [vmem:[#allocation5 + $0x18] sm:$0xff] }
  0x44   :  { %1581 = vmatpush3.bf16.msra.mxu0 %v1937_v3  ;;  %1915 = vmatpush3.bf16.msra.mxu1 %v1937_v3  ;;  %v232_v16 = vpack.c.bf16 %v175_v15, %v172_v13  ;;  %v1946_v18 = vld [vmem:[#allocation7 + $0x48] sm:$0xff]   ;;  %v1948_v20 = vld [vmem:[#allocation7 + $0x40] sm:$0xff]   ;;  %v174_v25 = vld [vmem:[#allocation5 + $0x258] sm:$0xff] }
  0x45   :  { %1582 = vmatprep.subr.bf16.mxu0 %v1938_v4  ;;  %1908 = vmatprep.subr.bf16.mxu1 %v1938_v4  ;;  %v1947_v19 = vld [vmem:[#allocation7 + $0x8] sm:$0xff]   ;;  %v1949_v21 = vld [vmem:[#allocation7] sm:$0xff]   ;;  %v1950_v26 = vld [vmem:[#allocation7 + $0xb8] sm:$0xff]  }
  0x46   :  { %474 = vmatprep.mubr.bf16.mxu0 %v196_v14  ;;  %570 = vmatprep.mubr.bf16.mxu1 %v232_v16  ;;  %v99_v22 = vld [vmem:[#allocation5] sm:$0xff]  ;;  %v106_v27 = vld [vmem:[#allocation5 + $0x38] sm:$0xff]  ;;  %v109_v28 = vld [vmem:[#allocation5 + $0x50] sm:$0xff] }
  0x47   :  { %v171_v24 = vld [vmem:[#allocation5 + $0x240] sm:$0xff]  ;;  %v178_v29 = vld [vmem:[#allocation5 + $0x278] sm:$0xff]  ;;  %v181_v30 = vld [vmem:[#allocation5 + $0x290] sm:$0xff]  ;;  %v195_v31 = vpack.c.bf16 %v102_v23, %v99_v22  ;;  %v199_v33 = vpack.c.bf16 %v109_v28, %v106_v27 }
  0x48   :  { %1583 = vmatpush3.bf16.msra.mxu0 %v1939_v5  ;;  %1916 = vmatpush3.bf16.msra.mxu1 %v1939_v5  ;;  %v231_v32 = vpack.c.bf16 %v174_v25, %v171_v24  ;;  %v1951_v34 = vld [vmem:[#allocation7 + $0xb0] sm:$0xff]   ;;  %v235_v35 = vpack.c.bf16 %v181_v30, %v178_v29  ;;  %v108_v37 = vld [vmem:[#allocation5 + $0x48] sm:$0xff]  ;;  %v115_v42 = vld [vmem:[#allocation5 + $0x80] sm:$0xff] }
  0x49   :  { %1584 = vmatprep.subr.bf16.mxu0 %v1940_v6  ;;  %1909 = vmatprep.subr.bf16.mxu1 %v1940_v6  ;;  %v105_v36 = vld [vmem:[#allocation5 + $0x30] sm:$0xff]  ;;  %v180_v39 = vld [vmem:[#allocation5 + $0x288] sm:$0xff]  ;;  %v187_v44 = vld [vmem:[#allocation5 + $0x2c0] sm:$0xff] }
  0x4a   :  { %v177_v38 = vld [vmem:[#allocation5 + $0x270] sm:$0xff]  ;;  %v1952_v40 = vld [vmem:[#allocation7 + $0xa8] sm:$0xff]   ;;  %v198_v45 = vpack.c.bf16 %v108_v37, %v105_v36  ;;  %v1953_v48 = vld [vmem:[#allocation7 + $0xa0] sm:$0xff]  }
  0x4b   :  { %v112_v41 = vld [vmem:[#allocation5 + $0x68] sm:$0xff]  ;;  %v234_v46 = vpack.c.bf16 %v180_v39, %v177_v38  ;;  %v111_v50 = vld [vmem:[#allocation5 + $0x60] sm:$0xff]  ;;  %v114_v51 = vld [vmem:[#allocation5 + $0x78] sm:$0xff] }
  0x4c   :  { %1585 = vmatpush3.bf16.msra.mxu0 %v1941_v7  ;;  %1917 = vmatpush3.bf16.msra.mxu1 %v1941_v7  ;;  %v184_v43 = vld [vmem:[#allocation5 + $0x2a8] sm:$0xff]  ;;  %v202_v47 = vpack.c.bf16 %v115_v42, %v112_v41  ;;  %v183_v52 = vld [vmem:[#allocation5 + $0x2a0] sm:$0xff]  ;;  %v186_v53 = vld [vmem:[#allocation5 + $0x2b8] sm:$0xff]  ;;  %v201_v59 = vpack.c.bf16 %v114_v51, %v111_v50 }
  0x4d   :  { %1586 = vmatprep.subr.bf16.mxu0 %v1942_v8  ;;  %1910 = vmatprep.subr.bf16.mxu1 %v1942_v8  ;;  %v238_v49 = vpack.c.bf16 %v187_v44, %v184_v43  ;;  %v1954_v54 = vld [vmem:[#allocation7 + $0x98] sm:$0xff]   ;;  %v121_v56 = vld [vmem:[#allocation5 + $0xb0] sm:$0xff]  ;;  %v237_v60 = vpack.c.bf16 %v186_v53, %v183_v52  ;;  %v120_v1 = vld [vmem:[#allocation5 + $0xa8] sm:$0xff] }
  0x4e   :  { %v118_v55 = vld [vmem:[#allocation5 + $0x98] sm:$0xff]  ;;  %v193_v58 = vld [vmem:[#allocation5 + $0x2f0] sm:$0xff]  ;;  %v192_v3 = vld [vmem:[#allocation5 + $0x2e8] sm:$0xff] }
  0x4f   :  { %v190_v57 = vld [vmem:[#allocation5 + $0x2d8] sm:$0xff]  ;;  %v205_v61 = vpack.c.bf16 %v121_v56, %v118_v55  ;;  %v1955_v62 = vld [vmem:[#allocation7 + $0x90] sm:$0xff]   ;;  %v1956_v4 = vld [vmem:[#allocation7 + $0x88] sm:$0xff]  }
  0x50   :  { %1587 = vmatpush3.bf16.msra.mxu0 %v1943_v9  ;;  %1918 = vmatpush3.bf16.msra.mxu1 %v1943_v9  ;;  %v241_v63 = vpack.c.bf16 %v193_v58, %v190_v57  ;;  %v117_v0 = vld [vmem:[#allocation5 + $0x90] sm:$0xff]  ;;  %v124_v5 = vld [vmem:[#allocation5 + $0xc8] sm:$0xff]  ;;  %v127_v6 = vld [vmem:[#allocation5 + $0xe0] sm:$0xff] }
  0x51   :  { %1588 = vmatprep.subr.bf16.mxu0 %v1944_v10  ;;  %1911 = vmatprep.subr.bf16.mxu1 %v1944_v10  ;;  %v189_v2 = vld [vmem:[#allocation5 + $0x2d0] sm:$0xff]  ;;  %v104_v8 = vld [vmem:[#allocation5 + $0x28] sm:$0xff]  ;;  %v204_v9 = vpack.c.bf16 %v120_v1, %v117_v0  ;;  %v1957_v11 = vld [vmem:[#allocation7 + $0x80] sm:$0xff]   ;;  %v208_v12 = vpack.c.bf16 %v127_v6, %v124_v5 }
  0x52   :  { %v101_v7 = vld [vmem:[#allocation5 + $0x10] sm:$0xff]  ;;  %v240_v10 = vpack.c.bf16 %v192_v3, %v189_v2  ;;  %v123_v14 = vld [vmem:[#allocation5 + $0xc0] sm:$0xff]  ;;  %v126_v15 = vld [vmem:[#allocation5 + $0xd8] sm:$0xff] }
  0x53   :  { %v197_v13 = vpack.c.bf16 %v104_v8, %v101_v7  ;;  %v107_v16 = vld [vmem:[#allocation5 + $0x40] sm:$0xff]  ;;  %v207_v22 = vpack.c.bf16 %v126_v15, %v123_v14  ;;  %v132_v27 = vld [vmem:[#allocation5 + $0x108] sm:$0xff]  ;;  %v122_v29 = vld [vmem:[#allocation5 + $0xb8] sm:$0xff] }
  0x54   :  { %1589 = vmatpush3.bf16.msra.mxu0 %v1945_v17  ;;  %1919 = vmatpush3.bf16.msra.mxu1 %v1945_v17  ;;  %v110_v17 = vld [vmem:[#allocation5 + $0x58] sm:$0xff]  ;;  %v119_v28 = vld [vmem:[#allocation5 + $0xa0] sm:$0xff]  ;;  %v136_v30 = vld [vmem:[#allocation5 + $0x128] sm:$0xff] }
  0x55   :  { %1590 = vmatprep.subr.bf16.mxu0 %v1946_v18  ;;  %1912 = vmatprep.subr.bf16.mxu1 %v1946_v18  ;;  %v130_v18 = vld [vmem:[#allocation5 + $0xf8] sm:$0xff]  ;;  %v200_v23 = vpack.c.bf16 %v110_v17, %v107_v16  ;;  %v135_v38 = vld [vmem:[#allocation5 + $0x120] sm:$0xff]  ;;  %v145_v43 = vld [vmem:[#allocation5 + $0x170] sm:$0xff] }
  0x56   :  { %v138_v39 = vld [vmem:[#allocation5 + $0x138] sm:$0xff]  ;;  %v137_v44 = vld [vmem:[#allocation5 + $0x130] sm:$0xff]  ;;  %v144_v51 = vld [vmem:[#allocation5 + $0x168] sm:$0xff] }
  0x57   :  { %v134_v41 = vld [vmem:[#allocation5 + $0x118] sm:$0xff]  ;;  %v141_v50 = vld [vmem:[#allocation5 + $0x150] sm:$0xff]  ;;  %v143_v52 = vld [vmem:[#allocation5 + $0x160] sm:$0xff] }
  0x58   :  { %1591 = vmatpush3.bf16.msra.mxu0 %v1947_v19  ;;  %1920 = vmatpush3.bf16.msra.mxu1 %v1947_v19  ;;  %v133_v19 = vld [vmem:[#allocation5 + $0x110] sm:$0xff]  ;;  %v142_v42 = vld [vmem:[#allocation5 + $0x158] sm:$0xff]  ;;  %v151_v55 = vld [vmem:[#allocation5 + $0x1a0] sm:$0xff]  ;;  %v216_v58 = vpack.c.bf16 %v144_v51, %v141_v50 }
  0x59   :  { %1592 = vmatprep.subr.bf16.mxu0 %v1948_v20  ;;  %1913 = vmatprep.subr.bf16.mxu1 %v1948_v20  ;;  %v113_v20 = vld [vmem:[#allocation5 + $0x70] sm:$0xff]  ;;  %v211_v24 = vpack.c.bf16 %v133_v19, %v130_v18  ;;  %v146_v53 = vld [vmem:[#allocation5 + $0x178] sm:$0xff]  ;;  %v152_v57 = vld [vmem:[#allocation5 + $0x1a8] sm:$0xff] }
  0x5a   :  { %v149_v56 = vld [vmem:[#allocation5 + $0x190] sm:$0xff]  ;;  %v155_v0 = vld [vmem:[#allocation5 + $0x1c0] sm:$0xff]  ;;  %v158_v1 = vld [vmem:[#allocation5 + $0x1d8] sm:$0xff] }
  0x5b   :  { %v154_v2 = vld [vmem:[#allocation5 + $0x1b8] sm:$0xff]  ;;  %v157_v3 = vld [vmem:[#allocation5 + $0x1d0] sm:$0xff]  ;;  %v164_v5 = vld [vmem:[#allocation5 + $0x208] sm:$0xff]  ;;  %v224_v7 = vpack.c.bf16 %v158_v1, %v155_v0 }
  0x5c   :  { %1593 = vmatpush3.bf16.msra.mxu0 %v1949_v21  ;;  %1921 = vmatpush3.bf16.msra.mxu1 %v1949_v21  ;;  %v116_v21 = vld [vmem:[#allocation5 + $0x88] sm:$0xff]  ;;  %v223_v8 = vpack.c.bf16 %v157_v3, %v154_v2  ;;  %v163_v15 = vld [vmem:[#allocation5 + $0x200] sm:$0xff]  ;;  %v173_v16 = vld [vmem:[#allocation5 + $0x250] sm:$0xff] }
  0x5d   :  { %1762 = vmatprep.subr.bf16.mxu1 %v1950_v26  ;;  %v203_v25 = vpack.c.bf16 %v116_v21, %v113_v20  ;;  %v160_v14 = vld [vmem:[#allocation5 + $0x1e8] sm:$0xff]  ;;  %v1958_v20 = vld [vmem:[#allocation8 + $0x38] sm:$0xff]  }
  0x5e   :  { %v176_v17 = vld [vmem:[#allocation5 + $0x268] sm:$0xff]  ;;  %v226_v21 = vpack.c.bf16 %v163_v15, %v160_v14  ;;  %v1970_v0 = vld [vmem:[#allocation10 + $0x18] sm:$0xff]  }
  0x5f   :  { %475 = vmatmul.mubr.bf16.vlgmr.msra.gmra.mxu0 %v195_v31  ;;  %571 = vmatmul.mubr.bf16.vlgmr.msra.gmra.mxu1 %v231_v32  ;;  %v139_v31 = vld [vmem:[#allocation5 + $0x140] sm:$0xff]  ;;  %v125_v32 = vld [vmem:[#allocation5 + $0xd0] sm:$0xff] }
  0x60   :  { %1763 = vmatpush3.bf16.msra.mxu1 %v1950_v26  ;;  %482 = vmatprep.mubr.bf16.mxu0 %v199_v33  ;;  %v129_v26 = vld [vmem:[#allocation5 + $0xf0] sm:$0xff]  ;;  %v128_v33 = vld [vmem:[#allocation5 + $0xe8] sm:$0xff]  ;;  %v214_v36 = vpack.c.bf16 %v139_v31, %v136_v30 }
  0x61   :  { %1764 = vmatprep.subr.bf16.mxu1 %v1951_v34  ;;  %578 = vmatprep.mubr.bf16.mxu1 %v235_v35  ;;  %v206_v35 = vpack.c.bf16 %v122_v29, %v119_v28  ;;  %v209_v37 = vpack.c.bf16 %v128_v33, %v125_v32  ;;  %v169_v28 = vld [vmem:[#allocation5 + $0x230] sm:$0xff]  ;;  %v188_v30 = vld [vmem:[#allocation5 + $0x2c8] sm:$0xff] }
  0x62   :  { %v185_v29 = vld [vmem:[#allocation5 + $0x2b0] sm:$0xff] }
  0x63   :  { %v1959_v33 = vld [vmem:[#allocation8 + $0x30] sm:$0xff]  }
  0x64   :  { %1765 = vmatpush3.bf16.msra.mxu1 %v1951_v34  ;;  %v210_v34 = vpack.c.bf16 %v132_v27, %v129_v26  ;;  %v182_v26 = vld [vmem:[#allocation5 + $0x298] sm:$0xff] }
  0x65   :  { %1766 = vmatprep.subr.bf16.mxu1 %v1952_v40  ;;  %v166_v27 = vld [vmem:[#allocation5 + $0x218] sm:$0xff] }
  0x67   :  { %483 = vmatmul.mubr.bf16.gmra.mxu0 %v198_v45  ;;  %579 = vmatmul.mubr.bf16.gmra.mxu1 %v234_v46  ;;  %v140_v45 = vld [vmem:[#allocation5 + $0x148] sm:$0xff]  ;;  %v213_v46 = vpack.c.bf16 %v138_v39, %v135_v38  ;;  %v191_v38 = vld [vmem:[#allocation5 + $0x2e0] sm:$0xff]  ;;  %v194_v39 = vld [vmem:[#allocation5 + $0x2f8] sm:$0xff] }
  0x68   :  { %1767 = vmatpush3.bf16.msra.mxu1 %v1952_v40  ;;  %490 = vmatprep.mubr.bf16.mxu0 %v202_v47  ;;  %v131_v40 = vld [vmem:[#allocation5 + $0x100] sm:$0xff] }
  0x69   :  { %1768 = vmatprep.subr.bf16.mxu1 %v1953_v48  ;;  %586 = vmatprep.mubr.bf16.mxu1 %v238_v49  ;;  %v212_v47 = vpack.c.bf16 %v134_v41, %v131_v40  ;;  %v215_v49 = vpack.c.bf16 %v140_v45, %v137_v44  ;;  %v242_v41 = vpack.c.bf16 %v194_v39, %v191_v38  ;;  %v1962_v44 = vld [vmem:[#allocation8 + $0x18] sm:$0xff]   ;;  %v1963_v45 = vld [vmem:[#allocation8 + $0x10] sm:$0xff]  }
  0x6c   :  { %1769 = vmatpush3.bf16.msra.mxu1 %v1953_v48  ;;  %v217_v48 = vpack.c.bf16 %v145_v43, %v142_v42  ;;  %v1960_v42 = vld [vmem:[#allocation8 + $0x28] sm:$0xff]   ;;  %v1961_v43 = vld [vmem:[#allocation8 + $0x20] sm:$0xff]  }
  0x6d   :  { %1770 = vmatprep.subr.bf16.mxu1 %v1954_v54 }
  0x6f   :  { %491 = vmatmul.mubr.bf16.gmra.mxu0 %v201_v59  ;;  %587 = vmatmul.mubr.bf16.gmra.mxu1 %v237_v60  ;;  %v218_v59 = vpack.c.bf16 %v146_v53, %v143_v52  ;;  %v1968_v52 = vld [vmem:[#allocation10 + $0x28] sm:$0xff]  }
  0x70   :  { %1771 = vmatpush3.bf16.msra.mxu1 %v1954_v54  ;;  %498 = vmatprep.mubr.bf16.mxu0 %v205_v61  ;;  %v148_v54 = vld [vmem:[#allocation5 + $0x188] sm:$0xff]  ;;  %v221_v61 = vpack.c.bf16 %v152_v57, %v149_v56 }
  0x71   :  { %1772 = vmatprep.subr.bf16.mxu1 %v1955_v62  ;;  %594 = vmatprep.mubr.bf16.mxu1 %v241_v63  ;;  %v220_v60 = vpack.c.bf16 %v151_v55, %v148_v54  ;;  %v150_v63 = vld [vmem:[#allocation5 + $0x198] sm:$0xff] }
  0x74   :  { %1773 = vmatpush3.bf16.msra.mxu1 %v1955_v62  ;;  %v147_v62 = vld [vmem:[#allocation5 + $0x180] sm:$0xff] }
  0x75   :  { %1774 = vmatprep.subr.bf16.mxu1 %v1956_v4  ;;  %v219_v6 = vpack.c.bf16 %v150_v63, %v147_v62 }
  0x77   :  { %499 = vmatmul.mubr.bf16.gmra.mxu0 %v204_v9  ;;  %595 = vmatmul.mubr.bf16.gmra.mxu1 %v240_v10  ;;  %v153_v10 = vld [vmem:[#allocation5 + $0x1b0] sm:$0xff] }
  0x78   :  { %1775 = vmatpush3.bf16.msra.mxu1 %v1956_v4  ;;  %506 = vmatprep.mubr.bf16.mxu0 %v208_v12  ;;  %v161_v4 = vld [vmem:[#allocation5 + $0x1f0] sm:$0xff]  ;;  %v167_v12 = vld [vmem:[#allocation5 + $0x220] sm:$0xff] }
  0x79   :  { %1776 = vmatprep.subr.bf16.mxu1 %v1957_v11  ;;  %1778 = vmatprep.mubr.bf16.mxu1 %v197_v13  ;;  %v227_v9 = vpack.c.bf16 %v164_v5, %v161_v4  ;;  %v170_v13 = vld [vmem:[#allocation5 + $0x238] sm:$0xff] }
  0x7a   :  { %v230_v19 = vpack.c.bf16 %v170_v13, %v167_v12 }
  0x7c   :  { %1777 = vmatpush3.bf16.msra.mxu1 %v1957_v11  ;;  %v156_v11 = vld [vmem:[#allocation5 + $0x1c8] sm:$0xff] }
  0x7d   :  { %v222_v18 = vpack.c.bf16 %v156_v11, %v153_v10  ;;  %1810 = vmatprep.subr.bf16.mxu1 %v1958_v20 }
  0x7f   :  { %507 = vmatmul.mubr.bf16.gmra.mxu0 %v207_v22  ;;  %1779 = vmatmul.mubr.bf16.vlgmr.msra.gmra.mxu1 %v200_v23  ;;  %v233_v22 = vpack.c.bf16 %v176_v17, %v173_v16  ;;  %v159_v23 = vld [vmem:[#allocation5 + $0x1e0] sm:$0xff] }
  0x80   :  { %514 = vmatprep.mubr.bf16.mxu0 %v211_v24  ;;  %1782 = vmatprep.mubr.bf16.mxu1 %v203_v25  ;;  %v162_v24 = vld [vmem:[#allocation5 + $0x1f8] sm:$0xff]  ;;  %v179_v25 = vld [vmem:[#allocation5 + $0x280] sm:$0xff] }
  0x81   :  { %1811 = vmatpush3.bf16.msra.mxu1 %v1958_v20  ;;  %v225_v31 = vpack.c.bf16 %v162_v24, %v159_v23  ;;  %v236_v32 = vpack.c.bf16 %v182_v26, %v179_v25 }
  0x82   :  { %1812 = vmatprep.subr.bf16.mxu1 %v1959_v33 }
  0x85   :  { %1813 = vmatpush3.bf16.msra.mxu1 %v1959_v33 }
  0x86   :  { %1814 = vmatprep.subr.bf16.mxu1 %v1960_v42 }
  0x87   :  { %515 = vmatmul.mubr.bf16.gmra.mxu0 %v210_v34  ;;  %1783 = vmatmul.mubr.bf16.gmra.mxu1 %v206_v35  ;;  %v229_v34 = vpack.c.bf16 %v169_v28, %v166_v27  ;;  %v239_v35 = vpack.c.bf16 %v188_v30, %v185_v29  ;;  %v2203_v30 = vld [vmem:[%s2470_s3] ss:$0 sm:$0xff] }
  0x88   :  { %522 = vmatprep.mubr.bf16.mxu0 %v214_v36  ;;  %1786 = vmatprep.mubr.bf16.mxu1 %v209_v37  ;;  %v165_v36 = vld [vmem:[#allocation5 + $0x210] sm:$0xff]  ;;  %v168_v37 = vld [vmem:[#allocation5 + $0x228] sm:$0xff] }
  0x89   :  { %v228_v40 = vpack.c.bf16 %v168_v37, %v165_v36  ;;  %1815 = vmatpush3.bf16.msra.mxu1 %v1960_v42  ;;  %v764_v42 = vld [vmem:[#allocation2] sm:$0xff] }
  0x8a   :  { %1816 = vmatprep.subr.bf16.mxu1 %v1961_v43 }
  0x8d   :  { %1817 = vmatpush3.bf16.msra.mxu1 %v1961_v43 }
  0x8e   :  { %1818 = vmatprep.subr.bf16.mxu1 %v1962_v44 }
  0x8f   :  { %523 = vmatmul.mubr.bf16.gmra.mxu0 %v213_v46  ;;  %1787 = vmatmul.mubr.bf16.gmra.mxu1 %v212_v47  ;;  %v1964_v46 = vld [vmem:[#allocation8 + $0x8] sm:$0xff]   ;;  %v1965_v47 = vld [vmem:[#allocation8] sm:$0xff]  }
  0x90   :  { %530 = vmatprep.mubr.bf16.mxu0 %v217_v48  ;;  %1790 = vmatprep.mubr.bf16.mxu1 %v215_v49  ;;  %v1966_v48 = vld [vmem:[#allocation10 + $0x38] sm:$0xff]   ;;  %v1967_v49 = vld [vmem:[#allocation10 + $0x30] sm:$0xff]  }
  0x91   :  { %1819 = vmatpush3.bf16.msra.mxu1 %v1962_v44  ;;  %1858 = vmatprep.subr.bf16.mxu0 %v1966_v48  ;;  %v766_v44 = vld [vmem:[#allocation2 + $0x10] sm:$0xff] }
  0x92   :  { %1820 = vmatprep.subr.bf16.mxu1 %v1963_v45  ;;  %1859 = vmatpush3.bf16.msra.mxu0 %v1966_v48 }
  0x93   :  { %1860 = vmatprep.subr.bf16.mxu0 %v1967_v49 }
  0x95   :  { %1821 = vmatpush3.bf16.msra.mxu1 %v1963_v45 }
  0x96   :  { %1822 = vmatprep.subr.bf16.mxu1 %v1964_v46  ;;  %1861 = vmatpush3.bf16.msra.mxu0 %v1967_v49 }
  0x97   :  { %531 = vmatmul.mubr.bf16.gmra.mxu0 %v216_v58  ;;  %1791 = vmatmul.mubr.bf16.gmra.mxu1 %v218_v59  ;;  %v1969_v58 = vld [vmem:[#allocation10 + $0x20] sm:$0xff]  }
  0x98   :  { %538 = vmatprep.mubr.bf16.mxu0 %v220_v60  ;;  %1794 = vmatprep.mubr.bf16.mxu1 %v221_v61 }
  0x99   :  { %1823 = vmatpush3.bf16.msra.mxu1 %v1964_v46  ;;  %1862 = vmatprep.subr.bf16.mxu0 %v1968_v52 }
  0x9a   :  { %1824 = vmatprep.subr.bf16.mxu1 %v1965_v47  ;;  %1863 = vmatpush3.bf16.msra.mxu0 %v1968_v52 }
  0x9b   :  { %1864 = vmatprep.subr.bf16.mxu0 %v1969_v58 }
  0x9d   :  { %1825 = vmatpush3.bf16.msra.mxu1 %v1965_v47  ;;  %v767_v47 = vld [vmem:[#allocation2 + $0x18] sm:$0xff] }
  0x9e   :  { %1865 = vmatpush3.bf16.msra.mxu0 %v1969_v58 }
  0x9f   :  { %539 = vmatmul.mubr.bf16.gmra.mxu0 %v219_v6  ;;  %1795 = vmatmul.mubr.bf16.gmra.mxu1 %v224_v7 }
  0xa0   :  { %546 = vmatprep.mubr.bf16.mxu0 %v223_v8  ;;  %1798 = vmatprep.mubr.bf16.mxu1 %v227_v9 }
  0xa1   :  { %1866 = vmatprep.subr.bf16.mxu0 %v1970_v0 }
  0xa2   :  { %1867 = vmatpush3.bf16.msra.mxu0 %v1970_v0 }
  0xa7   :  { %547 = vmatmul.mubr.bf16.gmra.mxu0 %v222_v18  ;;  %1799 = vmatmul.mubr.bf16.gmra.mxu1 %v230_v19 }
  0xa8   :  { %554 = vmatprep.mubr.bf16.mxu0 %v226_v21  ;;  %1802 = vmatprep.mubr.bf16.mxu1 %v233_v22 }
  0xaf   :  { %555 = vmatmul.mubr.bf16.gmra.mxu0 %v225_v31  ;;  %1803 = vmatmul.mubr.bf16.gmra.mxu1 %v236_v32 }
  0xb0   :  { %562 = vmatprep.mubr.bf16.mxu0 %v229_v34  ;;  %1806 = vmatprep.mubr.bf16.mxu1 %v239_v35 }
  0xb7   :  { %563 = vmatmul.mubr.bf16.gmra.mxu0 %v228_v40  ;;  %1807 = vmatmul.mubr.bf16.gmra.mxu1 %v242_v41 }
 0x11f   :  { %v1594_v50 = vpop.f32.mrf.mxu0  ;;  %v1666_v51 = vpop.f32.mrf.mxu1 }
 0x121   :  { %v1595_v53 = vpop.f32.mrf.mxu0  ;;  %v1667_v54 = vpop.f32.mrf.mxu1 }
 0x122   :  { %v2186_v55 = vadd.f32 %v1667_v54, %v1666_v51  ;;  %v1596_v26 = vadd.f32 %v1595_v53, %v1594_v50 }
 0x123   :  { %v1597_v56 = vpop.f32.mrf.mxu0  ;;  %v1669_v57 = vpop.f32.mrf.mxu1 }
 0x124   :  { %v477_v36 = vadd.f32 %v1596_v26, %v2203_v30 }
 0x125   :  { %v1598_v59 = vpop.f32.mrf.mxu0  ;;  %v1670_v60 = vpop.f32.mrf.mxu1 }
 0x126   :  { %v2188_v61 = vadd.f32 %v1670_v60, %v1669_v57  ;;  %v1599_v37 = vadd.f32 %v1598_v59, %v1597_v56  ;;  %v765_v59 = vld [vmem:[#allocation2 + $0x8] sm:$0xff] }
 0x127   :  { %v1600_v62 = vpop.f32.mrf.mxu0  ;;  %v1672_v63 = vpop.f32.mrf.mxu1 }
 0x128   :  { %v480_v53 = vadd.f32 %v1599_v37, %v2203_v30 }
 0x129   :  { %v1601_v1 = vpop.f32.mrf.mxu0  ;;  %v1673_v2 = vpop.f32.mrf.mxu1 }
 0x12a   :  { %v2190_v3 = vadd.f32 %v1673_v2, %v1672_v63  ;;  %v1602_v27 = vadd.f32 %v1601_v1, %v1600_v62 }
 0x12b   :  { %v1603_v4 = vpop.f32.mrf.mxu0  ;;  %v1675_v5 = vpop.f32.mrf.mxu1 }
 0x12c   :  { %v485_v35 = vadd.f32 %v1602_v27, %v2203_v30 }
 0x12d   :  { %v1604_v6 = vpop.f32.mrf.mxu0  ;;  %v1676_v7 = vpop.f32.mrf.mxu1 }
 0x12e   :  { %v2192_v8 = vadd.f32 %v1676_v7, %v1675_v5  ;;  %v1605_v31 = vadd.f32 %v1604_v6, %v1603_v4 }
 0x12f   :  { %v1606_v9 = vpop.f32.mrf.mxu0  ;;  %v1678_v10 = vpop.f32.mrf.mxu1 }
 0x130   :  { %v488_v43 = vadd.f32 %v1605_v31, %v2203_v30 }
 0x131   :  { %v1607_v11 = vpop.f32.mrf.mxu0  ;;  %v1679_v12 = vpop.f32.mrf.mxu1 }
 0x132   :  { %v2194_v13 = vadd.f32 %v1679_v12, %v1678_v10  ;;  %v1608_v48 = vadd.f32 %v1607_v11, %v1606_v9 }
 0x133   :  { %v1609_v14 = vpop.f32.mrf.mxu0  ;;  %v1681_v15 = vpop.f32.mrf.mxu1 }
 0x134   :  { %v493_v2 = vadd.f32 %v1608_v48, %v2203_v30 }
 0x135   :  { %v1610_v16 = vpop.f32.mrf.mxu0  ;;  %v1682_v17 = vpop.f32.mrf.mxu1 }
 0x136   :  { %v2196_v18 = vadd.f32 %v1682_v17, %v1681_v15  ;;  %v1611_v4 = vadd.f32 %v1610_v16, %v1609_v14  ;;  %v768_v15 = vld [vmem:[#allocation2 + $0x20] sm:$0xff] }
 0x137   :  { %v1612_v19 = vpop.f32.mrf.mxu0  ;;  %v1684_v20 = vpop.f32.mrf.mxu1 }
 0x139   :  { %v1613_v21 = vpop.f32.mrf.mxu0  ;;  %v1685_v22 = vpop.f32.mrf.mxu1 }
 0x13a   :  { %v2198_v23 = vadd.f32 %v1685_v22, %v1684_v20  ;;  %v1614_v49 = vadd.f32 %v1613_v21, %v1612_v19  ;;  %v770_v20 = vld [vmem:[#allocation2 + $0x30] sm:$0xff] }
 0x13b   :  { %v1615_v24 = vpop.f32.mrf.mxu0  ;;  %v1687_v25 = vpop.f32.mrf.mxu1 }
 0x13c   :  { %v501_v1 = vadd.f32 %v1614_v49, %v2203_v30 }
 0x13d   :  { %v1616_v28 = vpop.f32.mrf.mxu0  ;;  %v1688_v29 = vpop.f32.mrf.mxu1 }
 0x13e   :  { %v2205_v32 = vadd.f32 %v1688_v29, %v1687_v25  ;;  %v1617_v56 = vadd.f32 %v1616_v28, %v1615_v24  ;;  %v771_v24 = vld [vmem:[#allocation2 + $0x38] sm:$0xff] }
 0x13f   :  { %v1618_v33 = vpop.f32.mrf.mxu0  ;;  %v1780_v34 = vpop.f32.mrf.mxu1 }
 0x140   :  { %v646_v40 = vadd.f32 %v1780_v34, %v485_v35  ;;  %v504_v17 = vadd.f32 %v1617_v56, %v2203_v30  ;;  %v496_v34 = vadd.f32 %v1611_v4, %v2203_v30 }
 0x141   :  { %v1619_v38 = vpop.f32.mrf.mxu0  ;;  %v637_v39 = vpop.f32.mrf.mxu1 }
 0x142   :  { %v638_v41 = vadd.f32 %v637_v39, %v477_v36  ;;  %v798_v57 = vadd.f32 %v766_v44, %v646_v40  ;;  %v1620_v25 = vadd.f32 %v1619_v38, %v1618_v33 }
 0x143   :  { %v1621_v45 = vpop.f32.mrf.mxu0  ;;  %v1781_v46 = vpop.f32.mrf.mxu1 }
 0x144   :  { %v649_v50 = vadd.f32 %v1781_v46, %v488_v43  ;;  %v796_v51 = vadd.f32 %v764_v42, %v638_v41  ;;  %v830_v10 = vmax.f32 %v798_v57, 0.0  ;;  %v769_v41 = vld [vmem:[#allocation2 + $0x28] sm:$0xff]  ;;  %v509_v48 = vadd.f32 %v1620_v25, %v2203_v30 }
 0x145   :  { %v1622_v52 = vpop.f32.mrf.mxu0  ;;  %v640_v54 = vpop.f32.mrf.mxu1 }
 0x146   :  { %v799_v58 = vadd.f32 %v767_v47, %v649_v50  ;;  %v641_v60 = vadd.f32 %v640_v54, %v480_v53  ;;  %v828_v5 = vmax.f32 %v796_v51, 0.0  ;;  %v2221_v36 = vadd.f32 %v830_v10, %v798_v57 }
 0x147   :  { %v1624_v62 = vpop.f32.mrf.mxu0  ;;  %v1784_v63 = vpop.f32.mrf.mxu1  ;;  %v1623_v49 = vadd.f32 %v1622_v52, %v1621_v45 }
 0x148   :  { %v831_v0 = vmax.f32 %v799_v58, 0.0  ;;  %v797_v6 = vadd.f32 %v765_v59, %v641_v60  ;;  %v662_v11 = vadd.f32 %v1784_v63, %v501_v1  ;;  %v2216_v16 = vadd.f32 %v828_v5, %v796_v51  ;;  %v772_v59 = vld [vmem:[#allocation2 + $0x40] sm:$0xff]  ;;  %v774_v63 = vld [vmem:[#allocation2 + $0x50] sm:$0xff] }
 0x149   :  { %v1625_v7 = vpop.f32.mrf.mxu0  ;;  %v653_v9 = vpop.f32.mrf.mxu1  ;;  %v512_v10 = vadd.f32 %v1623_v49, %v2203_v30 }
 0x14a   :  { %v654_v12 = vadd.f32 %v653_v9, %v493_v2  ;;  %v829_v19 = vmax.f32 %v797_v6, 0.0  ;;  %v2214_v26 = vadd.f32 %v831_v0, %v799_v58  ;;  %v1626_v27 = vadd.f32 %v1625_v7, %v1624_v62  ;;  %v775_v2 = vld [vmem:[#allocation2 + $0x58] sm:$0xff] }
 0x14b   :  { %v1627_v21 = vpop.f32.mrf.mxu0  ;;  %v1785_v22 = vpop.f32.mrf.mxu1  ;;  %v802_v37 = vadd.f32 %v770_v20, %v662_v11 }
 0x14c   :  { %v665_v14 = vadd.f32 %v1785_v22, %v504_v17  ;;  %v2218_v28 = vadd.f32 %v829_v19, %v797_v6  ;;  %v800_v29 = vadd.f32 %v768_v15, %v654_v12  ;;  %v893_v44 = vpack.c.bf16 %v2214_v26, %v2221_v36  ;;  %v773_v19 = vld [vmem:[#allocation2 + $0x48] sm:$0xff] }
 0x14d   :  { %v1628_v31 = vpop.f32.mrf.mxu0  ;;  %v656_v35 = vpop.f32.mrf.mxu1  ;;  %v517_v47 = vadd.f32 %v1626_v27, %v2203_v30  ;;  %v834_v56 = vmax.f32 %v802_v37, 0.0 }
 0x14e   :  { %v803_v39 = vadd.f32 %v771_v24, %v665_v14  ;;  %v1629_v40 = vadd.f32 %v1628_v31, %v1627_v21  ;;  %v657_v33 = vadd.f32 %v656_v35, %v496_v34  ;;  %v892_v43 = vpack.c.bf16 %v2218_v28, %v2216_v16 }
 0x14f   :  { %v1630_v38 = vpop.f32.mrf.mxu0  ;;  %v1788_v42 = vpop.f32.mrf.mxu1  ;;  %v832_v50 = vmax.f32 %v800_v29, 0.0  ;;  %v2237_v12 = vadd.f32 %v834_v56, %v802_v37  ;;  %v777_v56 = vld [vmem:[#allocation2 + $0x68] sm:$0xff] }
 0x150   :  { %v835_v46 = vmax.f32 %v803_v39, 0.0  ;;  %v801_v51 = vadd.f32 %v769_v41, %v657_v33  ;;  %1826 = vmatprep.mubr.bf16.mxu1 %v892_v43  ;;  %v678_v57 = vadd.f32 %v1788_v42, %v517_v47  ;;  %v520_v60 = vadd.f32 %v1629_v40, %v2203_v30 }
 0x151   :  { %v1631_v53 = vpop.f32.mrf.mxu0  ;;  %v669_v54 = vpop.f32.mrf.mxu1  ;;  %1827 = vmatmul.mubr.bf16.vlgmr.msra.gmra.mxu1 %v893_v44  ;;  %v2232_v5 = vadd.f32 %v832_v50, %v800_v29 }
 0x152   :  { %v670_v58 = vadd.f32 %v669_v54, %v509_v48  ;;  %v833_v62 = vmax.f32 %v801_v51, 0.0  ;;  %v2230_v4 = vadd.f32 %v835_v46, %v803_v39  ;;  %v1632_v45 = vadd.f32 %v1631_v53, %v1630_v38  ;;  %v776_v39 = vld [vmem:[#allocation2 + $0x60] sm:$0xff] }
 0x153   :  { %v1633_v0 = vpop.f32.mrf.mxu0  ;;  %v1789_v1 = vpop.f32.mrf.mxu1  ;;  %v806_v15 = vadd.f32 %v774_v63, %v678_v57 }
 0x154   :  { %v681_v52 = vadd.f32 %v1789_v1, %v520_v60  ;;  %v2234_v6 = vadd.f32 %v833_v62, %v801_v51  ;;  %v804_v7 = vadd.f32 %v772_v59, %v670_v58  ;;  %v525_v14 = vadd.f32 %v1632_v45, %v2203_v30  ;;  %v778_v51 = vld [vmem:[#allocation2 + $0x70] sm:$0xff] }
 0x155   :  { %v1634_v9 = vpop.f32.mrf.mxu0  ;;  %v672_v11 = vpop.f32.mrf.mxu1  ;;  %v895_v29 = vpack.c.bf16 %v2230_v4, %v2237_v12  ;;  %v838_v40 = vmax.f32 %v806_v15, 0.0 }
 0x156   :  { %v807_v17 = vadd.f32 %v775_v2, %v681_v52  ;;  %v673_v20 = vadd.f32 %v672_v11, %v512_v10  ;;  %v894_v24 = vpack.c.bf16 %v2234_v6, %v2232_v5  ;;  %v1635_v27 = vadd.f32 %v1634_v9, %v1633_v0  ;;  %v779_v9 = vld [vmem:[#allocation2 + $0x78] sm:$0xff] }
 0x157   :  { %v1636_v21 = vpop.f32.mrf.mxu0  ;;  %v1792_v22 = vpop.f32.mrf.mxu1  ;;  %v836_v31 = vmax.f32 %v804_v7, 0.0  ;;  %v2252_v57 = vadd.f32 %v838_v40, %v806_v15 }
 0x158   :  { %v839_v25 = vmax.f32 %v807_v17, 0.0  ;;  %v805_v34 = vadd.f32 %v773_v19, %v673_v20  ;;  %1830 = vmatprep.mubr.bf16.mxu1 %v894_v24  ;;  %v528_v48 = vadd.f32 %v1635_v27, %v2203_v30 }
 0x159   :  { %v1637_v35 = vpop.f32.mrf.mxu0  ;;  %v685_v37 = vpop.f32.mrf.mxu1  ;;  %1831 = vmatmul.mubr.bf16.gmra.mxu1 %v895_v29  ;;  %v2248_v49 = vadd.f32 %v836_v31, %v804_v7 }
 0x15a   :  { %v1638_v41 = vadd.f32 %v1637_v35, %v1636_v21  ;;  %v686_v33 = vadd.f32 %v685_v37, %v525_v14  ;;  %v837_v38 = vmax.f32 %v805_v34, 0.0  ;;  %v2244_v44 = vadd.f32 %v839_v25, %v807_v17  ;;  %v780_v35 = vld [vmem:[#allocation2 + $0x80] sm:$0xff] }
 0x15b   :  { %v1639_v42 = vpop.f32.mrf.mxu0  ;;  %v1793_v43 = vpop.f32.mrf.mxu1 }
 0x15c   :  { %v533_v46 = vadd.f32 %v1638_v41, %v2203_v30  ;;  %v808_v47 = vadd.f32 %v776_v39, %v686_v33  ;;  %v2250_v50 = vadd.f32 %v837_v38, %v805_v34  ;;  %v897_v7 = vpack.c.bf16 %v2244_v44, %v2252_v57 }
 0x15d   :  { %v1640_v53 = vpop.f32.mrf.mxu0  ;;  %v688_v54 = vpop.f32.mrf.mxu1 }
 0x15e   :  { %v694_v58 = vadd.f32 %v1792_v22, %v533_v46  ;;  %v1641_v59 = vadd.f32 %v1640_v53, %v1639_v42  ;;  %v689_v60 = vadd.f32 %v688_v54, %v528_v48  ;;  %v840_v62 = vmax.f32 %v808_v47, 0.0 }
 0x15f   :  { %v1642_v63 = vpop.f32.mrf.mxu0  ;;  %v1796_v0 = vpop.f32.mrf.mxu1  ;;  %v896_v1 = vpack.c.bf16 %v2250_v50, %v2248_v49 }
 0x160   :  { %v810_v2 = vadd.f32 %v778_v51, %v694_v58  ;;  %v536_v45 = vadd.f32 %v1641_v59, %v2203_v30  ;;  %v809_v52 = vadd.f32 %v777_v56, %v689_v60  ;;  %v2259_v20 = vadd.f32 %v840_v62, %v808_v47  ;;  %v781_v47 = vld [vmem:[#allocation2 + $0x88] sm:$0xff] }
 0x161   :  { %1834 = vmatprep.mubr.bf16.mxu1 %v896_v1  ;;  %v1643_v10 = vpop.f32.mrf.mxu0  ;;  %v701_v11 = vpop.f32.mrf.mxu1 }
 0x162   :  { %v697_v15 = vadd.f32 %v1793_v43, %v536_v45  ;;  %v841_v17 = vmax.f32 %v809_v52, 0.0  ;;  %v1644_v19 = vadd.f32 %v1643_v10, %v1642_v63  ;;  %1835 = vmatmul.mubr.bf16.gmra.mxu1 %v897_v7  ;;  %v842_v14 = vmax.f32 %v810_v2, 0.0  ;;  %v782_v7 = vld [vmem:[#allocation2 + $0x90] sm:$0xff] }
 0x163   :  { %v1645_v21 = vpop.f32.mrf.mxu0  ;;  %v1797_v22 = vpop.f32.mrf.mxu1 }
 0x164   :  { %v811_v24 = vadd.f32 %v779_v9, %v697_v15  ;;  %v2261_v25 = vadd.f32 %v841_v17, %v809_v52  ;;  %v541_v27 = vadd.f32 %v1644_v19, %v2203_v30  ;;  %v2269_v42 = vadd.f32 %v842_v14, %v810_v2 }
 0x165   :  { %v1646_v29 = vpop.f32.mrf.mxu0  ;;  %v704_v31 = vpop.f32.mrf.mxu1 }
 0x166   :  { %v702_v34 = vadd.f32 %v701_v11, %v541_v27  ;;  %v1647_v37 = vadd.f32 %v1646_v29, %v1645_v21  ;;  %v898_v39 = vpack.c.bf16 %v2261_v25, %v2259_v20  ;;  %v843_v40 = vmax.f32 %v811_v24, 0.0 }
 0x167   :  { %v1648_v41 = vpop.f32.mrf.mxu0  ;;  %v2266_v33 = vpop.f32.mrf.mxu1 }
 0x168   :  { %v544_v38 = vadd.f32 %v1647_v37, %v2203_v30  ;;  %1838 = vmatprep.mubr.bf16.mxu1 %v898_v39  ;;  %v2271_v43 = vadd.f32 %v843_v40, %v811_v24  ;;  %v812_v46 = vadd.f32 %v780_v35, %v702_v34  ;;  %v783_v24 = vld [vmem:[#allocation2 + $0x98] sm:$0xff] }
 0x169   :  { %v1649_v48 = vpop.f32.mrf.mxu0  ;;  %v717_v51 = vpop.f32.mrf.mxu1 }
 0x16a   :  { %v705_v53 = vadd.f32 %v704_v31, %v544_v38  ;;  %v1650_v54 = vadd.f32 %v1649_v48, %v1648_v41  ;;  %v899_v56 = vpack.c.bf16 %v2271_v43, %v2269_v42  ;;  %v844_v63 = vmax.f32 %v812_v46, 0.0 }
 0x16b   :  { %v1651_v58 = vpop.f32.mrf.mxu0  ;;  %v2275_v59 = vpop.f32.mrf.mxu1 }
 0x16c   :  { %v813_v60 = vadd.f32 %v781_v47, %v705_v53  ;;  %v549_v62 = vadd.f32 %v1650_v54, %v2203_v30  ;;  %1839 = vmatmul.mubr.bf16.gmra.mxu1 %v899_v56  ;;  %v2283_v19 = vadd.f32 %v844_v63, %v812_v46  ;;  %v784_v47 = vld [vmem:[#allocation2 + $0xa0] sm:$0xff] }
 0x16d   :  { %v1652_v1 = vpop.f32.mrf.mxu0  ;;  %v720_v2 = vpop.f32.mrf.mxu1 }
 0x16e   :  { %v845_v45 = vmax.f32 %v813_v60, 0.0  ;;  %v710_v52 = vadd.f32 %v1796_v0, %v549_v62  ;;  %v1653_v9 = vadd.f32 %v1652_v1, %v1651_v58  ;;  %v576_v62 = vadd.f32 %v2188_v61, %v2203_v30 }
 0x16f   :  { %v1654_v10 = vpop.f32.mrf.mxu0  ;;  %v2278_v11 = vpop.f32.mrf.mxu1 }
 0x170   :  { %v2280_v15 = vadd.f32 %v845_v45, %v813_v60  ;;  %v552_v17 = vadd.f32 %v1653_v9, %v2203_v30  ;;  %v814_v21 = vadd.f32 %v782_v7, %v710_v52  ;;  %v785_v60 = vld [vmem:[#allocation2 + $0xa8] sm:$0xff]  ;;  %v573_v9 = vadd.f32 %v2186_v55, %v2203_v30 }
 0x171   :  { %v1655_v27 = vpop.f32.mrf.mxu0  ;;  %v733_v14 = vpop.f32.mrf.mxu1 }
 0x172   :  { %v713_v29 = vadd.f32 %v1797_v22, %v552_v17  ;;  %v1656_v31 = vadd.f32 %v1655_v27, %v1654_v10  ;;  %v900_v0 = vpack.c.bf16 %v2280_v15, %v2283_v19  ;;  %v846_v38 = vmax.f32 %v814_v21, 0.0 }
 0x173   :  { %v1657_v34 = vpop.f32.mrf.mxu0  ;;  %v1805_v35 = vpop.f32.mrf.mxu1 }
 0x174   :  { %v815_v37 = vadd.f32 %v783_v24, %v713_v29  ;;  %v557_v39 = vadd.f32 %v1656_v31, %v2203_v30  ;;  %1842 = vmatprep.mubr.bf16.mxu1 %v900_v0  ;;  %v2293_v45 = vadd.f32 %v846_v38, %v814_v21  ;;  %v789_v29 = vld [vmem:[#allocation2 + $0xc8] sm:$0xff]  ;;  %v786_v21 = vld [vmem:[#allocation2 + $0xb0] sm:$0xff]  ;;  %v584_v38 = vadd.f32 %v2192_v8, %v2203_v30  ;;  %v791_v8 = vld [vmem:[#allocation2 + $0xd8] sm:$0xff] }
 0x175   :  { %v1658_v40 = vpop.f32.mrf.mxu0  ;;  %v736_v41 = vpop.f32.mrf.mxu1 }
 0x176   :  { %v718_v46 = vadd.f32 %v717_v51, %v557_v39  ;;  %v1659_v48 = vadd.f32 %v1658_v40, %v1657_v34  ;;  %v847_v22 = vmax.f32 %v815_v37, 0.0  ;;  %v737_v10 = vadd.f32 %v736_v41, %v576_v62 }
 0x177   :  { %v1660_v53 = vpop.f32.mrf.mxu0  ;;  %v2288_v54 = vpop.f32.mrf.mxu1  ;;  %v734_v34 = vadd.f32 %v733_v14, %v573_v9  ;;  %v592_v14 = vadd.f32 %v2196_v18, %v2203_v30  ;;  %v745_v62 = vadd.f32 %v1805_v35, %v584_v38  ;;  %v795_v38 = vld [vmem:[#allocation2 + $0xf8] sm:$0xff] }
 0x178   :  { %v560_v56 = vadd.f32 %v1659_v48, %v2203_v30  ;;  %v816_v58 = vadd.f32 %v784_v47, %v718_v46  ;;  %v2295_v52 = vadd.f32 %v847_v22, %v815_v37  ;;  %v821_v55 = vadd.f32 %v789_v29, %v737_v10  ;;  %v787_v22 = vld [vmem:[#allocation2 + $0xb8] sm:$0xff] }
 0x179   :  { %v1661_v63 = vpop.f32.mrf.mxu0  ;;  %v749_v1 = vpop.f32.mrf.mxu1  ;;  %v823_v35 = vadd.f32 %v791_v8, %v745_v62 }
 0x17a   :  { %v721_v51 = vadd.f32 %v720_v2, %v560_v56  ;;  %v1662_v7 = vadd.f32 %v1661_v63, %v1660_v53  ;;  %v901_v24 = vpack.c.bf16 %v2295_v52, %v2293_v45  ;;  %v848_v37 = vmax.f32 %v816_v58, 0.0  ;;  %v788_v2 = vld [vmem:[#allocation2 + $0xc0] sm:$0xff] }
 0x17b   :  { %v1663_v17 = vpop.f32.mrf.mxu0  ;;  %v1809_v31 = vpop.f32.mrf.mxu1  ;;  %v820_v53 = vadd.f32 %v788_v2, %v734_v34 }
 0x17c   :  { %v817_v27 = vadd.f32 %v785_v60, %v721_v51  ;;  %v565_v61 = vadd.f32 %v1662_v7, %v2203_v30  ;;  %1843 = vmatmul.mubr.bf16.gmra.mxu1 %v901_v24  ;;  %v2308_v56 = vadd.f32 %v848_v37, %v816_v58  ;;  %v853_v51 = vmax.f32 %v821_v55, 0.0 }
 0x17d   :  { %v1664_v0 = vpop.f32.mrf.mxu0  ;;  %v752_v48 = vpop.f32.mrf.mxu1  ;;  %v589_v7 = vadd.f32 %v2194_v13, %v2203_v30  ;;  %v852_v29 = vmax.f32 %v820_v53, 0.0 }
 0x17e   :  { %v726_v39 = vadd.f32 %v2266_v33, %v565_v61  ;;  %v1665_v40 = vadd.f32 %v1664_v0, %v1663_v17  ;;  %v849_v41 = vmax.f32 %v817_v27, 0.0  ;;  %v581_v33 = vadd.f32 %v2190_v3, %v2203_v30  ;;  %v793_v17 = vld [vmem:[#allocation2 + $0xe8] sm:$0xff] }
 0x17f   :  { %v753_v9 = vadd.f32 %v752_v48, %v592_v14  ;;  %v750_v3 = vadd.f32 %v749_v1, %v589_v7  ;;  %v2320_v34 = vadd.f32 %v853_v51, %v821_v55  ;;  %v600_v0 = vadd.f32 %v2205_v32, %v2203_v30 }
 0x180   :  { %v818_v46 = vadd.f32 %v786_v21, %v726_v39  ;;  %v568_v47 = vadd.f32 %v1665_v40, %v2203_v30  ;;  %v2310_v60 = vadd.f32 %v849_v41, %v817_v27  ;;  %v742_v18 = vadd.f32 %v2278_v11, %v581_v33  ;;  %v790_v27 = vld [vmem:[#allocation2 + $0xd0] sm:$0xff] }
 0x181   :  { %v825_v21 = vadd.f32 %v793_v17, %v753_v9  ;;  %v2328_v2 = vadd.f32 %v852_v29, %v820_v53  ;;  %v855_v40 = vmax.f32 %v823_v35, 0.0  ;;  %v597_v1 = vadd.f32 %v2198_v23, %v2203_v30  ;;  %v794_v53 = vld [vmem:[#allocation2 + $0xf0] sm:$0xff]  ;;  %v1973_v17 = vld [vmem:[#allocation10] sm:$0xff]  }
 0x182   :  { %v729_v63 = vadd.f32 %v2275_v59, %v568_v47  ;;  %v902_v10 = vpack.c.bf16 %v2310_v60, %v2308_v56  ;;  %v850_v24 = vmax.f32 %v818_v46, 0.0  ;;  %v792_v59 = vld [vmem:[#allocation2 + $0xe0] sm:$0xff]  ;;  %v822_v13 = vadd.f32 %v790_v27, %v742_v18  ;;  %v1971_v9 = vld [vmem:[#allocation10 + $0x10] sm:$0xff]  }
 0x183   :  { %v824_v39 = vadd.f32 %v792_v59, %v750_v3  ;;  %v761_v41 = vadd.f32 %v1809_v31, %v600_v0  ;;  %v857_v47 = vmax.f32 %v825_v21, 0.0  ;;  %v904_v32 = vpack.c.bf16 %v2320_v34, %v2328_v2  ;;  %1868 = vmatprep.subr.bf16.mxu0 %v1971_v9 }
 0x184   :  { %v819_v58 = vadd.f32 %v787_v22, %v729_v63  ;;  %1846 = vmatprep.mubr.bf16.mxu1 %v902_v10  ;;  %v2324_v37 = vadd.f32 %v850_v24, %v818_v46  ;;  %v854_v46 = vmax.f32 %v822_v13, 0.0  ;;  %v758_v48 = vadd.f32 %v2288_v54, %v597_v1  ;;  %1869 = vmatpush3.bf16.msra.mxu0 %v1971_v9  ;;  %v2358_v24 = vld [vmem:[%s2472_s5] ss:$0 sm:$0xff] }
 0x185   :  { %v856_v22 = vmax.f32 %v824_v39, 0.0  ;;  %v2337_v14 = vadd.f32 %v855_v40, %v823_v35  ;;  %v827_v33 = vadd.f32 %v795_v38, %v761_v41  ;;  %v2339_v23 = vadd.f32 %v857_v47, %v825_v21 }
 0x186   :  { %v851_v61 = vmax.f32 %v819_v58, 0.0  ;;  %v2341_v30 = vadd.f32 %v854_v46, %v822_v13  ;;  %v826_v31 = vadd.f32 %v794_v53, %v758_v48 }
 0x187   :  { %v2343_v62 = vadd.f32 %v856_v22, %v824_v39  ;;  %v859_v63 = vmax.f32 %v827_v33, 0.0 }
 0x188   :  { %v2326_v11 = vadd.f32 %v851_v61, %v819_v58  ;;  %v905_v8 = vpack.c.bf16 %v2337_v14, %v2341_v30  ;;  %v858_v51 = vmax.f32 %v826_v31, 0.0  ;;  %v1972_v58 = vld [vmem:[#allocation10 + $0x8] sm:$0xff]  }
 0x189   :  { %v906_v54 = vpack.c.bf16 %v2339_v23, %v2343_v62  ;;  %v2349_v7 = vadd.f32 %v859_v63, %v827_v33  ;;  %1870 = vmatprep.subr.bf16.mxu0 %v1972_v58 }
 0x18a   :  { %v903_v55 = vpack.c.bf16 %v2326_v11, %v2324_v37  ;;  %v2351_v10 = vadd.f32 %v858_v51, %v826_v31  ;;  %1871 = vmatpush3.bf16.msra.mxu0 %v1972_v58 }
 0x18b   :  { %1872 = vmatprep.subr.bf16.mxu0 %v1973_v17 }
 0x18c   :  { %1847 = vmatmul.mubr.bf16.gmra.mxu1 %v903_v55  ;;  %v907_v18 = vpack.c.bf16 %v2349_v7, %v2351_v10 }
 0x18d   :  { %1850 = vmatprep.mubr.bf16.mxu1 %v904_v32 }
 0x18e   :  { %1873 = vmatpush3.bf16.msra.mxu0 %v1973_v17 }
 0x194   :  { %1851 = vmatmul.mubr.bf16.gmra.mxu1 %v905_v8 }
 0x195   :  { %1854 = vmatprep.mubr.bf16.mxu1 %v906_v54 }
 0x19c   :  { %1855 = vmatmul.mubr.bf16.gmra.mxu1 %v907_v18 }
 0x211   :  { %v1828_v27 = vpop.f32.mrf.mxu1 }
 0x212   :  { %v1022_v29 = vadd.f32 %v1828_v27, %v2358_v24 }
 0x213   :  { %v1013_v3 = vpop.f32.mrf.mxu1 }
 0x214   :  { %v1014_v35 = vadd.f32 %v2358_v24, %v1013_v3  ;;  %v1142_v13 = vadd.f32 %v1022_v29, %v2221_v36 }
 0x215   :  { %v1829_v59 = vpop.f32.mrf.mxu1 }
 0x216   :  { %v1140_v61 = vadd.f32 %v1014_v35, %v2216_v16  ;;  %v1025_v21 = vadd.f32 %v1829_v59, %v2358_v24  ;;  %v1174_v47 = vmax.f32 %v1142_v13, 0.0 }
 0x217   :  { %v1016_v0 = vpop.f32.mrf.mxu1 }
 0x218   :  { %v1143_v39 = vadd.f32 %v1025_v21, %v2214_v26  ;;  %v1017_v40 = vadd.f32 %v2358_v24, %v1016_v0  ;;  %v1172_v41 = vmax.f32 %v1140_v61, 0.0  ;;  %v1206_v31 = vadd.f32 %v1174_v47, %v1142_v13 }
 0x219   :  { %v1832_v1 = vpop.f32.mrf.mxu1 }
 0x21a   :  { %v1175_v55 = vmax.f32 %v1143_v39, 0.0  ;;  %v1141_v38 = vadd.f32 %v1017_v40, %v2218_v28  ;;  %v1038_v48 = vadd.f32 %v1832_v1, %v2358_v24  ;;  %v1204_v36 = vadd.f32 %v1172_v41, %v1140_v61 }
 0x21b   :  { %v1029_v32 = vpop.f32.mrf.mxu1 }
 0x21c   :  { %v1173_v46 = vmax.f32 %v1141_v38, 0.0  ;;  %v1030_v16 = vadd.f32 %v2358_v24, %v1029_v32  ;;  %v1207_v53 = vadd.f32 %v1175_v55, %v1143_v39  ;;  %v1146_v54 = vadd.f32 %v1038_v48, %v2237_v12 }
 0x21d   :  { %v1833_v22 = vpop.f32.mrf.mxu1 }
 0x21e   :  { %v1205_v33 = vadd.f32 %v1173_v46, %v1141_v38  ;;  %v1144_v26 = vadd.f32 %v1030_v16, %v2232_v5  ;;  %v1041_v63 = vadd.f32 %v1833_v22, %v2358_v24  ;;  %v1237_v9 = vpack.c.bf16 %v1207_v53, %v1206_v31 }
 0x21f   :  { %v1032_v8 = vpop.f32.mrf.mxu1  ;;  %v1178_v5 = vmax.f32 %v1146_v54, 0.0 }
 0x220   :  { %v1033_v28 = vadd.f32 %v2358_v24, %v1032_v8  ;;  %v1236_v51 = vpack.c.bf16 %v1205_v33, %v1204_v36  ;;  %v1147_v18 = vadd.f32 %v1041_v63, %v2230_v4  ;;  %v1176_v27 = vmax.f32 %v1144_v26, 0.0 }
 0x221   :  { %v1210_v40 = vadd.f32 %v1178_v5, %v1146_v54 }
 0x222   :  { %v1836_v58 = vpop.f32.mrf.mxu1  ;;  %v1145_v17 = vadd.f32 %v1033_v28, %v2234_v6  ;;  %1874 = vmatprep.mubr.bf16.mxu0 %v1236_v51  ;;  %v1179_v29 = vmax.f32 %v1147_v18, 0.0  ;;  %v1208_v39 = vadd.f32 %v1176_v27, %v1144_v26 }
 0x223   :  { %1875 = vmatmul.mubr.bf16.vlgmr.msra.gmra.mxu0 %v1237_v9  ;;  %v1054_v59 = vadd.f32 %v1836_v58, %v2358_v24 }
 0x224   :  { %v1045_v3 = vpop.f32.mrf.mxu1  ;;  %v1177_v35 = vmax.f32 %v1145_v17, 0.0  ;;  %v1211_v21 = vadd.f32 %v1179_v29, %v1147_v18 }
 0x225   :  { %v1046_v12 = vadd.f32 %v2358_v24, %v1045_v3  ;;  %v1150_v1 = vadd.f32 %v1054_v59, %v2252_v57 }
 0x226   :  { %v1837_v61 = vpop.f32.mrf.mxu1  ;;  %v1209_v13 = vadd.f32 %v1177_v35, %v1145_v17  ;;  %v1239_v48 = vpack.c.bf16 %v1211_v21, %v1210_v40 }
 0x227   :  { %v1148_v0 = vadd.f32 %v1046_v12, %v2248_v49  ;;  %v1057_v4 = vadd.f32 %v1837_v61, %v2358_v24  ;;  %v1182_v49 = vmax.f32 %v1150_v1, 0.0 }
 0x228   :  { %v1048_v6 = vpop.f32.mrf.mxu1  ;;  %v1238_v38 = vpack.c.bf16 %v1209_v13, %v1208_v39 }
 0x229   :  { %v1151_v41 = vadd.f32 %v1057_v4, %v2244_v44  ;;  %v1049_v55 = vadd.f32 %v2358_v24, %v1048_v6  ;;  %v1180_v47 = vmax.f32 %v1148_v0, 0.0  ;;  %v1214_v63 = vadd.f32 %v1182_v49, %v1150_v1 }
 0x22a   :  { %1878 = vmatprep.mubr.bf16.mxu0 %v1238_v38 }
 0x22b   :  { %v1183_v32 = vmax.f32 %v1151_v41, 0.0  ;;  %v1149_v46 = vadd.f32 %v1049_v55, %v2250_v50  ;;  %1879 = vmatmul.mubr.bf16.gmra.mxu0 %v1239_v48  ;;  %v1212_v33 = vadd.f32 %v1180_v47, %v1148_v0 }
 0x22c   :  { %v1840_v16 = vpop.f32.mrf.mxu1 }
 0x22d   :  { %v1181_v53 = vmax.f32 %v1149_v46, 0.0  ;;  %v1070_v22 = vadd.f32 %v1840_v16, %v2358_v24  ;;  %v1215_v57 = vadd.f32 %v1183_v32, %v1151_v41 }
 0x22e   :  { %v1061_v36 = vpop.f32.mrf.mxu1 }
 0x22f   :  { %v1213_v31 = vadd.f32 %v1181_v53, %v1149_v46  ;;  %v1062_v44 = vadd.f32 %v2358_v24, %v1061_v36  ;;  %v1154_v28 = vadd.f32 %v1070_v22, %v2269_v42  ;;  %v1241_v58 = vpack.c.bf16 %v1215_v57, %v1214_v63 }
 0x230   :  { %v1841_v26 = vpop.f32.mrf.mxu1 }
 0x231   :  { %v1152_v8 = vadd.f32 %v1062_v44, %v2259_v20  ;;  %v1073_v50 = vadd.f32 %v1841_v26, %v2358_v24  ;;  %v1240_v54 = vpack.c.bf16 %v1213_v31, %v1212_v33  ;;  %v1186_v3 = vmax.f32 %v1154_v28, 0.0 }
 0x232   :  { %v1064_v51 = vpop.f32.mrf.mxu1 }
 0x233   :  { %v1155_v9 = vadd.f32 %v1073_v50, %v2271_v43  ;;  %v1065_v18 = vadd.f32 %v2358_v24, %v1064_v51  ;;  %1882 = vmatprep.mubr.bf16.mxu0 %v1240_v54  ;;  %v1184_v17 = vmax.f32 %v1152_v8, 0.0  ;;  %v1218_v12 = vadd.f32 %v1186_v3, %v1154_v28 }
 0x234   :  { %1883 = vmatmul.mubr.bf16.gmra.mxu0 %v1241_v58 }
 0x235   :  { %v1187_v27 = vmax.f32 %v1155_v9, 0.0  ;;  %v1153_v29 = vadd.f32 %v1065_v18, %v2261_v25  ;;  %v1216_v35 = vadd.f32 %v1184_v17, %v1152_v8 }
 0x237   :  { %v1185_v5 = vmax.f32 %v1153_v29, 0.0  ;;  %v1219_v20 = vadd.f32 %v1187_v27, %v1155_v9 }
 0x239   :  { %v1217_v59 = vadd.f32 %v1185_v5, %v1153_v29  ;;  %v1243_v42 = vpack.c.bf16 %v1219_v20, %v1218_v12 }
 0x23b   :  { %v1242_v61 = vpack.c.bf16 %v1217_v59, %v1216_v35 }
 0x23c   :  { %v1844_v21 = vpop.f32.mrf.mxu1 }
 0x23d   :  { %1886 = vmatprep.mubr.bf16.mxu0 %v1242_v61  ;;  %v1086_v43 = vadd.f32 %v1844_v21, %v2358_v24 }
 0x23e   :  { %1887 = vmatmul.mubr.bf16.gmra.mxu0 %v1243_v42  ;;  %v1077_v13 = vpop.f32.mrf.mxu1 }
 0x23f   :  { %v1078_v0 = vadd.f32 %v2358_v24, %v1077_v13  ;;  %v1158_v6 = vadd.f32 %v1086_v43, %v2293_v45 }
 0x240   :  { %v1845_v4 = vpop.f32.mrf.mxu1 }
 0x241   :  { %v1156_v25 = vadd.f32 %v1078_v0, %v2283_v19  ;;  %v1089_v39 = vadd.f32 %v1845_v4, %v2358_v24  ;;  %v1190_v32 = vmax.f32 %v1158_v6, 0.0 }
 0x242   :  { %v1080_v40 = vpop.f32.mrf.mxu1 }
 0x243   :  { %v1159_v1 = vadd.f32 %v1089_v39, %v2295_v52  ;;  %v1081_v41 = vadd.f32 %v2358_v24, %v1080_v40  ;;  %v1188_v55 = vmax.f32 %v1156_v25, 0.0  ;;  %v1222_v53 = vadd.f32 %v1190_v32, %v1158_v6 }
 0x245   :  { %v1191_v38 = vmax.f32 %v1159_v1, 0.0  ;;  %v1157_v47 = vadd.f32 %v1081_v41, %v2280_v15  ;;  %v1220_v16 = vadd.f32 %v1188_v55, %v1156_v25 }
 0x247   :  { %v1189_v46 = vmax.f32 %v1157_v47, 0.0  ;;  %v1223_v48 = vadd.f32 %v1191_v38, %v1159_v1 }
 0x249   :  { %v1221_v49 = vadd.f32 %v1189_v46, %v1157_v47  ;;  %v1245_v36 = vpack.c.bf16 %v1223_v48, %v1222_v53 }
 0x24b   :  { %v1244_v22 = vpack.c.bf16 %v1221_v49, %v1220_v16 }
 0x24c   :  { %v1848_v19 = vpop.f32.mrf.mxu1 }
 0x24d   :  { %1890 = vmatprep.mubr.bf16.mxu0 %v1244_v22  ;;  %v1102_v33 = vadd.f32 %v1848_v19, %v2358_v24 }
 0x24e   :  { %v1093_v45 = vpop.f32.mrf.mxu1  ;;  %1891 = vmatmul.mubr.bf16.gmra.mxu0 %v1245_v36 }
 0x24f   :  { %v1094_v52 = vadd.f32 %v2358_v24, %v1093_v45  ;;  %v1162_v26 = vadd.f32 %v1102_v33, %v2324_v37 }
 0x250   :  { %v1849_v57 = vpop.f32.mrf.mxu1 }
 0x251   :  { %v1105_v31 = vadd.f32 %v1849_v57, %v2358_v24  ;;  %v1160_v15 = vadd.f32 %v1094_v52, %v2308_v56  ;;  %v1194_v18 = vmax.f32 %v1162_v26, 0.0 }
 0x252   :  { %v1096_v44 = vpop.f32.mrf.mxu1 }
 0x253   :  { %v1163_v63 = vadd.f32 %v1105_v31, %v2326_v11  ;;  %v1097_v8 = vadd.f32 %v2358_v24, %v1096_v44  ;;  %v1192_v51 = vmax.f32 %v1160_v15, 0.0  ;;  %v1226_v35 = vadd.f32 %v1194_v18, %v1162_v26 }
 0x254   :  { %v1852_v50 = vpop.f32.mrf.mxu1 }
 0x255   :  { %v1195_v54 = vmax.f32 %v1163_v63, 0.0  ;;  %v1161_v28 = vadd.f32 %v1097_v8, %v2310_v60  ;;  %v1118_v17 = vadd.f32 %v1852_v50, %v2358_v24  ;;  %v1224_v11 = vadd.f32 %v1192_v51, %v1160_v15 }
 0x256   :  { %v1109_v9 = vpop.f32.mrf.mxu1 }
 0x257   :  { %v1193_v58 = vmax.f32 %v1161_v28, 0.0  ;;  %v1110_v27 = vadd.f32 %v2358_v24, %v1109_v9  ;;  %v1227_v29 = vadd.f32 %v1195_v54, %v1163_v63  ;;  %v1166_v60 = vadd.f32 %v1118_v17, %v2341_v30 }
 0x258   :  { %v1853_v56 = vpop.f32.mrf.mxu1 }
 0x259   :  { %v1225_v3 = vadd.f32 %v1193_v58, %v1161_v28  ;;  %v1121_v37 = vadd.f32 %v1853_v56, %v2358_v24  ;;  %v1164_v5 = vadd.f32 %v1110_v27, %v2328_v2  ;;  %v1247_v13 = vpack.c.bf16 %v1227_v29, %v1226_v35 }
 0x25a   :  { %v1112_v20 = vpop.f32.mrf.mxu1  ;;  %v1198_v25 = vmax.f32 %v1166_v60, 0.0 }
 0x25b   :  { %v1167_v59 = vadd.f32 %v1121_v37, %v2337_v14  ;;  %v1113_v12 = vadd.f32 %v2358_v24, %v1112_v20  ;;  %v1246_v42 = vpack.c.bf16 %v1225_v3, %v1224_v11  ;;  %v1196_v0 = vmax.f32 %v1164_v5, 0.0 }
 0x25c   :  { %v1856_v61 = vpop.f32.mrf.mxu1  ;;  %v1230_v38 = vadd.f32 %v1198_v25, %v1166_v60 }
 0x25d   :  { %v1199_v21 = vmax.f32 %v1167_v59, 0.0  ;;  %v1165_v43 = vadd.f32 %v1113_v12, %v2320_v34  ;;  %1894 = vmatprep.mubr.bf16.mxu0 %v1246_v42  ;;  %v1134_v2 = vadd.f32 %v1856_v61, %v2358_v24  ;;  %v1228_v55 = vadd.f32 %v1196_v0, %v1164_v5 }
 0x25e   :  { %v1125_v4 = vpop.f32.mrf.mxu1  ;;  %1895 = vmatmul.mubr.bf16.gmra.mxu0 %v1247_v13 }
 0x25f   :  { %v1197_v39 = vmax.f32 %v1165_v43, 0.0  ;;  %v1126_v6 = vadd.f32 %v2358_v24, %v1125_v4  ;;  %v1231_v14 = vadd.f32 %v1199_v21, %v1167_v59  ;;  %v1170_v47 = vadd.f32 %v1134_v2, %v2351_v10 }
 0x260   :  { %v1857_v30 = vpop.f32.mrf.mxu1 }
 0x261   :  { %v1229_v40 = vadd.f32 %v1197_v39, %v1165_v43  ;;  %v1168_v1 = vadd.f32 %v1126_v6, %v2343_v62  ;;  %v1137_v41 = vadd.f32 %v1857_v30, %v2358_v24  ;;  %v1249_v19 = vpack.c.bf16 %v1231_v14, %v1230_v38 }
 0x262   :  { %v1128_v34 = vpop.f32.mrf.mxu1  ;;  %v1202_v22 = vmax.f32 %v1170_v47, 0.0 }
 0x263   :  { %v1171_v32 = vadd.f32 %v1137_v41, %v2349_v7  ;;  %v1129_v46 = vadd.f32 %v2358_v24, %v1128_v34  ;;  %v1248_v48 = vpack.c.bf16 %v1229_v40, %v1228_v55  ;;  %v1200_v16 = vmax.f32 %v1168_v1, 0.0  ;;  %v2427_v7 = vld [vmem:[%s2474_s7] ss:$0 sm:$0xff]  ;;  %s2113_s7 = smov [#allocation11]  }
 0x264   :  { %v1234_v52 = vadd.f32 %v1202_v22, %v1170_v47  ;;  %s1521_s13 = sshll.u32 %s2113_s7, 4  ;;  %s1522_s13 = int_to_ptr.vmem [resolvable:$true] %s1521_s13 }
 0x265   :  { %v1203_v49 = vmax.f32 %v1171_v32, 0.0  ;;  %v1169_v53 = vadd.f32 %v1129_v46, %v2339_v23  ;;  %1898 = vmatprep.mubr.bf16.mxu0 %v1248_v48  ;;  %v1232_v36 = vadd.f32 %v1200_v16, %v1168_v1  ;;  %s2074_s14 = scalar_lea.vmem %s1522_s13, 4096  ;;  %p2079_p12 = scmp.lt.s32.totalorder %s1522_s13, %s1522_s13 }
 0x266   :  { %1899 = vmatmul.mubr.bf16.gmra.mxu0 %v1249_v19  ;;  %p2075_p11 = scmp.ne.s32.totalorder %s1522_s13, %s2074_s14  ;;  %p2080_p13 = scmp.lt.s32.totalorder %s2074_s14, %s2074_s14 }
 0x267   :  { %v1201_v62 = vmax.f32 %v1169_v53, 0.0  ;;  %v1235_v45 = vadd.f32 %v1203_v49, %v1171_v32 }
 0x268   :  { %p2081_p0 = por %p2080_p13, %p2079_p12 }
 0x269   :  { %v1233_v33 = vadd.f32 %v1201_v62, %v1169_v53  ;;  %v1251_v10 = vpack.c.bf16 %v1235_v45, %v1234_v52 }
 0x26a   :  { %p2082_p1 = pnand %p2081_p0, %p2075_p11 }
 0x26b   :  { %v1250_v57 = vpack.c.bf16 %v1233_v33, %v1232_v36 }
 0x26d   :  { %1902 = vmatprep.mubr.bf16.mxu0 %v1250_v57 }
 0x26e   :  { %1903 = vmatmul.mubr.bf16.gmra.mxu0 %v1251_v10 }
 0x2e3   :  { %v1876_v24 = vpop.f32.mrf.mxu0 }
 0x2e4   :  { %v1366_v23 = vadd.f32 %v1876_v24, %v2427_v7 }
 0x2e5   :  { %v1357_v31 = vpop.f32.mrf.mxu0 }
 0x2e6   :  { %1486 = vst [vmem:[#allocation11 + $0x10] sm:$0xff] %v1366_v23  ;;  %v1358_v15 = vadd.f32 %v2427_v7, %v1357_v31 }
 0x2e7   :  { %v1877_v44 = vpop.f32.mrf.mxu0 }
 0x2e8   :  { %1484 = vst [vmem:[#allocation11] sm:$0xff] %v1358_v15  ;;  %v1369_v26 = vadd.f32 %v1877_v44, %v2427_v7 }
 0x2e9   :  { %v1360_v63 = vpop.f32.mrf.mxu0 }
 0x2ea   :  { %1487 = vst [vmem:[#allocation11 + $0x18] sm:$0xff] %v1369_v26  ;;  %v1361_v8 = vadd.f32 %v2427_v7, %v1360_v63 }
 0x2eb   :  { %v1880_v50 = vpop.f32.mrf.mxu0 }
 0x2ec   :  { %1485 = vst [vmem:[#allocation11 + $0x8] sm:$0xff] %v1361_v8  ;;  %v1382_v54 = vadd.f32 %v1880_v50, %v2427_v7 }
 0x2ed   :  { %v1373_v28 = vpop.f32.mrf.mxu0 }
 0x2ee   :  { %1490 = vst [vmem:[#allocation11 + $0x30] sm:$0xff] %v1382_v54  ;;  %v1374_v51 = vadd.f32 %v2427_v7, %v1373_v28 }
 0x2ef   :  { %v1881_v9 = vpop.f32.mrf.mxu0 }
 0x2f0   :  { %1488 = vst [vmem:[#allocation11 + $0x20] sm:$0xff] %v1374_v51  ;;  %v1385_v18 = vadd.f32 %v1881_v9, %v2427_v7 }
 0x2f1   :  { %v1376_v58 = vpop.f32.mrf.mxu0 }
 0x2f2   :  { %1491 = vst [vmem:[#allocation11 + $0x38] sm:$0xff] %v1385_v18  ;;  %v1377_v17 = vadd.f32 %v2427_v7, %v1376_v58 }
 0x2f4   :  { %v1884_v27 = vpop.f32.mrf.mxu0  ;;  %1489 = vst [vmem:[#allocation11 + $0x28] sm:$0xff] %v1377_v17 }
 0x2f5   :  { %v1398_v56 = vadd.f32 %v1884_v27, %v2427_v7 }
 0x2f6   :  { %v1389_v29 = vpop.f32.mrf.mxu0 }
 0x2f7   :  { %1494 = vst [vmem:[#allocation11 + $0x50] sm:$0xff] %v1398_v56  ;;  %v1390_v3 = vadd.f32 %v2427_v7, %v1389_v29 }
 0x2f8   :  { %v1885_v37 = vpop.f32.mrf.mxu0 }
 0x2f9   :  { %1492 = vst [vmem:[#allocation11 + $0x40] sm:$0xff] %v1390_v3  ;;  %v1401_v11 = vadd.f32 %v1885_v37, %v2427_v7 }
 0x2fa   :  { %v1392_v5 = vpop.f32.mrf.mxu0 }
 0x2fb   :  { %1495 = vst [vmem:[#allocation11 + $0x58] sm:$0xff] %v1401_v11  ;;  %v1393_v20 = vadd.f32 %v2427_v7, %v1392_v5 }
 0x2fd   :  { %1493 = vst [vmem:[#allocation11 + $0x48] sm:$0xff] %v1393_v20 }
 0x2fe   :  { %v1888_v35 = vpop.f32.mrf.mxu0 }
 0x2ff   :  { %v1414_v60 = vadd.f32 %v1888_v35, %v2427_v7 }
 0x300   :  { %v1405_v59 = vpop.f32.mrf.mxu0 }
 0x301   :  { %1498 = vst [vmem:[#allocation11 + $0x70] sm:$0xff] %v1414_v60  ;;  %v1406_v12 = vadd.f32 %v2427_v7, %v1405_v59 }
 0x302   :  { %v1889_v61 = vpop.f32.mrf.mxu0 }
 0x303   :  { %1496 = vst [vmem:[#allocation11 + $0x60] sm:$0xff] %v1406_v12  ;;  %v1417_v42 = vadd.f32 %v1889_v61, %v2427_v7 }
 0x304   :  { %v1408_v21 = vpop.f32.mrf.mxu0 }
 0x305   :  { %1499 = vst [vmem:[#allocation11 + $0x78] sm:$0xff] %v1417_v42  ;;  %v1409_v43 = vadd.f32 %v2427_v7, %v1408_v21 }
 0x307   :  { %1497 = vst [vmem:[#allocation11 + $0x68] sm:$0xff] %v1409_v43 }
 0x30e   :  { %v1892_v13 = vpop.f32.mrf.mxu0 }
 0x30f   :  { %v1430_v0 = vadd.f32 %v1892_v13, %v2427_v7 }
 0x310   :  { %v1421_v4 = vpop.f32.mrf.mxu0 }
 0x311   :  { %1502 = vst [vmem:[#allocation11 + $0x90] sm:$0xff] %v1430_v0  ;;  %v1422_v25 = vadd.f32 %v2427_v7, %v1421_v4 }
 0x312   :  { %v1893_v39 = vpop.f32.mrf.mxu0 }
 0x313   :  { %1500 = vst [vmem:[#allocation11 + $0x80] sm:$0xff] %v1422_v25  ;;  %v1433_v2 = vadd.f32 %v1893_v39, %v2427_v7 }
 0x314   :  { %v1424_v6 = vpop.f32.mrf.mxu0 }
 0x315   :  { %1503 = vst [vmem:[#allocation11 + $0x98] sm:$0xff] %v1433_v2  ;;  %v1425_v30 = vadd.f32 %v2427_v7, %v1424_v6 }
 0x317   :  { %1501 = vst [vmem:[#allocation11 + $0x88] sm:$0xff] %v1425_v30 }
 0x31e   :  { %v1896_v14 = vpop.f32.mrf.mxu0 }
 0x31f   :  { %v1446_v40 = vadd.f32 %v1896_v14, %v2427_v7 }
 0x320   :  { %v1437_v1 = vpop.f32.mrf.mxu0 }
 0x321   :  { %1506 = vst [vmem:[#allocation11 + $0xb0] sm:$0xff] %v1446_v40  ;;  %v1438_v41 = vadd.f32 %v2427_v7, %v1437_v1 }
 0x322   :  { %v1897_v55 = vpop.f32.mrf.mxu0 }
 0x323   :  { %1504 = vst [vmem:[#allocation11 + $0xa0] sm:$0xff] %v1438_v41  ;;  %v1449_v34 = vadd.f32 %v1897_v55, %v2427_v7 }
 0x324   :  { %v1440_v38 = vpop.f32.mrf.mxu0 }
 0x325   :  { %1507 = vst [vmem:[#allocation11 + $0xb8] sm:$0xff] %v1449_v34  ;;  %v1441_v47 = vadd.f32 %v2427_v7, %v1440_v38 }
 0x326   :  { %v1900_v32 = vpop.f32.mrf.mxu0 }
 0x327   :  { %1505 = vst [vmem:[#allocation11 + $0xa8] sm:$0xff] %v1441_v47  ;;  %v1462_v46 = vadd.f32 %v1900_v32, %v2427_v7 }
 0x328   :  { %v1453_v48 = vpop.f32.mrf.mxu0 }
 0x329   :  { %1510 = vst [vmem:[#allocation11 + $0xd0] sm:$0xff] %v1462_v46  ;;  %v1454_v16 = vadd.f32 %v2427_v7, %v1453_v48 }
 0x32a   :  { %v1901_v49 = vpop.f32.mrf.mxu0 }
 0x32b   :  { %1508 = vst [vmem:[#allocation11 + $0xc0] sm:$0xff] %v1454_v16  ;;  %v1465_v53 = vadd.f32 %v1901_v49, %v2427_v7 }
 0x32c   :  { %v1456_v19 = vpop.f32.mrf.mxu0 }
 0x32d   :  { %1511 = vst [vmem:[#allocation11 + $0xd8] sm:$0xff] %v1465_v53  ;;  %v1457_v22 = vadd.f32 %v2427_v7, %v1456_v19 }
 0x32e   :  { %v1904_v62 = vpop.f32.mrf.mxu0 }
 0x32f   :  { %1509 = vst [vmem:[#allocation11 + $0xc8] sm:$0xff] %v1457_v22  ;;  %v1478_v36 = vadd.f32 %v1904_v62, %v2427_v7 }
 0x330   :  { %v1469_v45 = vpop.f32.mrf.mxu0 }
 0x331   :  { %1514 = vst [vmem:[#allocation11 + $0xf0] sm:$0xff] %v1478_v36  ;;  %v1470_v33 = vadd.f32 %v2427_v7, %v1469_v45 }
 0x332   :  { %v1905_v52 = vpop.f32.mrf.mxu0 }
 0x333   :  { %1512 = vst [vmem:[#allocation11 + $0xe0] sm:$0xff] %v1470_v33  ;;  %v1481_v57 = vadd.f32 %v1905_v52, %v2427_v7 }
 0x334   :  { %v1472_v10 = vpop.f32.mrf.mxu0 }
 0x335   :  { %1515 = vst [vmem:[#allocation11 + $0xf8] sm:$0xff] %v1481_v57  ;;  %v1473_v24 = vadd.f32 %v2427_v7, %v1472_v10 }
 0x337   :  { %1513 = vst [vmem:[#allocation11 + $0xe8] sm:$0xff] %v1473_v24 }
 0x338   :  { %2085 = shalt.err (!%p2082_p1)
}
 0x339   :  { %1527 = dma.vmem_to_hbm [thread:$0]  %s1522_s13, 4096, %s2475_s8, [#allocation4], %s2109_s21, %s2109_s21, %s2110_s22  }
 0x33a   :  { %2100 = dma.done.wait [#allocation4], 4096  }
 0x33b   :  { %2101 = vsyncadd [#allocation4], 4294963200 }
 0x33c   :  { %1531 = vsyncpa [#allocation3], 1 }
 0x33d   :  { %1532 = vsyncpa [#allocation6], 1 }
 0x33e   :  { %1533 = vsyncpa [#allocation9], 1 }
 0x33f   :  { %1534 = vsyncpa [#allocation4], 1 }

// kernel: tpu_custom_call.1
= control target key start
LH: loop header
LB: loop body
LE: loop exit
PB: predicated region body
PF: predicated region fallthrough
CT: control target
= control target key end

     0   :  { %13 = vsyncpa [#allocation3], 0  ;;  %s2467_s0 = inlined_call_operand.hbm [shape: f32[256,128], index: 0, kind: input, shape index: {}]   ;;  %s2468_s1 = inlined_call_operand.hbm [shape: f32[256,384], index: 1, kind: input, shape index: {}]   ;;  %s2469_s2 = inlined_call_operand.hbm [shape: bf16[384,128], index: 2, kind: input, shape index: {}]   ;;  %s2470_s3 = inlined_call_operand.vmem [shape: f32[1,128], index: 3, kind: input, shape index: {}]   ;;  %s2471_s4 = inlined_call_operand.hbm [shape: bf16[128,128], index: 4, kind: input, shape index: {}]   ;;  %s2472_s5 = inlined_call_operand.vmem [shape: f32[1,128], index: 5, kind: input, shape index: {}]   ;;  %s2473_s6 = inlined_call_operand.hbm [shape: bf16[128,128], index: 6, kind: input, shape index: {}]   ;;  %s2474_s7 = inlined_call_operand.vmem [shape: f32[1,128], index: 7, kind: input, shape index: {}]   ;;  %s2475_s8 = inlined_call_operand.hbm [shape: f32[256,128], index: 8, kind: output, shape index: {}]  }
   0x1   :  { %14 = vsyncpa [#allocation6], 0 }
   0x2   :  { %15 = vsyncpa [#allocation9], 0 }
   0x3   :  { %16 = vsyncpa [#allocation4], 0  ;;  %s2102_s27 = smov [#allocation5]  }
   0x4   :  { %s34_s28 = sshll.u32 %s2102_s27, 4  ;;  %s35_s28 = int_to_ptr.vmem [resolvable:$true] %s34_s28 }
   0x5   :  { %s1982_s29 = scalar_lea.vmem %s35_s28, 12288  ;;  %p1987_p1 = scmp.lt.s32.totalorder %s35_s28, %s35_s28 }
   0x6   :  { %p1983_p0 = scmp.ne.s32.totalorder %s35_s28, %s1982_s29  ;;  %p1988_p2 = scmp.lt.s32.totalorder %s1982_s29, %s1982_s29 }
   0x8   :  { %p1989_p3 = por %p1988_p2, %p1987_p1 }
   0xa   :  { %p1990_p4 = pnand %p1989_p3, %p1983_p0 }
   0xc   :  { %1993 = shalt.err (!%p1990_p4)
}
   0xd   :  { %s2103_s30 = smov 384   ;;  %s2104_s9 = smov 24  }
   0xe   :  { %40 = dma.hbm_to_vmem [thread:$0]  %s2468_s1, 12288, %s35_s28, [#allocation6], %s2103_s30, %s2103_s30, %s2104_s9  }
   0xf   :  { %s2105_s12 = smov [#allocation8]   ;;  %s2106_s14 = smov [#allocation2]  }
  0x10   :  { %s60_s13 = sshll.u32 %s2105_s12, 4  ;;  %s22_s15 = sshll.u32 %s2106_s14, 4  ;;  %s61_s13 = int_to_ptr.vmem [resolvable:$true] %s60_s13  ;;  %s23_s15 = int_to_ptr.vmem [resolvable:$true] %s22_s15 }
  0x11   :  { %s2002_s16 = scalar_lea.vmem %s61_s13, 1024  ;;  %p2007_p6 = scmp.lt.s32.totalorder %s61_s13, %s61_s13 }
  0x12   :  { %p2003_p5 = scmp.ne.s32.totalorder %s61_s13, %s2002_s16  ;;  %p2008_p7 = scmp.lt.s32.totalorder %s2002_s16, %s2002_s16 }
  0x14   :  { %p2009_p8 = por %p2008_p7, %p2007_p6 }
  0x16   :  { %p2010_p9 = pnand %p2009_p8, %p2003_p5 }
  0x18   :  { %2013 = shalt.err (!%p2010_p9)
}
  0x19   :  { %s2107_s17 = smov 64   ;;  %s2108_s18 = smov 4  }
  0x1a   :  { %66 = dma.hbm_to_vmem [thread:$0]  %s2471_s4, 1024, %s61_s13, [#allocation9], %s2107_s17, %s2107_s17, %s2108_s18  }
  0x1b   :  { %s2022_s1 = scalar_lea.vmem %s23_s15, 4096  ;;  %p2027_p11 = scmp.lt.s32.totalorder %s23_s15, %s23_s15 }
  0x1c   :  { %p2023_p10 = scmp.ne.s32.totalorder %s23_s15, %s2022_s1  ;;  %p2028_p12 = scmp.lt.s32.totalorder %s2022_s1, %s2022_s1 }
  0x1e   :  { %p2029_p13 = por %p2028_p12, %p2027_p11 }
  0x20   :  { %p2030_p0 = pnand %p2029_p13, %p2023_p10 }
  0x22   :  { %2033 = shalt.err (!%p2030_p0)
}
  0x23   :  { %s2109_s21 = smov 128   ;;  %s2110_s22 = smov 8  }
  0x24   :  { %28 = dma.hbm_to_vmem [thread:$0]  %s2467_s0, 4096, %s23_s15, [#allocation3], %s2109_s21, %s2109_s21, %s2110_s22  }
  0x25   :  { %s2111_s25 = smov [#allocation7]   ;;  %s2112_s4 = smov [#allocation10]  }
  0x26   :  { %s46_s26 = sshll.u32 %s2111_s25, 4  ;;  %s74_s27 = sshll.u32 %s2112_s4, 4  ;;  %s47_s26 = int_to_ptr.vmem [resolvable:$true] %s46_s26  ;;  %s75_s27 = int_to_ptr.vmem [resolvable:$true] %s74_s27 }
  0x27   :  { %s2042_s28 = scalar_lea.vmem %s47_s26, 3072  ;;  %p2047_p2 = scmp.lt.s32.totalorder %s47_s26, %s47_s26 }
  0x28   :  { %p2043_p1 = scmp.ne.s32.totalorder %s47_s26, %s2042_s28  ;;  %p2048_p3 = scmp.lt.s32.totalorder %s2042_s28, %s2042_s28 }
  0x2a   :  { %p2049_p4 = por %p2048_p3, %p2047_p2 }
  0x2c   :  { %p2050_p5 = pnand %p2049_p4, %p2043_p1 }
  0x2e   :  { %2053 = shalt.err (!%p2050_p5)
}
  0x2f   :  { %52 = dma.hbm_to_vmem [thread:$0]  %s2469_s2, 3072, %s47_s26, [#allocation6], %s2107_s17, %s2107_s17, %s2108_s18  }
  0x30   :  { %s2062_s0 = scalar_lea.vmem %s75_s27, 1024  ;;  %p2067_p7 = scmp.lt.s32.totalorder %s75_s27, %s75_s27 }
  0x31   :  { %p2063_p6 = scmp.ne.s32.totalorder %s75_s27, %s2062_s0  ;;  %p2068_p8 = scmp.lt.s32.totalorder %s2062_s0, %s2062_s0 }
  0x33   :  { %p2069_p9 = por %p2068_p8, %p2067_p7 }
  0x35   :  { %p2070_p10 = pnand %p2069_p9, %p2063_p6 }
  0x37   :  { %2073 = shalt.err (!%p2070_p10)
}
  0x38   :  { %80 = dma.hbm_to_vmem [thread:$0]  %s2473_s6, 1024, %s75_s27, [#allocation9], %s2107_s17, %s2107_s17, %s2108_s18  }
  0x39   :  { %2094 = dma.done.wait [#allocation3], 4096  }
  0x3a   :  { %2095 = vsyncadd [#allocation3], 4294963200 }
  0x3b   :  { %2096 = dma.done.wait [#allocation6], 15360  }
  0x3c   :  { %2097 = vsyncadd [#allocation6], 4294951936 }
  0x3d   :  { %2098 = dma.done.wait [#allocation9], 2048  }
  0x3e   :  { %2099 = vsyncadd [#allocation9], 4294965248  ;;  %v1934_v0 = vld [vmem:[#allocation7 + $0x78] sm:$0xff]   ;;  %v1936_v2 = vld [vmem:[#allocation7 + $0x70] sm:$0xff]  }
  0x3f   :  { %v1935_v1 = vld [vmem:[#allocation7 + $0x38] sm:$0xff]   ;;  %1578 = vmatprep.subr.bf16.mxu0 %v1934_v0  ;;  %1906 = vmatprep.subr.bf16.mxu1 %v1934_v0  ;;  %v1937_v3 = vld [vmem:[#allocation7 + $0x30] sm:$0xff]   ;;  %v1938_v4 = vld [vmem:[#allocation7 + $0x68] sm:$0xff]  }
  0x40   :  { %1579 = vmatpush3.bf16.msra.mxu0 %v1935_v1  ;;  %1914 = vmatpush3.bf16.msra.mxu1 %v1935_v1  ;;  %v1939_v5 = vld [vmem:[#allocation7 + $0x28] sm:$0xff]   ;;  %v1940_v6 = vld [vmem:[#allocation7 + $0x60] sm:$0xff]   ;;  %v1942_v8 = vld [vmem:[#allocation7 + $0x58] sm:$0xff]  }
  0x41   :  { %1580 = vmatprep.subr.bf16.mxu0 %v1936_v2  ;;  %1907 = vmatprep.subr.bf16.mxu1 %v1936_v2  ;;  %v1941_v7 = vld [vmem:[#allocation7 + $0x20] sm:$0xff]   ;;  %v1943_v9 = vld [vmem:[#allocation7 + $0x18] sm:$0xff]   ;;  %v1944_v10 = vld [vmem:[#allocation7 + $0x50] sm:$0xff]  }
  0x42   :  { %v100_v11 = vld [vmem:[#allocation5 + $0x8] sm:$0xff]  ;;  %v103_v12 = vld [vmem:[#allocation5 + $0x20] sm:$0xff]  ;;  %v1945_v17 = vld [vmem:[#allocation7 + $0x10] sm:$0xff]  }
  0x43   :  { %v172_v13 = vld [vmem:[#allocation5 + $0x248] sm:$0xff]  ;;  %v196_v14 = vpack.c.bf16 %v103_v12, %v100_v11  ;;  %v175_v15 = vld [vmem:[#allocation5 + $0x260] sm:$0xff]  ;;  %v102_v23 = vld [vmem:[#allocation5 + $0x18] sm:$0xff] }
  0x44   :  { %1581 = vmatpush3.bf16.msra.mxu0 %v1937_v3  ;;  %1915 = vmatpush3.bf16.msra.mxu1 %v1937_v3  ;;  %v232_v16 = vpack.c.bf16 %v175_v15, %v172_v13  ;;  %v1946_v18 = vld [vmem:[#allocation7 + $0x48] sm:$0xff]   ;;  %v1948_v20 = vld [vmem:[#allocation7 + $0x40] sm:$0xff]   ;;  %v174_v25 = vld [vmem:[#allocation5 + $0x258] sm:$0xff] }
  0x45   :  { %1582 = vmatprep.subr.bf16.mxu0 %v1938_v4  ;;  %1908 = vmatprep.subr.bf16.mxu1 %v1938_v4  ;;  %v1947_v19 = vld [vmem:[#allocation7 + $0x8] sm:$0xff]   ;;  %v1949_v21 = vld [vmem:[#allocation7] sm:$0xff]   ;;  %v1950_v26 = vld [vmem:[#allocation7 + $0xb8] sm:$0xff]  }
  0x46   :  { %474 = vmatprep.mubr.bf16.mxu0 %v196_v14  ;;  %570 = vmatprep.mubr.bf16.mxu1 %v232_v16  ;;  %v99_v22 = vld [vmem:[#allocation5] sm:$0xff]  ;;  %v106_v27 = vld [vmem:[#allocation5 + $0x38] sm:$0xff]  ;;  %v109_v28 = vld [vmem:[#allocation5 + $0x50] sm:$0xff] }
  0x47   :  { %v171_v24 = vld [vmem:[#allocation5 + $0x240] sm:$0xff]  ;;  %v178_v29 = vld [vmem:[#allocation5 + $0x278] sm:$0xff]  ;;  %v181_v30 = vld [vmem:[#allocation5 + $0x290] sm:$0xff]  ;;  %v195_v31 = vpack.c.bf16 %v102_v23, %v99_v22  ;;  %v199_v33 = vpack.c.bf16 %v109_v28, %v106_v27 }
  0x48   :  { %1583 = vmatpush3.bf16.msra.mxu0 %v1939_v5  ;;  %1916 = vmatpush3.bf16.msra.mxu1 %v1939_v5  ;;  %v231_v32 = vpack.c.bf16 %v174_v25, %v171_v24  ;;  %v1951_v34 = vld [vmem:[#allocation7 + $0xb0] sm:$0xff]   ;;  %v235_v35 = vpack.c.bf16 %v181_v30, %v178_v29  ;;  %v108_v37 = vld [vmem:[#allocation5 + $0x48] sm:$0xff]  ;;  %v115_v42 = vld [vmem:[#allocation5 + $0x80] sm:$0xff] }
  0x49   :  { %1584 = vmatprep.subr.bf16.mxu0 %v1940_v6  ;;  %1909 = vmatprep.subr.bf16.mxu1 %v1940_v6  ;;  %v105_v36 = vld [vmem:[#allocation5 + $0x30] sm:$0xff]  ;;  %v180_v39 = vld [vmem:[#allocation5 + $0x288] sm:$0xff]  ;;  %v187_v44 = vld [vmem:[#allocation5 + $0x2c0] sm:$0xff] }
  0x4a   :  { %v177_v38 = vld [vmem:[#allocation5 + $0x270] sm:$0xff]  ;;  %v1952_v40 = vld [vmem:[#allocation7 + $0xa8] sm:$0xff]   ;;  %v198_v45 = vpack.c.bf16 %v108_v37, %v105_v36  ;;  %v1953_v48 = vld [vmem:[#allocation7 + $0xa0] sm:$0xff]  }
  0x4b   :  { %v112_v41 = vld [vmem:[#allocation5 + $0x68] sm:$0xff]  ;;  %v234_v46 = vpack.c.bf16 %v180_v39, %v177_v38  ;;  %v111_v50 = vld [vmem:[#allocation5 + $0x60] sm:$0xff]  ;;  %v114_v51 = vld [vmem:[#allocation5 + $0x78] sm:$0xff] }
  0x4c   :  { %1585 = vmatpush3.bf16.msra.mxu0 %v1941_v7  ;;  %1917 = vmatpush3.bf16.msra.mxu1 %v1941_v7  ;;  %v184_v43 = vld [vmem:[#allocation5 + $0x2a8] sm:$0xff]  ;;  %v202_v47 = vpack.c.bf16 %v115_v42, %v112_v41  ;;  %v183_v52 = vld [vmem:[#allocation5 + $0x2a0] sm:$0xff]  ;;  %v186_v53 = vld [vmem:[#allocation5 + $0x2b8] sm:$0xff]  ;;  %v201_v59 = vpack.c.bf16 %v114_v51, %v111_v50 }
  0x4d   :  { %1586 = vmatprep.subr.bf16.mxu0 %v1942_v8  ;;  %1910 = vmatprep.subr.bf16.mxu1 %v1942_v8  ;;  %v238_v49 = vpack.c.bf16 %v187_v44, %v184_v43  ;;  %v1954_v54 = vld [vmem:[#allocation7 + $0x98] sm:$0xff]   ;;  %v121_v56 = vld [vmem:[#allocation5 + $0xb0] sm:$0xff]  ;;  %v237_v60 = vpack.c.bf16 %v186_v53, %v183_v52  ;;  %v120_v1 = vld [vmem:[#allocation5 + $0xa8] sm:$0xff] }
  0x4e   :  { %v118_v55 = vld [vmem:[#allocation5 + $0x98] sm:$0xff]  ;;  %v193_v58 = vld [vmem:[#allocation5 + $0x2f0] sm:$0xff]  ;;  %v192_v3 = vld [vmem:[#allocation5 + $0x2e8] sm:$0xff] }
  0x4f   :  { %v190_v57 = vld [vmem:[#allocation5 + $0x2d8] sm:$0xff]  ;;  %v205_v61 = vpack.c.bf16 %v121_v56, %v118_v55  ;;  %v1955_v62 = vld [vmem:[#allocation7 + $0x90] sm:$0xff]   ;;  %v1956_v4 = vld [vmem:[#allocation7 + $0x88] sm:$0xff]  }
  0x50   :  { %1587 = vmatpush3.bf16.msra.mxu0 %v1943_v9  ;;  %1918 = vmatpush3.bf16.msra.mxu1 %v1943_v9  ;;  %v241_v63 = vpack.c.bf16 %v193_v58, %v190_v57  ;;  %v117_v0 = vld [vmem:[#allocation5 + $0x90] sm:$0xff]  ;;  %v124_v5 = vld [vmem:[#allocation5 + $0xc8] sm:$0xff]  ;;  %v127_v6 = vld [vmem:[#allocation5 + $0xe0] sm:$0xff] }
  0x51   :  { %1588 = vmatprep.subr.bf16.mxu0 %v1944_v10  ;;  %1911 = vmatprep.subr.bf16.mxu1 %v1944_v10  ;;  %v189_v2 = vld [vmem:[#allocation5 + $0x2d0] sm:$0xff]  ;;  %v104_v8 = vld [vmem:[#allocation5 + $0x28] sm:$0xff]  ;;  %v204_v9 = vpack.c.bf16 %v120_v1, %v117_v0  ;;  %v1957_v11 = vld [vmem:[#allocation7 + $0x80] sm:$0xff]   ;;  %v208_v12 = vpack.c.bf16 %v127_v6, %v124_v5 }
  0x52   :  { %v101_v7 = vld [vmem:[#allocation5 + $0x10] sm:$0xff]  ;;  %v240_v10 = vpack.c.bf16 %v192_v3, %v189_v2  ;;  %v123_v14 = vld [vmem:[#allocation5 + $0xc0] sm:$0xff]  ;;  %v126_v15 = vld [vmem:[#allocation5 + $0xd8] sm:$0xff] }
  0x53   :  { %v197_v13 = vpack.c.bf16 %v104_v8, %v101_v7  ;;  %v107_v16 = vld [vmem:[#allocation5 + $0x40] sm:$0xff]  ;;  %v207_v22 = vpack.c.bf16 %v126_v15, %v123_v14  ;;  %v132_v27 = vld [vmem:[#allocation5 + $0x108] sm:$0xff]  ;;  %v122_v29 = vld [vmem:[#allocation5 + $0xb8] sm:$0xff] }
  0x54   :  { %1589 = vmatpush3.bf16.msra.mxu0 %v1945_v17  ;;  %1919 = vmatpush3.bf16.msra.mxu1 %v1945_v17  ;;  %v110_v17 = vld [vmem:[#allocation5 + $0x58] sm:$0xff]  ;;  %v119_v28 = vld [vmem:[#allocation5 + $0xa0] sm:$0xff]  ;;  %v136_v30 = vld [vmem:[#allocation5 + $0x128] sm:$0xff] }
  0x55   :  { %1590 = vmatprep.subr.bf16.mxu0 %v1946_v18  ;;  %1912 = vmatprep.subr.bf16.mxu1 %v1946_v18  ;;  %v130_v18 = vld [vmem:[#allocation5 + $0xf8] sm:$0xff]  ;;  %v200_v23 = vpack.c.bf16 %v110_v17, %v107_v16  ;;  %v135_v38 = vld [vmem:[#allocation5 + $0x120] sm:$0xff]  ;;  %v145_v43 = vld [vmem:[#allocation5 + $0x170] sm:$0xff] }
  0x56   :  { %v138_v39 = vld [vmem:[#allocation5 + $0x138] sm:$0xff]  ;;  %v137_v44 = vld [vmem:[#allocation5 + $0x130] sm:$0xff]  ;;  %v144_v51 = vld [vmem:[#allocation5 + $0x168] sm:$0xff] }
  0x57   :  { %v134_v41 = vld [vmem:[#allocation5 + $0x118] sm:$0xff]  ;;  %v141_v50 = vld [vmem:[#allocation5 + $0x150] sm:$0xff]  ;;  %v143_v52 = vld [vmem:[#allocation5 + $0x160] sm:$0xff] }
  0x58   :  { %1591 = vmatpush3.bf16.msra.mxu0 %v1947_v19  ;;  %1920 = vmatpush3.bf16.msra.mxu1 %v1947_v19  ;;  %v133_v19 = vld [vmem:[#allocation5 + $0x110] sm:$0xff]  ;;  %v142_v42 = vld [vmem:[#allocation5 + $0x158] sm:$0xff]  ;;  %v151_v55 = vld [vmem:[#allocation5 + $0x1a0] sm:$0xff]  ;;  %v216_v58 = vpack.c.bf16 %v144_v51, %v141_v50 }
  0x59   :  { %1592 = vmatprep.subr.bf16.mxu0 %v1948_v20  ;;  %1913 = vmatprep.subr.bf16.mxu1 %v1948_v20  ;;  %v113_v20 = vld [vmem:[#allocation5 + $0x70] sm:$0xff]  ;;  %v211_v24 = vpack.c.bf16 %v133_v19, %v130_v18  ;;  %v146_v53 = vld [vmem:[#allocation5 + $0x178] sm:$0xff]  ;;  %v152_v57 = vld [vmem:[#allocation5 + $0x1a8] sm:$0xff] }
  0x5a   :  { %v149_v56 = vld [vmem:[#allocation5 + $0x190] sm:$0xff]  ;;  %v155_v0 = vld [vmem:[#allocation5 + $0x1c0] sm:$0xff]  ;;  %v158_v1 = vld [vmem:[#allocation5 + $0x1d8] sm:$0xff] }
  0x5b   :  { %v154_v2 = vld [vmem:[#allocation5 + $0x1b8] sm:$0xff]  ;;  %v157_v3 = vld [vmem:[#allocation5 + $0x1d0] sm:$0xff]  ;;  %v164_v5 = vld [vmem:[#allocation5 + $0x208] sm:$0xff]  ;;  %v224_v7 = vpack.c.bf16 %v158_v1, %v155_v0 }
  0x5c   :  { %1593 = vmatpush3.bf16.msra.mxu0 %v1949_v21  ;;  %1921 = vmatpush3.bf16.msra.mxu1 %v1949_v21  ;;  %v116_v21 = vld [vmem:[#allocation5 + $0x88] sm:$0xff]  ;;  %v223_v8 = vpack.c.bf16 %v157_v3, %v154_v2  ;;  %v163_v15 = vld [vmem:[#allocation5 + $0x200] sm:$0xff]  ;;  %v173_v16 = vld [vmem:[#allocation5 + $0x250] sm:$0xff] }
  0x5d   :  { %1762 = vmatprep.subr.bf16.mxu1 %v1950_v26  ;;  %v203_v25 = vpack.c.bf16 %v116_v21, %v113_v20  ;;  %v160_v14 = vld [vmem:[#allocation5 + $0x1e8] sm:$0xff]  ;;  %v1958_v20 = vld [vmem:[#allocation8 + $0x38] sm:$0xff]  }
  0x5e   :  { %v176_v17 = vld [vmem:[#allocation5 + $0x268] sm:$0xff]  ;;  %v226_v21 = vpack.c.bf16 %v163_v15, %v160_v14  ;;  %v1970_v0 = vld [vmem:[#allocation10 + $0x18] sm:$0xff]  }
  0x5f   :  { %475 = vmatmul.mubr.bf16.vlgmr.msra.gmra.mxu0 %v195_v31  ;;  %571 = vmatmul.mubr.bf16.vlgmr.msra.gmra.mxu1 %v231_v32  ;;  %v139_v31 = vld [vmem:[#allocation5 + $0x140] sm:$0xff]  ;;  %v125_v32 = vld [vmem:[#allocation5 + $0xd0] sm:$0xff] }
  0x60   :  { %1763 = vmatpush3.bf16.msra.mxu1 %v1950_v26  ;;  %482 = vmatprep.mubr.bf16.mxu0 %v199_v33  ;;  %v129_v26 = vld [vmem:[#allocation5 + $0xf0] sm:$0xff]  ;;  %v128_v33 = vld [vmem:[#allocation5 + $0xe8] sm:$0xff]  ;;  %v214_v36 = vpack.c.bf16 %v139_v31, %v136_v30 }
  0x61   :  { %1764 = vmatprep.subr.bf16.mxu1 %v1951_v34  ;;  %578 = vmatprep.mubr.bf16.mxu1 %v235_v35  ;;  %v206_v35 = vpack.c.bf16 %v122_v29, %v119_v28  ;;  %v209_v37 = vpack.c.bf16 %v128_v33, %v125_v32  ;;  %v169_v28 = vld [vmem:[#allocation5 + $0x230] sm:$0xff]  ;;  %v188_v30 = vld [vmem:[#allocation5 + $0x2c8] sm:$0xff] }
  0x62   :  { %v185_v29 = vld [vmem:[#allocation5 + $0x2b0] sm:$0xff] }
  0x63   :  { %v1959_v33 = vld [vmem:[#allocation8 + $0x30] sm:$0xff]  }
  0x64   :  { %1765 = vmatpush3.bf16.msra.mxu1 %v1951_v34  ;;  %v210_v34 = vpack.c.bf16 %v132_v27, %v129_v26  ;;  %v182_v26 = vld [vmem:[#allocation5 + $0x298] sm:$0xff] }
  0x65   :  { %1766 = vmatprep.subr.bf16.mxu1 %v1952_v40  ;;  %v166_v27 = vld [vmem:[#allocation5 + $0x218] sm:$0xff] }
  0x67   :  { %483 = vmatmul.mubr.bf16.gmra.mxu0 %v198_v45  ;;  %579 = vmatmul.mubr.bf16.gmra.mxu1 %v234_v46  ;;  %v140_v45 = vld [vmem:[#allocation5 + $0x148] sm:$0xff]  ;;  %v213_v46 = vpack.c.bf16 %v138_v39, %v135_v38  ;;  %v191_v38 = vld [vmem:[#allocation5 + $0x2e0] sm:$0xff]  ;;  %v194_v39 = vld [vmem:[#allocation5 + $0x2f8] sm:$0xff] }
  0x68   :  { %1767 = vmatpush3.bf16.msra.mxu1 %v1952_v40  ;;  %490 = vmatprep.mubr.bf16.mxu0 %v202_v47  ;;  %v131_v40 = vld [vmem:[#allocation5 + $0x100] sm:$0xff] }
  0x69   :  { %1768 = vmatprep.subr.bf16.mxu1 %v1953_v48  ;;  %586 = vmatprep.mubr.bf16.mxu1 %v238_v49  ;;  %v212_v47 = vpack.c.bf16 %v134_v41, %v131_v40  ;;  %v215_v49 = vpack.c.bf16 %v140_v45, %v137_v44  ;;  %v242_v41 = vpack.c.bf16 %v194_v39, %v191_v38  ;;  %v1962_v44 = vld [vmem:[#allocation8 + $0x18] sm:$0xff]   ;;  %v1963_v45 = vld [vmem:[#allocation8 + $0x10] sm:$0xff]  }
  0x6c   :  { %1769 = vmatpush3.bf16.msra.mxu1 %v1953_v48  ;;  %v217_v48 = vpack.c.bf16 %v145_v43, %v142_v42  ;;  %v1960_v42 = vld [vmem:[#allocation8 + $0x28] sm:$0xff]   ;;  %v1961_v43 = vld [vmem:[#allocation8 + $0x20] sm:$0xff]  }
  0x6d   :  { %1770 = vmatprep.subr.bf16.mxu1 %v1954_v54 }
  0x6f   :  { %491 = vmatmul.mubr.bf16.gmra.mxu0 %v201_v59  ;;  %587 = vmatmul.mubr.bf16.gmra.mxu1 %v237_v60  ;;  %v218_v59 = vpack.c.bf16 %v146_v53, %v143_v52  ;;  %v1968_v52 = vld [vmem:[#allocation10 + $0x28] sm:$0xff]  }
  0x70   :  { %1771 = vmatpush3.bf16.msra.mxu1 %v1954_v54  ;;  %498 = vmatprep.mubr.bf16.mxu0 %v205_v61  ;;  %v148_v54 = vld [vmem:[#allocation5 + $0x188] sm:$0xff]  ;;  %v221_v61 = vpack.c.bf16 %v152_v57, %v149_v56 }
  0x71   :  { %1772 = vmatprep.subr.bf16.mxu1 %v1955_v62  ;;  %594 = vmatprep.mubr.bf16.mxu1 %v241_v63  ;;  %v220_v60 = vpack.c.bf16 %v151_v55, %v148_v54  ;;  %v150_v63 = vld [vmem:[#allocation5 + $0x198] sm:$0xff] }
  0x74   :  { %1773 = vmatpush3.bf16.msra.mxu1 %v1955_v62  ;;  %v147_v62 = vld [vmem:[#allocation5 + $0x180] sm:$0xff] }
  0x75   :  { %1774 = vmatprep.subr.bf16.mxu1 %v1956_v4  ;;  %v219_v6 = vpack.c.bf16 %v150_v63, %v147_v62 }
  0x77   :  { %499 = vmatmul.mubr.bf16.gmra.mxu0 %v204_v9  ;;  %595 = vmatmul.mubr.bf16.gmra.mxu1 %v240_v10  ;;  %v153_v10 = vld [vmem:[#allocation5 + $0x1b0] sm:$0xff] }
  0x78   :  { %1775 = vmatpush3.bf16.msra.mxu1 %v1956_v4  ;;  %506 = vmatprep.mubr.bf16.mxu0 %v208_v12  ;;  %v161_v4 = vld [vmem:[#allocation5 + $0x1f0] sm:$0xff]  ;;  %v167_v12 = vld [vmem:[#allocation5 + $0x220] sm:$0xff] }
  0x79   :  { %1776 = vmatprep.subr.bf16.mxu1 %v1957_v11  ;;  %1778 = vmatprep.mubr.bf16.mxu1 %v197_v13  ;;  %v227_v9 = vpack.c.bf16 %v164_v5, %v161_v4  ;;  %v170_v13 = vld [vmem:[#allocation5 + $0x238] sm:$0xff] }
  0x7a   :  { %v230_v19 = vpack.c.bf16 %v170_v13, %v167_v12 }
  0x7c   :  { %1777 = vmatpush3.bf16.msra.mxu1 %v1957_v11  ;;  %v156_v11 = vld [vmem:[#allocation5 + $0x1c8] sm:$0xff] }
  0x7d   :  { %v222_v18 = vpack.c.bf16 %v156_v11, %v153_v10  ;;  %1810 = vmatprep.subr.bf16.mxu1 %v1958_v20 }
  0x7f   :  { %507 = vmatmul.mubr.bf16.gmra.mxu0 %v207_v22  ;;  %1779 = vmatmul.mubr.bf16.vlgmr.msra.gmra.mxu1 %v200_v23  ;;  %v233_v22 = vpack.c.bf16 %v176_v17, %v173_v16  ;;  %v159_v23 = vld [vmem:[#allocation5 + $0x1e0] sm:$0xff] }
  0x80   :  { %514 = vmatprep.mubr.bf16.mxu0 %v211_v24  ;;  %1782 = vmatprep.mubr.bf16.mxu1 %v203_v25  ;;  %v162_v24 = vld [vmem:[#allocation5 + $0x1f8] sm:$0xff]  ;;  %v179_v25 = vld [vmem:[#allocation5 + $0x280] sm:$0xff] }
  0x81   :  { %1811 = vmatpush3.bf16.msra.mxu1 %v1958_v20  ;;  %v225_v31 = vpack.c.bf16 %v162_v24, %v159_v23  ;;  %v236_v32 = vpack.c.bf16 %v182_v26, %v179_v25 }
  0x82   :  { %1812 = vmatprep.subr.bf16.mxu1 %v1959_v33 }
  0x85   :  { %1813 = vmatpush3.bf16.msra.mxu1 %v1959_v33 }
  0x86   :  { %1814 = vmatprep.subr.bf16.mxu1 %v1960_v42 }
  0x87   :  { %515 = vmatmul.mubr.bf16.gmra.mxu0 %v210_v34  ;;  %1783 = vmatmul.mubr.bf16.gmra.mxu1 %v206_v35  ;;  %v229_v34 = vpack.c.bf16 %v169_v28, %v166_v27  ;;  %v239_v35 = vpack.c.bf16 %v188_v30, %v185_v29  ;;  %v2203_v30 = vld [vmem:[%s2470_s3] ss:$0 sm:$0xff] }
  0x88   :  { %522 = vmatprep.mubr.bf16.mxu0 %v214_v36  ;;  %1786 = vmatprep.mubr.bf16.mxu1 %v209_v37  ;;  %v165_v36 = vld [vmem:[#allocation5 + $0x210] sm:$0xff]  ;;  %v168_v37 = vld [vmem:[#allocation5 + $0x228] sm:$0xff] }
  0x89   :  { %v228_v40 = vpack.c.bf16 %v168_v37, %v165_v36  ;;  %1815 = vmatpush3.bf16.msra.mxu1 %v1960_v42  ;;  %v764_v42 = vld [vmem:[#allocation2] sm:$0xff] }
  0x8a   :  { %1816 = vmatprep.subr.bf16.mxu1 %v1961_v43 }
  0x8d   :  { %1817 = vmatpush3.bf16.msra.mxu1 %v1961_v43 }
  0x8e   :  { %1818 = vmatprep.subr.bf16.mxu1 %v1962_v44 }
  0x8f   :  { %523 = vmatmul.mubr.bf16.gmra.mxu0 %v213_v46  ;;  %1787 = vmatmul.mubr.bf16.gmra.mxu1 %v212_v47  ;;  %v1964_v46 = vld [vmem:[#allocation8 + $0x8] sm:$0xff]   ;;  %v1965_v47 = vld [vmem:[#allocation8] sm:$0xff]  }
  0x90   :  { %530 = vmatprep.mubr.bf16.mxu0 %v217_v48  ;;  %1790 = vmatprep.mubr.bf16.mxu1 %v215_v49  ;;  %v1966_v48 = vld [vmem:[#allocation10 + $0x38] sm:$0xff]   ;;  %v1967_v49 = vld [vmem:[#allocation10 + $0x30] sm:$0xff]  }
  0x91   :  { %1819 = vmatpush3.bf16.msra.mxu1 %v1962_v44  ;;  %1858 = vmatprep.subr.bf16.mxu0 %v1966_v48  ;;  %v766_v44 = vld [vmem:[#allocation2 + $0x10] sm:$0xff] }
  0x92   :  { %1820 = vmatprep.subr.bf16.mxu1 %v1963_v45  ;;  %1859 = vmatpush3.bf16.msra.mxu0 %v1966_v48 }
  0x93   :  { %1860 = vmatprep.subr.bf16.mxu0 %v1967_v49 }
  0x95   :  { %1821 = vmatpush3.bf16.msra.mxu1 %v1963_v45 }
  0x96   :  { %1822 = vmatprep.subr.bf16.mxu1 %v1964_v46  ;;  %1861 = vmatpush3.bf16.msra.mxu0 %v1967_v49 }
  0x97   :  { %531 = vmatmul.mubr.bf16.gmra.mxu0 %v216_v58  ;;  %1791 = vmatmul.mubr.bf16.gmra.mxu1 %v218_v59  ;;  %v1969_v58 = vld [vmem:[#allocation10 + $0x20] sm:$0xff]  }
  0x98   :  { %538 = vmatprep.mubr.bf16.mxu0 %v220_v60  ;;  %1794 = vmatprep.mubr.bf16.mxu1 %v221_v61 }
  0x99   :  { %1823 = vmatpush3.bf16.msra.mxu1 %v1964_v46  ;;  %1862 = vmatprep.subr.bf16.mxu0 %v1968_v52 }
  0x9a   :  { %1824 = vmatprep.subr.bf16.mxu1 %v1965_v47  ;;  %1863 = vmatpush3.bf16.msra.mxu0 %v1968_v52 }
  0x9b   :  { %1864 = vmatprep.subr.bf16.mxu0 %v1969_v58 }
  0x9d   :  { %1825 = vmatpush3.bf16.msra.mxu1 %v1965_v47  ;;  %v767_v47 = vld [vmem:[#allocation2 + $0x18] sm:$0xff] }
  0x9e   :  { %1865 = vmatpush3.bf16.msra.mxu0 %v1969_v58 }
  0x9f   :  { %539 = vmatmul.mubr.bf16.gmra.mxu0 %v219_v6  ;;  %1795 = vmatmul.mubr.bf16.gmra.mxu1 %v224_v7 }
  0xa0   :  { %546 = vmatprep.mubr.bf16.mxu0 %v223_v8  ;;  %1798 = vmatprep.mubr.bf16.mxu1 %v227_v9 }
  0xa1   :  { %1866 = vmatprep.subr.bf16.mxu0 %v1970_v0 }
  0xa2   :  { %1867 = vmatpush3.bf16.msra.mxu0 %v1970_v0 }
  0xa7   :  { %547 = vmatmul.mubr.bf16.gmra.mxu0 %v222_v18  ;;  %1799 = vmatmul.mubr.bf16.gmra.mxu1 %v230_v19 }
  0xa8   :  { %554 = vmatprep.mubr.bf16.mxu0 %v226_v21  ;;  %1802 = vmatprep.mubr.bf16.mxu1 %v233_v22 }
  0xaf   :  { %555 = vmatmul.mubr.bf16.gmra.mxu0 %v225_v31  ;;  %1803 = vmatmul.mubr.bf16.gmra.mxu1 %v236_v32 }
  0xb0   :  { %562 = vmatprep.mubr.bf16.mxu0 %v229_v34  ;;  %1806 = vmatprep.mubr.bf16.mxu1 %v239_v35 }
  0xb7   :  { %563 = vmatmul.mubr.bf16.gmra.mxu0 %v228_v40  ;;  %1807 = vmatmul.mubr.bf16.gmra.mxu1 %v242_v41 }
 0x11f   :  { %v1594_v50 = vpop.f32.mrf.mxu0  ;;  %v1666_v51 = vpop.f32.mrf.mxu1 }
 0x121   :  { %v1595_v53 = vpop.f32.mrf.mxu0  ;;  %v1667_v54 = vpop.f32.mrf.mxu1 }
 0x122   :  { %v2186_v55 = vadd.f32 %v1667_v54, %v1666_v51  ;;  %v1596_v26 = vadd.f32 %v1595_v53, %v1594_v50 }
 0x123   :  { %v1597_v56 = vpop.f32.mrf.mxu0  ;;  %v1669_v57 = vpop.f32.mrf.mxu1 }
 0x124   :  { %v477_v36 = vadd.f32 %v1596_v26, %v2203_v30 }
 0x125   :  { %v1598_v59 = vpop.f32.mrf.mxu0  ;;  %v1670_v60 = vpop.f32.mrf.mxu1 }
 0x126   :  { %v2188_v61 = vadd.f32 %v1670_v60, %v1669_v57  ;;  %v1599_v37 = vadd.f32 %v1598_v59, %v1597_v56  ;;  %v765_v59 = vld [vmem:[#allocation2 + $0x8] sm:$0xff] }
 0x127   :  { %v1600_v62 = vpop.f32.mrf.mxu0  ;;  %v1672_v63 = vpop.f32.mrf.mxu1 }
 0x128   :  { %v480_v53 = vadd.f32 %v1599_v37, %v2203_v30 }
 0x129   :  { %v1601_v1 = vpop.f32.mrf.mxu0  ;;  %v1673_v2 = vpop.f32.mrf.mxu1 }
 0x12a   :  { %v2190_v3 = vadd.f32 %v1673_v2, %v1672_v63  ;;  %v1602_v27 = vadd.f32 %v1601_v1, %v1600_v62 }
 0x12b   :  { %v1603_v4 = vpop.f32.mrf.mxu0  ;;  %v1675_v5 = vpop.f32.mrf.mxu1 }
 0x12c   :  { %v485_v35 = vadd.f32 %v1602_v27, %v2203_v30 }
 0x12d   :  { %v1604_v6 = vpop.f32.mrf.mxu0  ;;  %v1676_v7 = vpop.f32.mrf.mxu1 }
 0x12e   :  { %v2192_v8 = vadd.f32 %v1676_v7, %v1675_v5  ;;  %v1605_v31 = vadd.f32 %v1604_v6, %v1603_v4 }
 0x12f   :  { %v1606_v9 = vpop.f32.mrf.mxu0  ;;  %v1678_v10 = vpop.f32.mrf.mxu1 }
 0x130   :  { %v488_v43 = vadd.f32 %v1605_v31, %v2203_v30 }
 0x131   :  { %v1607_v11 = vpop.f32.mrf.mxu0  ;;  %v1679_v12 = vpop.f32.mrf.mxu1 }
 0x132   :  { %v2194_v13 = vadd.f32 %v1679_v12, %v1678_v10  ;;  %v1608_v48 = vadd.f32 %v1607_v11, %v1606_v9 }
 0x133   :  { %v1609_v14 = vpop.f32.mrf.mxu0  ;;  %v1681_v15 = vpop.f32.mrf.mxu1 }
 0x134   :  { %v493_v2 = vadd.f32 %v1608_v48, %v2203_v30 }
 0x135   :  { %v1610_v16 = vpop.f32.mrf.mxu0  ;;  %v1682_v17 = vpop.f32.mrf.mxu1 }
 0x136   :  { %v2196_v18 = vadd.f32 %v1682_v17, %v1681_v15  ;;  %v1611_v4 = vadd.f32 %v1610_v16, %v1609_v14  ;;  %v768_v15 = vld [vmem:[#allocation2 + $0x20] sm:$0xff] }
 0x137   :  { %v1612_v19 = vpop.f32.mrf.mxu0  ;;  %v1684_v20 = vpop.f32.mrf.mxu1 }
 0x139   :  { %v1613_v21 = vpop.f32.mrf.mxu0  ;;  %v1685_v22 = vpop.f32.mrf.mxu1 }
 0x13a   :  { %v2198_v23 = vadd.f32 %v1685_v22, %v1684_v20  ;;  %v1614_v49 = vadd.f32 %v1613_v21, %v1612_v19  ;;  %v770_v20 = vld [vmem:[#allocation2 + $0x30] sm:$0xff] }
 0x13b   :  { %v1615_v24 = vpop.f32.mrf.mxu0  ;;  %v1687_v25 = vpop.f32.mrf.mxu1 }
 0x13c   :  { %v501_v1 = vadd.f32 %v1614_v49, %v2203_v30 }
 0x13d   :  { %v1616_v28 = vpop.f32.mrf.mxu0  ;;  %v1688_v29 = vpop.f32.mrf.mxu1 }
 0x13e   :  { %v2205_v32 = vadd.f32 %v1688_v29, %v1687_v25  ;;  %v1617_v56 = vadd.f32 %v1616_v28, %v1615_v24  ;;  %v771_v24 = vld [vmem:[#allocation2 + $0x38] sm:$0xff] }
 0x13f   :  { %v1618_v33 = vpop.f32.mrf.mxu0  ;;  %v1780_v34 = vpop.f32.mrf.mxu1 }
 0x140   :  { %v646_v40 = vadd.f32 %v1780_v34, %v485_v35  ;;  %v504_v17 = vadd.f32 %v1617_v56, %v2203_v30  ;;  %v496_v34 = vadd.f32 %v1611_v4, %v2203_v30 }
 0x141   :  { %v1619_v38 = vpop.f32.mrf.mxu0  ;;  %v637_v39 = vpop.f32.mrf.mxu1 }
 0x142   :  { %v638_v41 = vadd.f32 %v637_v39, %v477_v36  ;;  %v798_v57 = vadd.f32 %v766_v44, %v646_v40  ;;  %v1620_v25 = vadd.f32 %v1619_v38, %v1618_v33 }
 0x143   :  { %v1621_v45 = vpop.f32.mrf.mxu0  ;;  %v1781_v46 = vpop.f32.mrf.mxu1 }
 0x144   :  { %v649_v50 = vadd.f32 %v1781_v46, %v488_v43  ;;  %v796_v51 = vadd.f32 %v764_v42, %v638_v41  ;;  %v830_v10 = vmax.f32 %v798_v57, 0.0  ;;  %v769_v41 = vld [vmem:[#allocation2 + $0x28] sm:$0xff]  ;;  %v509_v48 = vadd.f32 %v1620_v25, %v2203_v30 }
 0x145   :  { %v1622_v52 = vpop.f32.mrf.mxu0  ;;  %v640_v54 = vpop.f32.mrf.mxu1 }
 0x146   :  { %v799_v58 = vadd.f32 %v767_v47, %v649_v50  ;;  %v641_v60 = vadd.f32 %v640_v54, %v480_v53  ;;  %v828_v5 = vmax.f32 %v796_v51, 0.0  ;;  %v2221_v36 = vadd.f32 %v830_v10, %v798_v57 }
 0x147   :  { %v1624_v62 = vpop.f32.mrf.mxu0  ;;  %v1784_v63 = vpop.f32.mrf.mxu1  ;;  %v1623_v49 = vadd.f32 %v1622_v52, %v1621_v45 }
 0x148   :  { %v831_v0 = vmax.f32 %v799_v58, 0.0  ;;  %v797_v6 = vadd.f32 %v765_v59, %v641_v60  ;;  %v662_v11 = vadd.f32 %v1784_v63, %v501_v1  ;;  %v2216_v16 = vadd.f32 %v828_v5, %v796_v51  ;;  %v772_v59 = vld [vmem:[#allocation2 + $0x40] sm:$0xff]  ;;  %v774_v63 = vld [vmem:[#allocation2 + $0x50] sm:$0xff] }
 0x149   :  { %v1625_v7 = vpop.f32.mrf.mxu0  ;;  %v653_v9 = vpop.f32.mrf.mxu1  ;;  %v512_v10 = vadd.f32 %v1623_v49, %v2203_v30 }
 0x14a   :  { %v654_v12 = vadd.f32 %v653_v9, %v493_v2  ;;  %v829_v19 = vmax.f32 %v797_v6, 0.0  ;;  %v2214_v26 = vadd.f32 %v831_v0, %v799_v58  ;;  %v1626_v27 = vadd.f32 %v1625_v7, %v1624_v62  ;;  %v775_v2 = vld [vmem:[#allocation2 + $0x58] sm:$0xff] }
 0x14b   :  { %v1627_v21 = vpop.f32.mrf.mxu0  ;;  %v1785_v22 = vpop.f32.mrf.mxu1  ;;  %v802_v37 = vadd.f32 %v770_v20, %v662_v11 }
 0x14c   :  { %v665_v14 = vadd.f32 %v1785_v22, %v504_v17  ;;  %v2218_v28 = vadd.f32 %v829_v19, %v797_v6  ;;  %v800_v29 = vadd.f32 %v768_v15, %v654_v12  ;;  %v893_v44 = vpack.c.bf16 %v2214_v26, %v2221_v36  ;;  %v773_v19 = vld [vmem:[#allocation2 + $0x48] sm:$0xff] }
 0x14d   :  { %v1628_v31 = vpop.f32.mrf.mxu0  ;;  %v656_v35 = vpop.f32.mrf.mxu1  ;;  %v517_v47 = vadd.f32 %v1626_v27, %v2203_v30  ;;  %v834_v56 = vmax.f32 %v802_v37, 0.0 }
 0x14e   :  { %v803_v39 = vadd.f32 %v771_v24, %v665_v14  ;;  %v1629_v40 = vadd.f32 %v1628_v31, %v1627_v21  ;;  %v657_v33 = vadd.f32 %v656_v35, %v496_v34  ;;  %v892_v43 = vpack.c.bf16 %v2218_v28, %v2216_v16 }
 0x14f   :  { %v1630_v38 = vpop.f32.mrf.mxu0  ;;  %v1788_v42 = vpop.f32.mrf.mxu1  ;;  %v832_v50 = vmax.f32 %v800_v29, 0.0  ;;  %v2237_v12 = vadd.f32 %v834_v56, %v802_v37  ;;  %v777_v56 = vld [vmem:[#allocation2 + $0x68] sm:$0xff] }
 0x150   :  { %v835_v46 = vmax.f32 %v803_v39, 0.0  ;;  %v801_v51 = vadd.f32 %v769_v41, %v657_v33  ;;  %1826 = vmatprep.mubr.bf16.mxu1 %v892_v43  ;;  %v678_v57 = vadd.f32 %v1788_v42, %v517_v47  ;;  %v520_v60 = vadd.f32 %v1629_v40, %v2203_v30 }
 0x151   :  { %v1631_v53 = vpop.f32.mrf.mxu0  ;;  %v669_v54 = vpop.f32.mrf.mxu1  ;;  %1827 = vmatmul.mubr.bf16.vlgmr.msra.gmra.mxu1 %v893_v44  ;;  %v2232_v5 = vadd.f32 %v832_v50, %v800_v29 }
 0x152   :  { %v670_v58 = vadd.f32 %v669_v54, %v509_v48  ;;  %v833_v62 = vmax.f32 %v801_v51, 0.0  ;;  %v2230_v4 = vadd.f32 %v835_v46, %v803_v39  ;;  %v1632_v45 = vadd.f32 %v1631_v53, %v1630_v38  ;;  %v776_v39 = vld [vmem:[#allocation2 + $0x60] sm:$0xff] }
 0x153   :  { %v1633_v0 = vpop.f32.mrf.mxu0  ;;  %v1789_v1 = vpop.f32.mrf.mxu1  ;;  %v806_v15 = vadd.f32 %v774_v63, %v678_v57 }
 0x154   :  { %v681_v52 = vadd.f32 %v1789_v1, %v520_v60  ;;  %v2234_v6 = vadd.f32 %v833_v62, %v801_v51  ;;  %v804_v7 = vadd.f32 %v772_v59, %v670_v58  ;;  %v525_v14 = vadd.f32 %v1632_v45, %v2203_v30  ;;  %v778_v51 = vld [vmem:[#allocation2 + $0x70] sm:$0xff] }
 0x155   :  { %v1634_v9 = vpop.f32.mrf.mxu0  ;;  %v672_v11 = vpop.f32.mrf.mxu1  ;;  %v895_v29 = vpack.c.bf16 %v2230_v4, %v2237_v12  ;;  %v838_v40 = vmax.f32 %v806_v15, 0.0 }
 0x156   :  { %v807_v17 = vadd.f32 %v775_v2, %v681_v52  ;;  %v673_v20 = vadd.f32 %v672_v11, %v512_v10  ;;  %v894_v24 = vpack.c.bf16 %v2234_v6, %v2232_v5  ;;  %v1635_v27 = vadd.f32 %v1634_v9, %v1633_v0  ;;  %v779_v9 = vld [vmem:[#allocation2 + $0x78] sm:$0xff] }
 0x157   :  { %v1636_v21 = vpop.f32.mrf.mxu0  ;;  %v1792_v22 = vpop.f32.mrf.mxu1  ;;  %v836_v31 = vmax.f32 %v804_v7, 0.0  ;;  %v2252_v57 = vadd.f32 %v838_v40, %v806_v15 }
 0x158   :  { %v839_v25 = vmax.f32 %v807_v17, 0.0  ;;  %v805_v34 = vadd.f32 %v773_v19, %v673_v20  ;;  %1830 = vmatprep.mubr.bf16.mxu1 %v894_v24  ;;  %v528_v48 = vadd.f32 %v1635_v27, %v2203_v30 }
 0x159   :  { %v1637_v35 = vpop.f32.mrf.mxu0  ;;  %v685_v37 = vpop.f32.mrf.mxu1  ;;  %1831 = vmatmul.mubr.bf16.gmra.mxu1 %v895_v29  ;;  %v2248_v49 = vadd.f32 %v836_v31, %v804_v7 }
 0x15a   :  { %v1638_v41 = vadd.f32 %v1637_v35, %v1636_v21  ;;  %v686_v33 = vadd.f32 %v685_v37, %v525_v14  ;;  %v837_v38 = vmax.f32 %v805_v34, 0.0  ;;  %v2244_v44 = vadd.f32 %v839_v25, %v807_v17  ;;  %v780_v35 = vld [vmem:[#allocation2 + $0x80] sm:$0xff] }
 0x15b   :  { %v1639_v42 = vpop.f32.mrf.mxu0  ;;  %v1793_v43 = vpop.f32.mrf.mxu1 }
 0x15c   :  { %v533_v46 = vadd.f32 %v1638_v41, %v2203_v30  ;;  %v808_v47 = vadd.f32 %v776_v39, %v686_v33  ;;  %v2250_v50 = vadd.f32 %v837_v38, %v805_v34  ;;  %v897_v7 = vpack.c.bf16 %v2244_v44, %v2252_v57 }
 0x15d   :  { %v1640_v53 = vpop.f32.mrf.mxu0  ;;  %v688_v54 = vpop.f32.mrf.mxu1 }
 0x15e   :  { %v694_v58 = vadd.f32 %v1792_v22, %v533_v46  ;;  %v1641_v59 = vadd.f32 %v1640_v53, %v1639_v42  ;;  %v689_v60 = vadd.f32 %v688_v54, %v528_v48  ;;  %v840_v62 = vmax.f32 %v808_v47, 0.0 }
 0x15f   :  { %v1642_v63 = vpop.f32.mrf.mxu0  ;;  %v1796_v0 = vpop.f32.mrf.mxu1  ;;  %v896_v1 = vpack.c.bf16 %v2250_v50, %v2248_v49 }
 0x160   :  { %v810_v2 = vadd.f32 %v778_v51, %v694_v58  ;;  %v536_v45 = vadd.f32 %v1641_v59, %v2203_v30  ;;  %v809_v52 = vadd.f32 %v777_v56, %v689_v60  ;;  %v2259_v20 = vadd.f32 %v840_v62, %v808_v47  ;;  %v781_v47 = vld [vmem:[#allocation2 + $0x88] sm:$0xff] }
 0x161   :  { %1834 = vmatprep.mubr.bf16.mxu1 %v896_v1  ;;  %v1643_v10 = vpop.f32.mrf.mxu0  ;;  %v701_v11 = vpop.f32.mrf.mxu1 }
 0x162   :  { %v697_v15 = vadd.f32 %v1793_v43, %v536_v45  ;;  %v841_v17 = vmax.f32 %v809_v52, 0.0  ;;  %v1644_v19 = vadd.f32 %v1643_v10, %v1642_v63  ;;  %1835 = vmatmul.mubr.bf16.gmra.mxu1 %v897_v7  ;;  %v842_v14 = vmax.f32 %v810_v2, 0.0  ;;  %v782_v7 = vld [vmem:[#allocation2 + $0x90] sm:$0xff] }
 0x163   :  { %v1645_v21 = vpop.f32.mrf.mxu0  ;;  %v1797_v22 = vpop.f32.mrf.mxu1 }
 0x164   :  { %v811_v24 = vadd.f32 %v779_v9, %v697_v15  ;;  %v2261_v25 = vadd.f32 %v841_v17, %v809_v52  ;;  %v541_v27 = vadd.f32 %v1644_v19, %v2203_v30  ;;  %v2269_v42 = vadd.f32 %v842_v14, %v810_v2 }
 0x165   :  { %v1646_v29 = vpop.f32.mrf.mxu0  ;;  %v704_v31 = vpop.f32.mrf.mxu1 }
 0x166   :  { %v702_v34 = vadd.f32 %v701_v11, %v541_v27  ;;  %v1647_v37 = vadd.f32 %v1646_v29, %v1645_v21  ;;  %v898_v39 = vpack.c.bf16 %v2261_v25, %v2259_v20  ;;  %v843_v40 = vmax.f32 %v811_v24, 0.0 }
 0x167   :  { %v1648_v41 = vpop.f32.mrf.mxu0  ;;  %v2266_v33 = vpop.f32.mrf.mxu1 }
 0x168   :  { %v544_v38 = vadd.f32 %v1647_v37, %v2203_v30  ;;  %1838 = vmatprep.mubr.bf16.mxu1 %v898_v39  ;;  %v2271_v43 = vadd.f32 %v843_v40, %v811_v24  ;;  %v812_v46 = vadd.f32 %v780_v35, %v702_v34  ;;  %v783_v24 = vld [vmem:[#allocation2 + $0x98] sm:$0xff] }
 0x169   :  { %v1649_v48 = vpop.f32.mrf.mxu0  ;;  %v717_v51 = vpop.f32.mrf.mxu1 }
 0x16a   :  { %v705_v53 = vadd.f32 %v704_v31, %v544_v38  ;;  %v1650_v54 = vadd.f32 %v1649_v48, %v1648_v41  ;;  %v899_v56 = vpack.c.bf16 %v2271_v43, %v2269_v42  ;;  %v844_v63 = vmax.f32 %v812_v46, 0.0 }
 0x16b   :  { %v1651_v58 = vpop.f32.mrf.mxu0  ;;  %v2275_v59 = vpop.f32.mrf.mxu1 }
 0x16c   :  { %v813_v60 = vadd.f32 %v781_v47, %v705_v53  ;;  %v549_v62 = vadd.f32 %v1650_v54, %v2203_v30  ;;  %1839 = vmatmul.mubr.bf16.gmra.mxu1 %v899_v56  ;;  %v2283_v19 = vadd.f32 %v844_v63, %v812_v46  ;;  %v784_v47 = vld [vmem:[#allocation2 + $0xa0] sm:$0xff] }
 0x16d   :  { %v1652_v1 = vpop.f32.mrf.mxu0  ;;  %v720_v2 = vpop.f32.mrf.mxu1 }
 0x16e   :  { %v845_v45 = vmax.f32 %v813_v60, 0.0  ;;  %v710_v52 = vadd.f32 %v1796_v0, %v549_v62  ;;  %v1653_v9 = vadd.f32 %v1652_v1, %v1651_v58  ;;  %v576_v62 = vadd.f32 %v2188_v61, %v2203_v30 }
 0x16f   :  { %v1654_v10 = vpop.f32.mrf.mxu0  ;;  %v2278_v11 = vpop.f32.mrf.mxu1 }
 0x170   :  { %v2280_v15 = vadd.f32 %v845_v45, %v813_v60  ;;  %v552_v17 = vadd.f32 %v1653_v9, %v2203_v30  ;;  %v814_v21 = vadd.f32 %v782_v7, %v710_v52  ;;  %v785_v60 = vld [vmem:[#allocation2 + $0xa8] sm:$0xff]  ;;  %v573_v9 = vadd.f32 %v2186_v55, %v2203_v30 }
 0x171   :  { %v1655_v27 = vpop.f32.mrf.mxu0  ;;  %v733_v14 = vpop.f32.mrf.mxu1 }
 0x172   :  { %v713_v29 = vadd.f32 %v1797_v22, %v552_v17  ;;  %v1656_v31 = vadd.f32 %v1655_v27, %v1654_v10  ;;  %v900_v0 = vpack.c.bf16 %v2280_v15, %v2283_v19  ;;  %v846_v38 = vmax.f32 %v814_v21, 0.0 }
 0x173   :  { %v1657_v34 = vpop.f32.mrf.mxu0  ;;  %v1805_v35 = vpop.f32.mrf.mxu1 }
 0x174   :  { %v815_v37 = vadd.f32 %v783_v24, %v713_v29  ;;  %v557_v39 = vadd.f32 %v1656_v31, %v2203_v30  ;;  %1842 = vmatprep.mubr.bf16.mxu1 %v900_v0  ;;  %v2293_v45 = vadd.f32 %v846_v38, %v814_v21  ;;  %v789_v29 = vld [vmem:[#allocation2 + $0xc8] sm:$0xff]  ;;  %v786_v21 = vld [vmem:[#allocation2 + $0xb0] sm:$0xff]  ;;  %v584_v38 = vadd.f32 %v2192_v8, %v2203_v30  ;;  %v791_v8 = vld [vmem:[#allocation2 + $0xd8] sm:$0xff] }
 0x175   :  { %v1658_v40 = vpop.f32.mrf.mxu0  ;;  %v736_v41 = vpop.f32.mrf.mxu1 }
 0x176   :  { %v718_v46 = vadd.f32 %v717_v51, %v557_v39  ;;  %v1659_v48 = vadd.f32 %v1658_v40, %v1657_v34  ;;  %v847_v22 = vmax.f32 %v815_v37, 0.0  ;;  %v737_v10 = vadd.f32 %v736_v41, %v576_v62 }
 0x177   :  { %v1660_v53 = vpop.f32.mrf.mxu0  ;;  %v2288_v54 = vpop.f32.mrf.mxu1  ;;  %v734_v34 = vadd.f32 %v733_v14, %v573_v9  ;;  %v592_v14 = vadd.f32 %v2196_v18, %v2203_v30  ;;  %v745_v62 = vadd.f32 %v1805_v35, %v584_v38  ;;  %v795_v38 = vld [vmem:[#allocation2 + $0xf8] sm:$0xff] }
 0x178   :  { %v560_v56 = vadd.f32 %v1659_v48, %v2203_v30  ;;  %v816_v58 = vadd.f32 %v784_v47, %v718_v46  ;;  %v2295_v52 = vadd.f32 %v847_v22, %v815_v37  ;;  %v821_v55 = vadd.f32 %v789_v29, %v737_v10  ;;  %v787_v22 = vld [vmem:[#allocation2 + $0xb8] sm:$0xff] }
 0x179   :  { %v1661_v63 = vpop.f32.mrf.mxu0  ;;  %v749_v1 = vpop.f32.mrf.mxu1  ;;  %v823_v35 = vadd.f32 %v791_v8, %v745_v62 }
 0x17a   :  { %v721_v51 = vadd.f32 %v720_v2, %v560_v56  ;;  %v1662_v7 = vadd.f32 %v1661_v63, %v1660_v53  ;;  %v901_v24 = vpack.c.bf16 %v2295_v52, %v2293_v45  ;;  %v848_v37 = vmax.f32 %v816_v58, 0.0  ;;  %v788_v2 = vld [vmem:[#allocation2 + $0xc0] sm:$0xff] }
 0x17b   :  { %v1663_v17 = vpop.f32.mrf.mxu0  ;;  %v1809_v31 = vpop.f32.mrf.mxu1  ;;  %v820_v53 = vadd.f32 %v788_v2, %v734_v34 }
 0x17c   :  { %v817_v27 = vadd.f32 %v785_v60, %v721_v51  ;;  %v565_v61 = vadd.f32 %v1662_v7, %v2203_v30  ;;  %1843 = vmatmul.mubr.bf16.gmra.mxu1 %v901_v24  ;;  %v2308_v56 = vadd.f32 %v848_v37, %v816_v58  ;;  %v853_v51 = vmax.f32 %v821_v55, 0.0 }
 0x17d   :  { %v1664_v0 = vpop.f32.mrf.mxu0  ;;  %v752_v48 = vpop.f32.mrf.mxu1  ;;  %v589_v7 = vadd.f32 %v2194_v13, %v2203_v30  ;;  %v852_v29 = vmax.f32 %v820_v53, 0.0 }
 0x17e   :  { %v726_v39 = vadd.f32 %v2266_v33, %v565_v61  ;;  %v1665_v40 = vadd.f32 %v1664_v0, %v1663_v17  ;;  %v849_v41 = vmax.f32 %v817_v27, 0.0  ;;  %v581_v33 = vadd.f32 %v2190_v3, %v2203_v30  ;;  %v793_v17 = vld [vmem:[#allocation2 + $0xe8] sm:$0xff] }
 0x17f   :  { %v753_v9 = vadd.f32 %v752_v48, %v592_v14  ;;  %v750_v3 = vadd.f32 %v749_v1, %v589_v7  ;;  %v2320_v34 = vadd.f32 %v853_v51, %v821_v55  ;;  %v600_v0 = vadd.f32 %v2205_v32, %v2203_v30 }
 0x180   :  { %v818_v46 = vadd.f32 %v786_v21, %v726_v39  ;;  %v568_v47 = vadd.f32 %v1665_v40, %v2203_v30  ;;  %v2310_v60 = vadd.f32 %v849_v41, %v817_v27  ;;  %v742_v18 = vadd.f32 %v2278_v11, %v581_v33  ;;  %v790_v27 = vld [vmem:[#allocation2 + $0xd0] sm:$0xff] }
 0x181   :  { %v825_v21 = vadd.f32 %v793_v17, %v753_v9  ;;  %v2328_v2 = vadd.f32 %v852_v29, %v820_v53  ;;  %v855_v40 = vmax.f32 %v823_v35, 0.0  ;;  %v597_v1 = vadd.f32 %v2198_v23, %v2203_v30  ;;  %v794_v53 = vld [vmem:[#allocation2 + $0xf0] sm:$0xff]  ;;  %v1973_v17 = vld [vmem:[#allocation10] sm:$0xff]  }
 0x182   :  { %v729_v63 = vadd.f32 %v2275_v59, %v568_v47  ;;  %v902_v10 = vpack.c.bf16 %v2310_v60, %v2308_v56  ;;  %v850_v24 = vmax.f32 %v818_v46, 0.0  ;;  %v792_v59 = vld [vmem:[#allocation2 + $0xe0] sm:$0xff]  ;;  %v822_v13 = vadd.f32 %v790_v27, %v742_v18  ;;  %v1971_v9 = vld [vmem:[#allocation10 + $0x10] sm:$0xff]  }
 0x183   :  { %v824_v39 = vadd.f32 %v792_v59, %v750_v3  ;;  %v761_v41 = vadd.f32 %v1809_v31, %v600_v0  ;;  %v857_v47 = vmax.f32 %v825_v21, 0.0  ;;  %v904_v32 = vpack.c.bf16 %v2320_v34, %v2328_v2  ;;  %1868 = vmatprep.subr.bf16.mxu0 %v1971_v9 }
 0x184   :  { %v819_v58 = vadd.f32 %v787_v22, %v729_v63  ;;  %1846 = vmatprep.mubr.bf16.mxu1 %v902_v10  ;;  %v2324_v37 = vadd.f32 %v850_v24, %v818_v46  ;;  %v854_v46 = vmax.f32 %v822_v13, 0.0  ;;  %v758_v48 = vadd.f32 %v2288_v54, %v597_v1  ;;  %1869 = vmatpush3.bf16.msra.mxu0 %v1971_v9  ;;  %v2358_v24 = vld [vmem:[%s2472_s5] ss:$0 sm:$0xff] }
 0x185   :  { %v856_v22 = vmax.f32 %v824_v39, 0.0  ;;  %v2337_v14 = vadd.f32 %v855_v40, %v823_v35  ;;  %v827_v33 = vadd.f32 %v795_v38, %v761_v41  ;;  %v2339_v23 = vadd.f32 %v857_v47, %v825_v21 }
 0x186   :  { %v851_v61 = vmax.f32 %v819_v58, 0.0  ;;  %v2341_v30 = vadd.f32 %v854_v46, %v822_v13  ;;  %v826_v31 = vadd.f32 %v794_v53, %v758_v48 }
 0x187   :  { %v2343_v62 = vadd.f32 %v856_v22, %v824_v39  ;;  %v859_v63 = vmax.f32 %v827_v33, 0.0 }
 0x188   :  { %v2326_v11 = vadd.f32 %v851_v61, %v819_v58  ;;  %v905_v8 = vpack.c.bf16 %v2337_v14, %v2341_v30  ;;  %v858_v51 = vmax.f32 %v826_v31, 0.0  ;;  %v1972_v58 = vld [vmem:[#allocation10 + $0x8] sm:$0xff]  }
 0x189   :  { %v906_v54 = vpack.c.bf16 %v2339_v23, %v2343_v62  ;;  %v2349_v7 = vadd.f32 %v859_v63, %v827_v33  ;;  %1870 = vmatprep.subr.bf16.mxu0 %v1972_v58 }
 0x18a   :  { %v903_v55 = vpack.c.bf16 %v2326_v11, %v2324_v37  ;;  %v2351_v10 = vadd.f32 %v858_v51, %v826_v31  ;;  %1871 = vmatpush3.bf16.msra.mxu0 %v1972_v58 }
 0x18b   :  { %1872 = vmatprep.subr.bf16.mxu0 %v1973_v17 }
 0x18c   :  { %1847 = vmatmul.mubr.bf16.gmra.mxu1 %v903_v55  ;;  %v907_v18 = vpack.c.bf16 %v2349_v7, %v2351_v10 }
 0x18d   :  { %1850 = vmatprep.mubr.bf16.mxu1 %v904_v32 }
 0x18e   :  { %1873 = vmatpush3.bf16.msra.mxu0 %v1973_v17 }
 0x194   :  { %1851 = vmatmul.mubr.bf16.gmra.mxu1 %v905_v8 }
 0x195   :  { %1854 = vmatprep.mubr.bf16.mxu1 %v906_v54 }
 0x19c   :  { %1855 = vmatmul.mubr.bf16.gmra.mxu1 %v907_v18 }
 0x211   :  { %v1828_v27 = vpop.f32.mrf.mxu1 }
 0x212   :  { %v1022_v29 = vadd.f32 %v1828_v27, %v2358_v24 }
 0x213   :  { %v1013_v3 = vpop.f32.mrf.mxu1 }
 0x214   :  { %v1014_v35 = vadd.f32 %v2358_v24, %v1013_v3  ;;  %v1142_v13 = vadd.f32 %v1022_v29, %v2221_v36 }
 0x215   :  { %v1829_v59 = vpop.f32.mrf.mxu1 }
 0x216   :  { %v1140_v61 = vadd.f32 %v1014_v35, %v2216_v16  ;;  %v1025_v21 = vadd.f32 %v1829_v59, %v2358_v24  ;;  %v1174_v47 = vmax.f32 %v1142_v13, 0.0 }
 0x217   :  { %v1016_v0 = vpop.f32.mrf.mxu1 }
 0x218   :  { %v1143_v39 = vadd.f32 %v1025_v21, %v2214_v26  ;;  %v1017_v40 = vadd.f32 %v2358_v24, %v1016_v0  ;;  %v1172_v41 = vmax.f32 %v1140_v61, 0.0  ;;  %v1206_v31 = vadd.f32 %v1174_v47, %v1142_v13 }
 0x219   :  { %v1832_v1 = vpop.f32.mrf.mxu1 }
 0x21a   :  { %v1175_v55 = vmax.f32 %v1143_v39, 0.0  ;;  %v1141_v38 = vadd.f32 %v1017_v40, %v2218_v28  ;;  %v1038_v48 = vadd.f32 %v1832_v1, %v2358_v24  ;;  %v1204_v36 = vadd.f32 %v1172_v41, %v1140_v61 }
 0x21b   :  { %v1029_v32 = vpop.f32.mrf.mxu1 }
 0x21c   :  { %v1173_v46 = vmax.f32 %v1141_v38, 0.0  ;;  %v1030_v16 = vadd.f32 %v2358_v24, %v1029_v32  ;;  %v1207_v53 = vadd.f32 %v1175_v55, %v1143_v39  ;;  %v1146_v54 = vadd.f32 %v1038_v48, %v2237_v12 }
 0x21d   :  { %v1833_v22 = vpop.f32.mrf.mxu1 }
 0x21e   :  { %v1205_v33 = vadd.f32 %v1173_v46, %v1141_v38  ;;  %v1144_v26 = vadd.f32 %v1030_v16, %v2232_v5  ;;  %v1041_v63 = vadd.f32 %v1833_v22, %v2358_v24  ;;  %v1237_v9 = vpack.c.bf16 %v1207_v53, %v1206_v31 }
 0x21f   :  { %v1032_v8 = vpop.f32.mrf.mxu1  ;;  %v1178_v5 = vmax.f32 %v1146_v54, 0.0 }
 0x220   :  { %v1033_v28 = vadd.f32 %v2358_v24, %v1032_v8  ;;  %v1236_v51 = vpack.c.bf16 %v1205_v33, %v1204_v36  ;;  %v1147_v18 = vadd.f32 %v1041_v63, %v2230_v4  ;;  %v1176_v27 = vmax.f32 %v1144_v26, 0.0 }
 0x221   :  { %v1210_v40 = vadd.f32 %v1178_v5, %v1146_v54 }
 0x222   :  { %v1836_v58 = vpop.f32.mrf.mxu1  ;;  %v1145_v17 = vadd.f32 %v1033_v28, %v2234_v6  ;;  %1874 = vmatprep.mubr.bf16.mxu0 %v1236_v51  ;;  %v1179_v29 = vmax.f32 %v1147_v18, 0.0  ;;  %v1208_v39 = vadd.f32 %v1176_v27, %v1144_v26 }
 0x223   :  { %1875 = vmatmul.mubr.bf16.vlgmr.msra.gmra.mxu0 %v1237_v9  ;;  %v1054_v59 = vadd.f32 %v1836_v58, %v2358_v24 }
 0x224   :  { %v1045_v3 = vpop.f32.mrf.mxu1  ;;  %v1177_v35 = vmax.f32 %v1145_v17, 0.0  ;;  %v1211_v21 = vadd.f32 %v1179_v29, %v1147_v18 }
 0x225   :  { %v1046_v12 = vadd.f32 %v2358_v24, %v1045_v3  ;;  %v1150_v1 = vadd.f32 %v1054_v59, %v2252_v57 }
 0x226   :  { %v1837_v61 = vpop.f32.mrf.mxu1  ;;  %v1209_v13 = vadd.f32 %v1177_v35, %v1145_v17  ;;  %v1239_v48 = vpack.c.bf16 %v1211_v21, %v1210_v40 }
 0x227   :  { %v1148_v0 = vadd.f32 %v1046_v12, %v2248_v49  ;;  %v1057_v4 = vadd.f32 %v1837_v61, %v2358_v24  ;;  %v1182_v49 = vmax.f32 %v1150_v1, 0.0 }
 0x228   :  { %v1048_v6 = vpop.f32.mrf.mxu1  ;;  %v1238_v38 = vpack.c.bf16 %v1209_v13, %v1208_v39 }
 0x229   :  { %v1151_v41 = vadd.f32 %v1057_v4, %v2244_v44  ;;  %v1049_v55 = vadd.f32 %v2358_v24, %v1048_v6  ;;  %v1180_v47 = vmax.f32 %v1148_v0, 0.0  ;;  %v1214_v63 = vadd.f32 %v1182_v49, %v1150_v1 }
 0x22a   :  { %1878 = vmatprep.mubr.bf16.mxu0 %v1238_v38 }
 0x22b   :  { %v1183_v32 = vmax.f32 %v1151_v41, 0.0  ;;  %v1149_v46 = vadd.f32 %v1049_v55, %v2250_v50  ;;  %1879 = vmatmul.mubr.bf16.gmra.mxu0 %v1239_v48  ;;  %v1212_v33 = vadd.f32 %v1180_v47, %v1148_v0 }
 0x22c   :  { %v1840_v16 = vpop.f32.mrf.mxu1 }
 0x22d   :  { %v1181_v53 = vmax.f32 %v1149_v46, 0.0  ;;  %v1070_v22 = vadd.f32 %v1840_v16, %v2358_v24  ;;  %v1215_v57 = vadd.f32 %v1183_v32, %v1151_v41 }
 0x22e   :  { %v1061_v36 = vpop.f32.mrf.mxu1 }
 0x22f   :  { %v1213_v31 = vadd.f32 %v1181_v53, %v1149_v46  ;;  %v1062_v44 = vadd.f32 %v2358_v24, %v1061_v36  ;;  %v1154_v28 = vadd.f32 %v1070_v22, %v2269_v42  ;;  %v1241_v58 = vpack.c.bf16 %v1215_v57, %v1214_v63 }
 0x230   :  { %v1841_v26 = vpop.f32.mrf.mxu1 }
 0x231   :  { %v1152_v8 = vadd.f32 %v1062_v44, %v2259_v20  ;;  %v1073_v50 = vadd.f32 %v1841_v26, %v2358_v24  ;;  %v1240_v54 = vpack.c.bf16 %v1213_v31, %v1212_v33  ;;  %v1186_v3 = vmax.f32 %v1154_v28, 0.0 }
 0x232   :  { %v1064_v51 = vpop.f32.mrf.mxu1 }
 0x233   :  { %v1155_v9 = vadd.f32 %v1073_v50, %v2271_v43  ;;  %v1065_v18 = vadd.f32 %v2358_v24, %v1064_v51  ;;  %1882 = vmatprep.mubr.bf16.mxu0 %v1240_v54  ;;  %v1184_v17 = vmax.f32 %v1152_v8, 0.0  ;;  %v1218_v12 = vadd.f32 %v1186_v3, %v1154_v28 }
 0x234   :  { %1883 = vmatmul.mubr.bf16.gmra.mxu0 %v1241_v58 }
 0x235   :  { %v1187_v27 = vmax.f32 %v1155_v9, 0.0  ;;  %v1153_v29 = vadd.f32 %v1065_v18, %v2261_v25  ;;  %v1216_v35 = vadd.f32 %v1184_v17, %v1152_v8 }
 0x237   :  { %v1185_v5 = vmax.f32 %v1153_v29, 0.0  ;;  %v1219_v20 = vadd.f32 %v1187_v27, %v1155_v9 }
 0x239   :  { %v1217_v59 = vadd.f32 %v1185_v5, %v1153_v29  ;;  %v1243_v42 = vpack.c.bf16 %v1219_v20, %v1218_v12 }
 0x23b   :  { %v1242_v61 = vpack.c.bf16 %v1217_v59, %v1216_v35 }
 0x23c   :  { %v1844_v21 = vpop.f32.mrf.mxu1 }
 0x23d   :  { %1886 = vmatprep.mubr.bf16.mxu0 %v1242_v61  ;;  %v1086_v43 = vadd.f32 %v1844_v21, %v2358_v24 }
 0x23e   :  { %1887 = vmatmul.mubr.bf16.gmra.mxu0 %v1243_v42  ;;  %v1077_v13 = vpop.f32.mrf.mxu1 }
 0x23f   :  { %v1078_v0 = vadd.f32 %v2358_v24, %v1077_v13  ;;  %v1158_v6 = vadd.f32 %v1086_v43, %v2293_v45 }
 0x240   :  { %v1845_v4 = vpop.f32.mrf.mxu1 }
 0x241   :  { %v1156_v25 = vadd.f32 %v1078_v0, %v2283_v19  ;;  %v1089_v39 = vadd.f32 %v1845_v4, %v2358_v24  ;;  %v1190_v32 = vmax.f32 %v1158_v6, 0.0 }
 0x242   :  { %v1080_v40 = vpop.f32.mrf.mxu1 }
 0x243   :  { %v1159_v1 = vadd.f32 %v1089_v39, %v2295_v52  ;;  %v1081_v41 = vadd.f32 %v2358_v24, %v1080_v40  ;;  %v1188_v55 = vmax.f32 %v1156_v25, 0.0  ;;  %v1222_v53 = vadd.f32 %v1190_v32, %v1158_v6 }
 0x245   :  { %v1191_v38 = vmax.f32 %v1159_v1, 0.0  ;;  %v1157_v47 = vadd.f32 %v1081_v41, %v2280_v15  ;;  %v1220_v16 = vadd.f32 %v1188_v55, %v1156_v25 }
 0x247   :  { %v1189_v46 = vmax.f32 %v1157_v47, 0.0  ;;  %v1223_v48 = vadd.f32 %v1191_v38, %v1159_v1 }
 0x249   :  { %v1221_v49 = vadd.f32 %v1189_v46, %v1157_v47  ;;  %v1245_v36 = vpack.c.bf16 %v1223_v48, %v1222_v53 }
 0x24b   :  { %v1244_v22 = vpack.c.bf16 %v1221_v49, %v1220_v16 }
 0x24c   :  { %v1848_v19 = vpop.f32.mrf.mxu1 }
 0x24d   :  { %1890 = vmatprep.mubr.bf16.mxu0 %v1244_v22  ;;  %v1102_v33 = vadd.f32 %v1848_v19, %v2358_v24 }
 0x24e   :  { %v1093_v45 = vpop.f32.mrf.mxu1  ;;  %1891 = vmatmul.mubr.bf16.gmra.mxu0 %v1245_v36 }
 0x24f   :  { %v1094_v52 = vadd.f32 %v2358_v24, %v1093_v45  ;;  %v1162_v26 = vadd.f32 %v1102_v33, %v2324_v37 }
 0x250   :  { %v1849_v57 = vpop.f32.mrf.mxu1 }
 0x251   :  { %v1105_v31 = vadd.f32 %v1849_v57, %v2358_v24  ;;  %v1160_v15 = vadd.f32 %v1094_v52, %v2308_v56  ;;  %v1194_v18 = vmax.f32 %v1162_v26, 0.0 }
 0x252   :  { %v1096_v44 = vpop.f32.mrf.mxu1 }
 0x253   :  { %v1163_v63 = vadd.f32 %v1105_v31, %v2326_v11  ;;  %v1097_v8 = vadd.f32 %v2358_v24, %v1096_v44  ;;  %v1192_v51 = vmax.f32 %v1160_v15, 0.0  ;;  %v1226_v35 = vadd.f32 %v1194_v18, %v1162_v26 }
 0x254   :  { %v1852_v50 = vpop.f32.mrf.mxu1 }
 0x255   :  { %v1195_v54 = vmax.f32 %v1163_v63, 0.0  ;;  %v1161_v28 = vadd.f32 %v1097_v8, %v2310_v60  ;;  %v1118_v17 = vadd.f32 %v1852_v50, %v2358_v24  ;;  %v1224_v11 = vadd.f32 %v1192_v51, %v1160_v15 }
 0x256   :  { %v1109_v9 = vpop.f32.mrf.mxu1 }
 0x257   :  { %v1193_v58 = vmax.f32 %v1161_v28, 0.0  ;;  %v1110_v27 = vadd.f32 %v2358_v24, %v1109_v9  ;;  %v1227_v29 = vadd.f32 %v1195_v54, %v1163_v63  ;;  %v1166_v60 = vadd.f32 %v1118_v17, %v2341_v30 }
 0x258   :  { %v1853_v56 = vpop.f32.mrf.mxu1 }
 0x259   :  { %v1225_v3 = vadd.f32 %v1193_v58, %v1161_v28  ;;  %v1121_v37 = vadd.f32 %v1853_v56, %v2358_v24  ;;  %v1164_v5 = vadd.f32 %v1110_v27, %v2328_v2  ;;  %v1247_v13 = vpack.c.bf16 %v1227_v29, %v1226_v35 }
 0x25a   :  { %v1112_v20 = vpop.f32.mrf.mxu1  ;;  %v1198_v25 = vmax.f32 %v1166_v60, 0.0 }
 0x25b   :  { %v1167_v59 = vadd.f32 %v1121_v37, %v2337_v14  ;;  %v1113_v12 = vadd.f32 %v2358_v24, %v1112_v20  ;;  %v1246_v42 = vpack.c.bf16 %v1225_v3, %v1224_v11  ;;  %v1196_v0 = vmax.f32 %v1164_v5, 0.0 }
 0x25c   :  { %v1856_v61 = vpop.f32.mrf.mxu1  ;;  %v1230_v38 = vadd.f32 %v1198_v25, %v1166_v60 }
 0x25d   :  { %v1199_v21 = vmax.f32 %v1167_v59, 0.0  ;;  %v1165_v43 = vadd.f32 %v1113_v12, %v2320_v34  ;;  %1894 = vmatprep.mubr.bf16.mxu0 %v1246_v42  ;;  %v1134_v2 = vadd.f32 %v1856_v61, %v2358_v24  ;;  %v1228_v55 = vadd.f32 %v1196_v0, %v1164_v5 }
 0x25e   :  { %v1125_v4 = vpop.f32.mrf.mxu1  ;;  %1895 = vmatmul.mubr.bf16.gmra.mxu0 %v1247_v13 }
 0x25f   :  { %v1197_v39 = vmax.f32 %v1165_v43, 0.0  ;;  %v1126_v6 = vadd.f32 %v2358_v24, %v1125_v4  ;;  %v1231_v14 = vadd.f32 %v1199_v21, %v1167_v59  ;;  %v1170_v47 = vadd.f32 %v1134_v2, %v2351_v10 }
 0x260   :  { %v1857_v30 = vpop.f32.mrf.mxu1 }
 0x261   :  { %v1229_v40 = vadd.f32 %v1197_v39, %v1165_v43  ;;  %v1168_v1 = vadd.f32 %v1126_v6, %v2343_v62  ;;  %v1137_v41 = vadd.f32 %v1857_v30, %v2358_v24  ;;  %v1249_v19 = vpack.c.bf16 %v1231_v14, %v1230_v38 }
 0x262   :  { %v1128_v34 = vpop.f32.mrf.mxu1  ;;  %v1202_v22 = vmax.f32 %v1170_v47, 0.0 }
 0x263   :  { %v1171_v32 = vadd.f32 %v1137_v41, %v2349_v7  ;;  %v1129_v46 = vadd.f32 %v2358_v24, %v1128_v34  ;;  %v1248_v48 = vpack.c.bf16 %v1229_v40, %v1228_v55  ;;  %v1200_v16 = vmax.f32 %v1168_v1, 0.0  ;;  %v2427_v7 = vld [vmem:[%s2474_s7] ss:$0 sm:$0xff]  ;;  %s2113_s7 = smov [#allocation11]  }
 0x264   :  { %v1234_v52 = vadd.f32 %v1202_v22, %v1170_v47  ;;  %s1521_s13 = sshll.u32 %s2113_s7, 4  ;;  %s1522_s13 = int_to_ptr.vmem [resolvable:$true] %s1521_s13 }
 0x265   :  { %v1203_v49 = vmax.f32 %v1171_v32, 0.0  ;;  %v1169_v53 = vadd.f32 %v1129_v46, %v2339_v23  ;;  %1898 = vmatprep.mubr.bf16.mxu0 %v1248_v48  ;;  %v1232_v36 = vadd.f32 %v1200_v16, %v1168_v1  ;;  %s2074_s14 = scalar_lea.vmem %s1522_s13, 4096  ;;  %p2079_p12 = scmp.lt.s32.totalorder %s1522_s13, %s1522_s13 }
 0x266   :  { %1899 = vmatmul.mubr.bf16.gmra.mxu0 %v1249_v19  ;;  %p2075_p11 = scmp.ne.s32.totalorder %s1522_s13, %s2074_s14  ;;  %p2080_p13 = scmp.lt.s32.totalorder %s2074_s14, %s2074_s14 }
 0x267   :  { %v1201_v62 = vmax.f32 %v1169_v53, 0.0  ;;  %v1235_v45 = vadd.f32 %v1203_v49, %v1171_v32 }
 0x268   :  { %p2081_p0 = por %p2080_p13, %p2079_p12 }
 0x269   :  { %v1233_v33 = vadd.f32 %v1201_v62, %v1169_v53  ;;  %v1251_v10 = vpack.c.bf16 %v1235_v45, %v1234_v52 }
 0x26a   :  { %p2082_p1 = pnand %p2081_p0, %p2075_p11 }
 0x26b   :  { %v1250_v57 = vpack.c.bf16 %v1233_v33, %v1232_v36 }
 0x26d   :  { %1902 = vmatprep.mubr.bf16.mxu0 %v1250_v57 }
 0x26e   :  { %1903 = vmatmul.mubr.bf16.gmra.mxu0 %v1251_v10 }
 0x2e3   :  { %v1876_v24 = vpop.f32.mrf.mxu0 }
 0x2e4   :  { %v1366_v23 = vadd.f32 %v1876_v24, %v2427_v7 }
 0x2e5   :  { %v1357_v31 = vpop.f32.mrf.mxu0 }
 0x2e6   :  { %1486 = vst [vmem:[#allocation11 + $0x10] sm:$0xff] %v1366_v23  ;;  %v1358_v15 = vadd.f32 %v2427_v7, %v1357_v31 }
 0x2e7   :  { %v1877_v44 = vpop.f32.mrf.mxu0 }
 0x2e8   :  { %1484 = vst [vmem:[#allocation11] sm:$0xff] %v1358_v15  ;;  %v1369_v26 = vadd.f32 %v1877_v44, %v2427_v7 }
 0x2e9   :  { %v1360_v63 = vpop.f32.mrf.mxu0 }
 0x2ea   :  { %1487 = vst [vmem:[#allocation11 + $0x18] sm:$0xff] %v1369_v26  ;;  %v1361_v8 = vadd.f32 %v2427_v7, %v1360_v63 }
 0x2eb   :  { %v1880_v50 = vpop.f32.mrf.mxu0 }
 0x2ec   :  { %1485 = vst [vmem:[#allocation11 + $0x8] sm:$0xff] %v1361_v8  ;;  %v1382_v54 = vadd.f32 %v1880_v50, %v2427_v7 }
 0x2ed   :  { %v1373_v28 = vpop.f32.mrf.mxu0 }
 0x2ee   :  { %1490 = vst [vmem:[#allocation11 + $0x30] sm:$0xff] %v1382_v54  ;;  %v1374_v51 = vadd.f32 %v2427_v7, %v1373_v28 }
 0x2ef   :  { %v1881_v9 = vpop.f32.mrf.mxu0 }
 0x2f0   :  { %1488 = vst [vmem:[#allocation11 + $0x20] sm:$0xff] %v1374_v51  ;;  %v1385_v18 = vadd.f32 %v1881_v9, %v2427_v7 }
 0x2f1   :  { %v1376_v58 = vpop.f32.mrf.mxu0 }
 0x2f2   :  { %1491 = vst [vmem:[#allocation11 + $0x38] sm:$0xff] %v1385_v18  ;;  %v1377_v17 = vadd.f32 %v2427_v7, %v1376_v58 }
 0x2f4   :  { %v1884_v27 = vpop.f32.mrf.mxu0  ;;  %1489 = vst [vmem:[#allocation11 + $0x28] sm:$0xff] %v1377_v17 }
 0x2f5   :  { %v1398_v56 = vadd.f32 %v1884_v27, %v2427_v7 }
 0x2f6   :  { %v1389_v29 = vpop.f32.mrf.mxu0 }
 0x2f7   :  { %1494 = vst [vmem:[#allocation11 + $0x50] sm:$0xff] %v1398_v56  ;;  %v1390_v3 = vadd.f32 %v2427_v7, %v1389_v29 }
 0x2f8   :  { %v1885_v37 = vpop.f32.mrf.mxu0 }
 0x2f9   :  { %1492 = vst [vmem:[#allocation11 + $0x40] sm:$0xff] %v1390_v3  ;;  %v1401_v11 = vadd.f32 %v1885_v37, %v2427_v7 }
 0x2fa   :  { %v1392_v5 = vpop.f32.mrf.mxu0 }
 0x2fb   :  { %1495 = vst [vmem:[#allocation11 + $0x58] sm:$0xff] %v1401_v11  ;;  %v1393_v20 = vadd.f32 %v2427_v7, %v1392_v5 }
 0x2fd   :  { %1493 = vst [vmem:[#allocation11 + $0x48] sm:$0xff] %v1393_v20 }
 0x2fe   :  { %v1888_v35 = vpop.f32.mrf.mxu0 }
 0x2ff   :  { %v1414_v60 = vadd.f32 %v1888_v35, %v2427_v7 }
 0x300   :  { %v1405_v59 = vpop.f32.mrf.mxu0 }
 0x301   :  { %1498 = vst [vmem:[#allocation11 + $0x70] sm:$0xff] %v1414_v60  ;;  %v1406_v12 = vadd.f32 %v2427_v7, %v1405_v59 }
 0x302   :  { %v1889_v61 = vpop.f32.mrf.mxu0 }
 0x303   :  { %1496 = vst [vmem:[#allocation11 + $0x60] sm:$0xff] %v1406_v12  ;;  %v1417_v42 = vadd.f32 %v1889_v61, %v2427_v7 }
 0x304   :  { %v1408_v21 = vpop.f32.mrf.mxu0 }
 0x305   :  { %1499 = vst [vmem:[#allocation11 + $0x78] sm:$0xff] %v1417_v42  ;;  %v1409_v43 = vadd.f32 %v2427_v7, %v1408_v21 }
 0x307   :  { %1497 = vst [vmem:[#allocation11 + $0x68] sm:$0xff] %v1409_v43 }
 0x30e   :  { %v1892_v13 = vpop.f32.mrf.mxu0 }
 0x30f   :  { %v1430_v0 = vadd.f32 %v1892_v13, %v2427_v7 }
 0x310   :  { %v1421_v4 = vpop.f32.mrf.mxu0 }
 0x311   :  { %1502 = vst [vmem:[#allocation11 + $0x90] sm:$0xff] %v1430_v0  ;;  %v1422_v25 = vadd.f32 %v2427_v7, %v1421_v4 }
 0x312   :  { %v1893_v39 = vpop.f32.mrf.mxu0 }
 0x313   :  { %1500 = vst [vmem:[#allocation11 + $0x80] sm:$0xff] %v1422_v25  ;;  %v1433_v2 = vadd.f32 %v1893_v39, %v2427_v7 }
 0x314   :  { %v1424_v6 = vpop.f32.mrf.mxu0 }
 0x315   :  { %1503 = vst [vmem:[#allocation11 + $0x98] sm:$0xff] %v1433_v2  ;;  %v1425_v30 = vadd.f32 %v2427_v7, %v1424_v6 }
 0x317   :  { %1501 = vst [vmem:[#allocation11 + $0x88] sm:$0xff] %v1425_v30 }
 0x31e   :  { %v1896_v14 = vpop.f32.mrf.mxu0 }
 0x31f   :  { %v1446_v40 = vadd.f32 %v1896_v14, %v2427_v7 }
 0x320   :  { %v1437_v1 = vpop.f32.mrf.mxu0 }
 0x321   :  { %1506 = vst [vmem:[#allocation11 + $0xb0] sm:$0xff] %v1446_v40  ;;  %v1438_v41 = vadd.f32 %v2427_v7, %v1437_v1 }
 0x322   :  { %v1897_v55 = vpop.f32.mrf.mxu0 }
 0x323   :  { %1504 = vst [vmem:[#allocation11 + $0xa0] sm:$0xff] %v1438_v41  ;;  %v1449_v34 = vadd.f32 %v1897_v55, %v2427_v7 }
 0x324   :  { %v1440_v38 = vpop.f32.mrf.mxu0 }
 0x325   :  { %1507 = vst [vmem:[#allocation11 + $0xb8] sm:$0xff] %v1449_v34  ;;  %v1441_v47 = vadd.f32 %v2427_v7, %v1440_v38 }
 0x326   :  { %v1900_v32 = vpop.f32.mrf.mxu0 }
 0x327   :  { %1505 = vst [vmem:[#allocation11 + $0xa8] sm:$0xff] %v1441_v47  ;;  %v1462_v46 = vadd.f32 %v1900_v32, %v2427_v7 }
 0x328   :  { %v1453_v48 = vpop.f32.mrf.mxu0 }
 0x329   :  { %1510 = vst [vmem:[#allocation11 + $0xd0] sm:$0xff] %v1462_v46  ;;  %v1454_v16 = vadd.f32 %v2427_v7, %v1453_v48 }
 0x32a   :  { %v1901_v49 = vpop.f32.mrf.mxu0 }
 0x32b   :  { %1508 = vst [vmem:[#allocation11 + $0xc0] sm:$0xff] %v1454_v16  ;;  %v1465_v53 = vadd.f32 %v1901_v49, %v2427_v7 }
 0x32c   :  { %v1456_v19 = vpop.f32.mrf.mxu0 }
 0x32d   :  { %1511 = vst [vmem:[#allocation11 + $0xd8] sm:$0xff] %v1465_v53  ;;  %v1457_v22 = vadd.f32 %v2427_v7, %v1456_v19 }
 0x32e   :  { %v1904_v62 = vpop.f32.mrf.mxu0 }
 0x32f   :  { %1509 = vst [vmem:[#allocation11 + $0xc8] sm:$0xff] %v1457_v22  ;;  %v1478_v36 = vadd.f32 %v1904_v62, %v2427_v7 }
 0x330   :  { %v1469_v45 = vpop.f32.mrf.mxu0 }
 0x331   :  { %1514 = vst [vmem:[#allocation11 + $0xf0] sm:$0xff] %v1478_v36  ;;  %v1470_v33 = vadd.f32 %v2427_v7, %v1469_v45 }
 0x332   :  { %v1905_v52 = vpop.f32.mrf.mxu0 }
 0x333   :  { %1512 = vst [vmem:[#allocation11 + $0xe0] sm:$0xff] %v1470_v33  ;;  %v1481_v57 = vadd.f32 %v1905_v52, %v2427_v7 }
 0x334   :  { %v1472_v10 = vpop.f32.mrf.mxu0 }
 0x335   :  { %1515 = vst [vmem:[#allocation11 + $0xf8] sm:$0xff] %v1481_v57  ;;  %v1473_v24 = vadd.f32 %v2427_v7, %v1472_v10 }
 0x337   :  { %1513 = vst [vmem:[#allocation11 + $0xe8] sm:$0xff] %v1473_v24 }
 0x338   :  { %2085 = shalt.err (!%p2082_p1)
}
 0x339   :  { %1527 = dma.vmem_to_hbm [thread:$0]  %s1522_s13, 4096, %s2475_s8, [#allocation4], %s2109_s21, %s2109_s21, %s2110_s22  }
 0x33a   :  { %2100 = dma.done.wait [#allocation4], 4096  }
 0x33b   :  { %2101 = vsyncadd [#allocation4], 4294963200 }
 0x33c   :  { %1531 = vsyncpa [#allocation3], 1 }
 0x33d   :  { %1532 = vsyncpa [#allocation6], 1 }
 0x33e   :  { %1533 = vsyncpa [#allocation9], 1 }
 0x33f   :  { %1534 = vsyncpa [#allocation4], 1 }

</bundles_post_ra>
